<compile_context>
chip_gen: v5e
topology: v5e:2x2
jax: 0.10.0
libtpu: 0.0.40
codegen_flags: <defaults>
</compile_context>

<pallas_src>
import functools

import jax
import jax.numpy as jnp
import numpy as np
from jax.experimental import pallas as pl
from jax.experimental.pallas import tpu as pltpu

# Compat: current JAX exposes pltpu.CompilerParams (older: TPUCompilerParams).
_CompilerParams = getattr(pltpu, "CompilerParams", None) or getattr(
    pltpu, "TPUCompilerParams")


def _round_up(v, m):
    return (v + m - 1) // m * m


# ----------------------------------------------------------------------------
# In-kernel helpers (trace-time Python)
# ----------------------------------------------------------------------------
def _shift_up(x, s):
    """rows i <- rows i + s (rotation; the wrapped-in tail rows are never
    read downstream, so they may hold garbage)."""
    if s == 0:
        return x
    n = x.shape[0]
    if hasattr(pltpu, "roll"):                        # XLU rotate (free slot)
        return pltpu.roll(x, n - s, axis=0)           # == jnp.roll(x, -s, 0)
    return jnp.concatenate([x[s:], x[:s]], axis=0)    # compat fallback


def _running_max(x, win):
    """x[i] <- max(x[i : i+win]) (win is a power of two); rows whose window
    runs past the end hold don't-care values."""
    s = 1
    while s < win:
        x = jnp.maximum(x, _shift_up(x, s))
        s *= 2
    return x


# ----------------------------------------------------------------------------
# Fused DCNN_block kernel: one grid step == `bt` batch elements
# ----------------------------------------------------------------------------
def _dcnn_kernel(patch_ref, w1_ref, w2_ref, w3_ref, bias_ref, o_ref,
                 *, bt, m_pad, n2, p3_n):
    f32 = jnp.float32
    c1ch = w1_ref.shape[-1]      # 16
    c2ch = w2_ref.shape[-1]      # 32
    c3ch = w3_ref.shape[-1]      # 8

    # ---- layer 1 conv: a single K=256 MXU matmul over bt*m_pad patch rows ---
    patches = patch_ref[...].reshape(bt * m_pad, patch_ref.shape[-1])
    c1 = jnp.dot(patches, w1_ref[...], preferred_element_type=f32)

    # ---- layer 1 MaxPool(1,64)/stride 3, +bias (commutes with max), ReLU ----
    # 6-level shift-and-max tree (shifts 1,2,4,8,16,32) == 64-row running max.
    y1 = _running_max(c1, 64)
    z1 = jnp.maximum(y1 + bias_ref[0:1, :c1ch], 0.0)

    # Only rows < n2 of each element can ever reach the output; drop the rest
    # with an 8-aligned slice (free reshapes, no realign copies).
    z1 = z1.reshape(bt, m_pad, c1ch)[:, :n2, :].reshape(bt * n2, c1ch)

    # ---- layer 2: Conv(16->32,k2,s2) + MaxPool(3)/s2 + ReLU ------------------
    # Full-row-resolution trick: valid conv-2 outputs live at rows 6w, pool-2
    # outputs at rows 12q, conv-3 at 12r, final outputs at 24u; the strides
    # are realized purely with rolls, so no strided gather is ever needed.
    c2 = (jnp.dot(z1, w2_ref[0], preferred_element_type=f32)
          + jnp.dot(_shift_up(z1, 3), w2_ref[1], preferred_element_type=f32))
    p2 = jnp.maximum(jnp.maximum(c2, _shift_up(c2, 6)), _shift_up(c2, 12))
    a2 = jnp.maximum(p2 + bias_ref[1:2, :c2ch], 0.0)

    # ---- layer 3: Conv(32->8,k2,s1) + MaxPool(3)/s2 + ReLU -------------------
    c3 = (jnp.dot(a2, w3_ref[0], preferred_element_type=f32)
          + jnp.dot(_shift_up(a2, 12), w3_ref[1], preferred_element_type=f32))
    p3 = jnp.maximum(jnp.maximum(c3, _shift_up(c3, 12)), _shift_up(c3, 24))
    a3 = jnp.maximum(p3 + bias_ref[2:3, :c3ch], 0.0)

    # Final outputs sit at rows 24*u of every n2-row element block (8-aligned
    # picks), written back as one batched store per grid step.
    a3 = a3.reshape(bt, n2, c3ch)
    outs = [a3[:, 24 * u:24 * u + 1, :] for u in range(p3_n)]
    o_ref[...] = outs[0] if p3_n == 1 else jnp.concatenate(outs, axis=1)


# ----------------------------------------------------------------------------
# Wrapper: host-side prep (im2col patches, fused weights) + one pallas_call
# ----------------------------------------------------------------------------
def dcnn_block_forward(x, params, *, batch_tile=None, compute_dtype=jnp.float32):
    B, Cin, H, W = x.shape
    assert Cin == 1 and H == 2, "DCNN_block expects (B, 1, 2, W) inputs"
    KH, KW, SW = 2, 128, 5
    C1, C2, C3 = 16, 32, 8

    # static geometry of the three conv/pool stages (all VALID padding)
    wo1 = (W - KW) // SW + 1
    p1_n = (wo1 - 64) // 3 + 1
    wo2 = (p1_n - 2) // 2 + 1
    p2_n = (wo2 - 3) // 2 + 1
    wo3 = (p2_n - 2) // 1 + 1
    p3_n = (wo3 - 3) // 2 + 1
    assert wo1 >= 64 and p1_n >= 2 and wo2 >= 3 and p2_n >= 2 and p3_n >= 1, (
        "input width too small for DCNN_block")
    # geometry invariants the fused kernel relies on (cf. review notes)
    assert (p1_n - 1) * 3 + 64 <= wo1
    assert 24 * (p3_n - 1) + 115 <= wo1

    m_pad = _round_up(wo1, 8)                  # conv-1 rows, sublane aligned
    n2 = _round_up(24 * (p3_n - 1) + 52, 8)    # rows layers 2/3 can ever reach
    assert n2 <= m_pad

    # ---- batch tile ----------------------------------------------------------
    if batch_tile is None:
        batch_tile = min(64, B)                # VMEM-safe on all generations
        if B > 1 and batch_tile == B:
            batch_tile = (B + 1) // 2          # >=2 grid steps for v7x's 2 TCs
    bt = max(1, min(batch_tile, B))
    B_pad = _round_up(B, bt)

    # ---- lane-dense (256-wide) im2col patch matrix (built once, host-side) --
    col = np.arange(wo1)[:, None] * SW + np.arange(KW)[None, :]    # (wo1, 128)
    patches = x[:, 0, :, :][:, :, col]                             # (B,2,wo1,128)
    patches = patches.transpose(0, 2, 1, 3).reshape(B, wo1, KH * KW)
    patches = jnp.pad(patches, ((0, B_pad - B), (0, m_pad - wo1), (0, 0)))
    patches = patches.astype(compute_dtype)

    # ---- fused / transposed weights -----------------------------------------
    w1 = params["w1"].astype(compute_dtype)                        # (16,1,2,128)
    w1f = jnp.transpose(w1[:, 0], (1, 2, 0)).reshape(KH * KW, C1)  # (256,16)
    w2 = params["w2"].astype(jnp.float32)                          # (32,16,1,2)
    w2f = jnp.stack([w2[:, :, 0, 0].T, w2[:, :, 0, 1].T], axis=0)  # (2,16,32)
    w3 = params["w3"].astype(jnp.float32)                          # (8,32,1,2)
    w3f = jnp.stack([w3[:, :, 0, 0].T, w3[:, :, 0, 1].T], axis=0)  # (2,32,8)

    biases = jnp.zeros((3, 128), jnp.float32)                      # one DMA
    biases = biases.at[0, :C1].set(params["b1"].astype(jnp.float32))
    biases = biases.at[1, :C2].set(params["b2"].astype(jnp.float32))
    biases = biases.at[2, :C3].set(params["b3"].astype(jnp.float32))

    patch_block_bytes = bt * m_pad * KH * KW * jnp.dtype(compute_dtype).itemsize
    vmem_limit = int(min(48 << 20,
                         max(16 << 20,
                             2 * patch_block_bytes + (bt << 16) + (8 << 20))))

    kern = functools.partial(_dcnn_kernel, bt=bt, m_pad=m_pad, n2=n2, p3_n=p3_n)
    out = pl.pallas_call(
        kern,
        out_shape=jax.ShapeDtypeStruct((B_pad, p3_n, C3), jnp.float32),
        grid=(B_pad // bt,),
        in_specs=[
            pl.BlockSpec((bt, m_pad, KH * KW), lambda g: (g, 0, 0)),   # patches
            pl.BlockSpec((KH * KW, C1), lambda g: (0, 0)),             # fused W1
            pl.BlockSpec((2, C1, C2), lambda g: (0, 0, 0)),            # W2 taps
            pl.BlockSpec((2, C2, C3), lambda g: (0, 0, 0)),            # W3 taps
            pl.BlockSpec((3, 128), lambda g: (0, 0)),                  # biases
        ],
        out_specs=pl.BlockSpec((bt, p3_n, C3), lambda g: (g, 0, 0)),
        compiler_params=_CompilerParams(
            dimension_semantics=("parallel",),
            vmem_limit_bytes=vmem_limit),
    )(patches, w1f, w2f, w3f, biases)

    out = out[:B]                                        # (B, p3_n, 8)
    return jnp.transpose(out, (0, 2, 1))[:, :, None, :]  # NCHW (B, 8, 1, p3_n)


# ----------------------------------------------------------------------------
# Pure-JAX reference (ground truth for the correctness check)
# ----------------------------------------------------------------------------
def _ref_layer(x, w, b, stride, pool_k, pool_s):
    conv = jax.lax.conv_general_dilated(
        x, w, window_strides=stride, padding="VALID",
        dimension_numbers=("NCHW", "OIHW", "NCHW"),
        precision=jax.lax.Precision.HIGHEST) + b[None, :, None, None]
    pooled = jax.lax.reduce_window(
        conv, -jnp.inf, jax.lax.max,
        window_dimensions=(1, 1) + pool_k,
        window_strides=(1, 1) + pool_s, padding="VALID")
    return jnp.maximum(pooled, 0.0)


def dcnn_block_reference(x, params):
    x1 = _ref_layer(x, params["w1"], params["b1"], (1, 5), (1, 64), (1, 3))
    x2 = _ref_layer(x1, params["w2"], params["b2"], (1, 2), (1, 3), (1, 2))
    x3 = _ref_layer(x2, params["w3"], params["b3"], (1, 1), (1, 3), (1, 2))
    return x3


# ----------------------------------------------------------------------------
# Deterministic parameter init (PyTorch Conv2d default: U(-1/sqrt(fan_in), +))
# ----------------------------------------------------------------------------
def init_params(key):
    shapes = {
        "w1": (16, 1, 2, 128), "b1": (16,),
        "w2": (32, 16, 1, 2),  "b2": (32,),
        "w3": (8, 32, 1, 2),   "b3": (8,),
    }
    params = {}
    keys = jax.random.split(key, 6)
    for i, name in enumerate(("w1", "w2", "w3")):
        cout, cin, kh, kw = shapes[name]
        bound = 1.0 / np.sqrt(cin * kh * kw)
        params[name] = jax.random.uniform(keys[2 * i], shapes[name],
                                          minval=-bound, maxval=bound,
                                          dtype=jnp.float32)
        bname = "b" + name[1]
        params[bname] = jax.random.uniform(keys[2 * i + 1], shapes[bname],
                                           minval=-bound, maxval=bound,
                                           dtype=jnp.float32)
    return params


if __name__ == "__main__":
    key = jax.random.PRNGKey(0)
    kx, kp = jax.random.split(key)

    params = init_params(kp)
    # Smallest practical input: W >= 698 survives all three stride/pool stages;
    # batch 8 exercises the batched grid (2 steps of 4 elements).
    x = jax.random.normal(kx, (8, 1, 2, 700), dtype=jnp.float32)

    fwd = jax.jit(dcnn_block_forward)
    out = jax.block_until_ready(fwd(x, params))
    ref = jax.block_until_ready(dcnn_block_reference(x, params))

    assert out.shape == (8, 8, 1, 1), out.shape
    assert np.allclose(np.asarray(out), np.asarray(ref), atol=1e-4, rtol=1e-4), (
        "Pallas output does not match reference")

    print("KERNEL_OK")
</pallas_src>

<mosaic_0001>
module attributes {stable_mosaic.version = 11 : i64} {
  func.func @_dcnn_kernel(%arg0: i32, %arg1: memref<4x120x256xf32, #tpu.memory_space<vmem>>, %arg2: memref<256x16xf32, #tpu.memory_space<vmem>>, %arg3: memref<2x16x32xf32, #tpu.memory_space<vmem>>, %arg4: memref<2x32x8xf32, #tpu.memory_space<vmem>>, %arg5: memref<3x128xf32, #tpu.memory_space<vmem>>, %arg6: memref<4x1x8xf32, #tpu.memory_space<vmem>>) attributes {dimension_semantics = [#tpu.dimension_semantics<parallel>], iteration_bounds = array<i64: 2>, scalar_prefetch = 0 : i64, scratch_operands = 0 : i64, tpu.core_type = #tpu.core_type<tc>, window_params = [{transform_indices = @transform_0, window_bounds = array<i64: 4, 120, 256>}, {pipeline_mode = #tpu.pipeline_mode<synchronous>, transform_indices = @transform_1, window_bounds = array<i64: 256, 16>}, {pipeline_mode = #tpu.pipeline_mode<synchronous>, transform_indices = @transform_2, window_bounds = array<i64: 2, 16, 32>}, {pipeline_mode = #tpu.pipeline_mode<synchronous>, transform_indices = @transform_3, window_bounds = array<i64: 2, 32, 8>}, {pipeline_mode = #tpu.pipeline_mode<synchronous>, transform_indices = @transform_4, window_bounds = array<i64: 3, 128>}, {transform_indices = @transform_5, window_bounds = array<i64: 4, 1, 8>}]} {
    %c0 = arith.constant 0 : index
    %c0_0 = arith.constant 0 : index
    %c0_1 = arith.constant 0 : index
    %0 = vector.load %arg1[%c0, %c0_0, %c0_1] : memref<4x120x256xf32, #tpu.memory_space<vmem>>, vector<4x120x256xf32>
    %1 = vector.shape_cast %0 : vector<4x120x256xf32> to vector<480x256xf32>
    %c0_2 = arith.constant 0 : index
    %c0_3 = arith.constant 0 : index
    %2 = vector.load %arg2[%c0_2, %c0_3] : memref<256x16xf32, #tpu.memory_space<vmem>>, vector<256x16xf32>
    %cst = arith.constant dense<0.000000e+00> : vector<480x16xf32>
    %3 = tpu.matmul %1, %2, %cst {dimension_numbers = #tpu.dot_dimension_numbers<[1], [0], [0], [1], [0, 0, 1, 1], [], []>} : vector<480x256xf32>, vector<256x16xf32>, vector<480x16xf32> -> vector<480x16xf32>
    %c479_i32 = arith.constant 479 : i32
    %4 = tpu.dynamic_rotate %3 by %c479_i32 dim 0 : vector<480x16xf32>, i32 -> vector<480x16xf32>
    %5 = arith.maximumf %3, %4 : vector<480x16xf32>
    %c478_i32 = arith.constant 478 : i32
    %6 = tpu.dynamic_rotate %5 by %c478_i32 dim 0 : vector<480x16xf32>, i32 -> vector<480x16xf32>
    %7 = arith.maximumf %5, %6 : vector<480x16xf32>
    %c476_i32 = arith.constant 476 : i32
    %8 = tpu.dynamic_rotate %7 by %c476_i32 dim 0 : vector<480x16xf32>, i32 -> vector<480x16xf32>
    %9 = arith.maximumf %7, %8 : vector<480x16xf32>
    %c472_i32 = arith.constant 472 : i32
    %10 = tpu.dynamic_rotate %9 by %c472_i32 dim 0 : vector<480x16xf32>, i32 -> vector<480x16xf32>
    %11 = arith.maximumf %9, %10 : vector<480x16xf32>
    %c464_i32 = arith.constant 464 : i32
    %12 = tpu.dynamic_rotate %11 by %c464_i32 dim 0 : vector<480x16xf32>, i32 -> vector<480x16xf32>
    %13 = arith.maximumf %11, %12 : vector<480x16xf32>
    %c448_i32 = arith.constant 448 : i32
    %14 = tpu.dynamic_rotate %13 by %c448_i32 dim 0 : vector<480x16xf32>, i32 -> vector<480x16xf32>
    %15 = arith.maximumf %13, %14 : vector<480x16xf32>
    %c0_4 = arith.constant 0 : index
    %c0_5 = arith.constant 0 : index
    %16 = vector.load %arg5[%c0_4, %c0_5] : memref<3x128xf32, #tpu.memory_space<vmem>>, vector<1x16xf32>
    %17 = vector.broadcast %16 : vector<1x16xf32> to vector<480x16xf32>
    %18 = arith.addf %15, %17 : vector<480x16xf32>
    %cst_6 = arith.constant 0.000000e+00 : f32
    %19 = vector.broadcast %cst_6 : f32 to vector<480x16xf32>
    %20 = arith.maximumf %18, %19 : vector<480x16xf32>
    %21 = vector.shape_cast %20 : vector<480x16xf32> to vector<4x120x16xf32>
    %22 = vector.extract_strided_slice %21 {offsets = [0, 0, 0], sizes = [4, 56, 16], strides = [1, 1, 1]} : vector<4x120x16xf32> to vector<4x56x16xf32>
    %23 = vector.shape_cast %22 : vector<4x56x16xf32> to vector<224x16xf32>
    %c0_7 = arith.constant 0 : index
    %c0_8 = arith.constant 0 : index
    %c0_9 = arith.constant 0 : index
    %24 = vector.load %arg3[%c0_7, %c0_8, %c0_9] : memref<2x16x32xf32, #tpu.memory_space<vmem>>, vector<1x16x32xf32>
    %25 = vector.shape_cast %24 : vector<1x16x32xf32> to vector<16x32xf32>
    %cst_10 = arith.constant dense<0.000000e+00> : vector<224x32xf32>
    %26 = tpu.matmul %23, %25, %cst_10 {dimension_numbers = #tpu.dot_dimension_numbers<[1], [0], [0], [1], [0, 0, 1, 1], [], []>} : vector<224x16xf32>, vector<16x32xf32>, vector<224x32xf32> -> vector<224x32xf32>
    %c221_i32 = arith.constant 221 : i32
    %27 = tpu.dynamic_rotate %23 by %c221_i32 dim 0 : vector<224x16xf32>, i32 -> vector<224x16xf32>
    %c1 = arith.constant 1 : index
    %c0_11 = arith.constant 0 : index
    %c0_12 = arith.constant 0 : index
    %28 = vector.load %arg3[%c1, %c0_11, %c0_12] : memref<2x16x32xf32, #tpu.memory_space<vmem>>, vector<1x16x32xf32>
    %29 = vector.shape_cast %28 : vector<1x16x32xf32> to vector<16x32xf32>
    %cst_13 = arith.constant dense<0.000000e+00> : vector<224x32xf32>
    %30 = tpu.matmul %27, %29, %cst_13 {dimension_numbers = #tpu.dot_dimension_numbers<[1], [0], [0], [1], [0, 0, 1, 1], [], []>} : vector<224x16xf32>, vector<16x32xf32>, vector<224x32xf32> -> vector<224x32xf32>
    %31 = arith.addf %26, %30 : vector<224x32xf32>
    %c218_i32 = arith.constant 218 : i32
    %32 = tpu.dynamic_rotate %31 by %c218_i32 dim 0 : vector<224x32xf32>, i32 -> vector<224x32xf32>
    %33 = arith.maximumf %31, %32 : vector<224x32xf32>
    %c212_i32 = arith.constant 212 : i32
    %34 = tpu.dynamic_rotate %31 by %c212_i32 dim 0 : vector<224x32xf32>, i32 -> vector<224x32xf32>
    %35 = arith.maximumf %33, %34 : vector<224x32xf32>
    %c1_14 = arith.constant 1 : index
    %c0_15 = arith.constant 0 : index
    %36 = vector.load %arg5[%c1_14, %c0_15] : memref<3x128xf32, #tpu.memory_space<vmem>>, vector<1x32xf32>
    %37 = vector.broadcast %36 : vector<1x32xf32> to vector<224x32xf32>
    %38 = arith.addf %35, %37 : vector<224x32xf32>
    %cst_16 = arith.constant 0.000000e+00 : f32
    %39 = vector.broadcast %cst_16 : f32 to vector<224x32xf32>
    %40 = arith.maximumf %38, %39 : vector<224x32xf32>
    %c0_17 = arith.constant 0 : index
    %c0_18 = arith.constant 0 : index
    %c0_19 = arith.constant 0 : index
    %41 = vector.load %arg4[%c0_17, %c0_18, %c0_19] : memref<2x32x8xf32, #tpu.memory_space<vmem>>, vector<1x32x8xf32>
    %42 = vector.shape_cast %41 : vector<1x32x8xf32> to vector<32x8xf32>
    %cst_20 = arith.constant dense<0.000000e+00> : vector<224x8xf32>
    %43 = tpu.matmul %40, %42, %cst_20 {dimension_numbers = #tpu.dot_dimension_numbers<[1], [0], [0], [1], [0, 0, 1, 1], [], []>} : vector<224x32xf32>, vector<32x8xf32>, vector<224x8xf32> -> vector<224x8xf32>
    %c212_i32_21 = arith.constant 212 : i32
    %44 = tpu.dynamic_rotate %40 by %c212_i32_21 dim 0 : vector<224x32xf32>, i32 -> vector<224x32xf32>
    %c1_22 = arith.constant 1 : index
    %c0_23 = arith.constant 0 : index
    %c0_24 = arith.constant 0 : index
    %45 = vector.load %arg4[%c1_22, %c0_23, %c0_24] : memref<2x32x8xf32, #tpu.memory_space<vmem>>, vector<1x32x8xf32>
    %46 = vector.shape_cast %45 : vector<1x32x8xf32> to vector<32x8xf32>
    %cst_25 = arith.constant dense<0.000000e+00> : vector<224x8xf32>
    %47 = tpu.matmul %44, %46, %cst_25 {dimension_numbers = #tpu.dot_dimension_numbers<[1], [0], [0], [1], [0, 0, 1, 1], [], []>} : vector<224x32xf32>, vector<32x8xf32>, vector<224x8xf32> -> vector<224x8xf32>
    %48 = arith.addf %43, %47 : vector<224x8xf32>
    %c212_i32_26 = arith.constant 212 : i32
    %49 = tpu.dynamic_rotate %48 by %c212_i32_26 dim 0 : vector<224x8xf32>, i32 -> vector<224x8xf32>
    %50 = arith.maximumf %48, %49 : vector<224x8xf32>
    %c200_i32 = arith.constant 200 : i32
    %51 = tpu.dynamic_rotate %48 by %c200_i32 dim 0 : vector<224x8xf32>, i32 -> vector<224x8xf32>
    %52 = arith.maximumf %50, %51 : vector<224x8xf32>
    %c2 = arith.constant 2 : index
    %c0_27 = arith.constant 0 : index
    %53 = vector.load %arg5[%c2, %c0_27] : memref<3x128xf32, #tpu.memory_space<vmem>>, vector<1x8xf32>
    %54 = vector.broadcast %53 : vector<1x8xf32> to vector<224x8xf32>
    %55 = arith.addf %52, %54 : vector<224x8xf32>
    %cst_28 = arith.constant 0.000000e+00 : f32
    %56 = vector.broadcast %cst_28 : f32 to vector<224x8xf32>
    %57 = arith.maximumf %55, %56 : vector<224x8xf32>
    %58 = vector.shape_cast %57 : vector<224x8xf32> to vector<4x56x8xf32>
    %59 = vector.extract_strided_slice %58 {offsets = [0, 0, 0], sizes = [4, 1, 8], strides = [1, 1, 1]} : vector<4x56x8xf32> to vector<4x1x8xf32>
    %c0_29 = arith.constant 0 : index
    %c0_30 = arith.constant 0 : index
    %c0_31 = arith.constant 0 : index
    %60 = vector.load %arg6[%c0_29, %c0_30, %c0_31] : memref<4x1x8xf32, #tpu.memory_space<vmem>>, vector<4x1x8xf32>
    tpu.vector_store %arg6[%c0_29, %c0_30, %c0_31], %59 {strides = array<i32>} : memref<4x1x8xf32, #tpu.memory_space<vmem>>, vector<4x1x8xf32>,
    return
  }
  func.func @transform_0(%arg0: i32) -> (i32, i32, i32) {
    %c0_i32 = arith.constant 0 : i32
    %c0_i32_0 = arith.constant 0 : i32
    %c0_i32_1 = arith.constant 0 : i32
    return %arg0, %c0_i32, %c0_i32_0 : i32, i32, i32
  }
  func.func @transform_1(%arg0: i32) -> (i32, i32) {
    %c0_i32 = arith.constant 0 : i32
    %c0_i32_0 = arith.constant 0 : i32
    %c0_i32_1 = arith.constant 0 : i32
    return %c0_i32, %c0_i32_0 : i32, i32
  }
  func.func @transform_2(%arg0: i32) -> (i32, i32, i32) {
    %c0_i32 = arith.constant 0 : i32
    %c0_i32_0 = arith.constant 0 : i32
    %c0_i32_1 = arith.constant 0 : i32
    %c0_i32_2 = arith.constant 0 : i32
    return %c0_i32, %c0_i32_0, %c0_i32_1 : i32, i32, i32
  }
  func.func @transform_3(%arg0: i32) -> (i32, i32, i32) {
    %c0_i32 = arith.constant 0 : i32
    %c0_i32_0 = arith.constant 0 : i32
    %c0_i32_1 = arith.constant 0 : i32
    %c0_i32_2 = arith.constant 0 : i32
    return %c0_i32, %c0_i32_0, %c0_i32_1 : i32, i32, i32
  }
  func.func @transform_4(%arg0: i32) -> (i32, i32) {
    %c0_i32 = arith.constant 0 : i32
    %c0_i32_0 = arith.constant 0 : i32
    %c0_i32_1 = arith.constant 0 : i32
    return %c0_i32, %c0_i32_0 : i32, i32
  }
  func.func @transform_5(%arg0: i32) -> (i32, i32, i32) {
    %c0_i32 = arith.constant 0 : i32
    %c0_i32_0 = arith.constant 0 : i32
    %c0_i32_1 = arith.constant 0 : i32
    return %arg0, %c0_i32, %c0_i32_0 : i32, i32, i32
  }
}

</mosaic_0001>

<bundles_post_ra>
// kernel: dcnn_block_forward.1
= control target key start
LH: loop header
LB: loop body
LE: loop exit
PB: predicated region body
PF: predicated region fallthrough
CT: control target
= control target key end

     0   :  { %10 = vsyncpa [#allocation3], 0  ;;  %s4664_s0 = inlined_call_operand.vmem [shape: f32[8,120,256], index: 0, kind: input, shape index: {}]   ;;  %s4665_s1 = inlined_call_operand.vmem [shape: f32[256,16], index: 1, kind: input, shape index: {}]   ;;  %s4666_s2 = inlined_call_operand.vmem [shape: f32[2,16,32], index: 2, kind: input, shape index: {}]   ;;  %s4667_s3 = inlined_call_operand.vmem [shape: f32[2,32,8], index: 3, kind: input, shape index: {}]   ;;  %s4668_s4 = inlined_call_operand.vmem [shape: f32[3,128], index: 4, kind: input, shape index: {}]   ;;  %s4669_s5 = inlined_call_operand.hbm [shape: f32[8,1,8], index: 5, kind: output, shape index: {}]  }
   0x1   :  { %12 = vsyncpa [#allocation3 + $0x1], 0  ;;  %s2982_s18 = smov 0   ;;  %s2984_s19 = smov 0  }
   0x2   :  { %s2986_s20 = smov 0   ;;  %s2988_s21 = smov 0  }
   0x3 LB: > { %s2677_s22 = sadd.s32 4294967295, %s2948_s21   ;;  %s2678_s23 = sadd.s32 4294967294, %s2948_s21   ;;  %s2948_s21 = sphi %s2988_s21, %s4683_s21   ;;  %s2944_s20 = sphi %s2986_s20, %s4682_s20   ;;  %s2940_s19 = sphi %s2984_s19, %s4681_s19   ;;  %s2936_s18 = sphi %s2982_s18, %s4680_s18  }
   0x4   : > { %s3005_s24 = sadd.s32 1, %s2948_s21   ;;  %s135_s25 = sadd.s32 1, %s2944_s20 }
   0x5   : > { %s132_s26 = ssub.s32 %s2948_s21, %s3005_s24  ;;  %p145_p0 = scmp.ne.s32.totalorder %s2944_s20, %s2940_s19 }
   0x6   : > { %p133_p1 = scmp.eq.s32.totalorder %s132_s26, 0  ;;  %p146_p2 = scmp.eq.s32.totalorder %s2677_s22, 1 }
   0x7   : > { %p151_p3 = scmp.ne.s32.totalorder %s2940_s19, %s2936_s18  ;;  %p152_p4 = scmp.eq.s32.totalorder %s2678_s23, 1 }
   0x8   : > { %s3017_s27 = scalar_select %p133_p1, %s2944_s20, %s135_s25  }
   0x9   : > { %p3019_p5 = por %p146_p2, %p145_p0  ;;  %p3023_p6 = por %p152_p4, %p151_p3 }
   0xa   : > { %p2681_p7 = scmp.ge.s32.totalorder %s2948_s21, 1  ;;  %p192_p8 = scmp.lt.s32.totalorder %s2948_s21, 3 }
   0xc   : > { %p193_p9 = pnand %p2681_p7, %p192_p8 }
   0xd   : > { %s3076_s25 = sshll.u32 (!%p193_p9), %s2677_s22, 2  ;;  %s2906_s22 = scalar_lea.hbm (!%p193_p9), %s4669_s5, 8 }
   0xe   : > { %196 = sbr.rel (%p193_p9) target bundleno = 1064 (0x428), region = 40  ;;  %p222_p10 = scmp.lt.s32.totalorder (!%p193_p9), %s3076_s25, 7 }
  0x13   : > { %v364_v0 = vld [vmem:[%s4665_s1 + $0x78] sm:$0xff]  ;;  %v363_v2 = vld [vmem:[%s4665_s1 + $0x70] sm:$0xff]  ;;  %v362_v4 = vld [vmem:[%s4665_s1 + $0x68] sm:$0xff]  ;;  %s223_s17 = scalar_select %p222_p10, %s3076_s25, 7  ;;  %vm1556_vm3 = vcmask 130048   ;;  %vm2219_vm6 = vcmask 261120  }
  0x14   : > { %v380_v1 = vld [vmem:[%s4665_s1 + $0xf8] sm:$0xff]  ;;  %381 = vmatpush.msra.mxu0 %v364_v0  ;;  %2807 = vmatpush.msra.mxu2 %v364_v0  ;;  %v379_v3 = vld [vmem:[%s4665_s1 + $0xf0] sm:$0xff]  ;;  %v378_v5 = vld [vmem:[%s4665_s1 + $0xe8] sm:$0xff]  ;;  %vm2596_vm7 = vcmask 57344  }
  0x15   : > { %578 = vmatpush.msra.mxu1 %v380_v1  ;;  %2823 = vmatpush.msra.mxu3 %v380_v1  ;;  %v361_v6 = vld [vmem:[%s4665_s1 + $0x60] sm:$0xff]  ;;  %v360_v8 = vld [vmem:[%s4665_s1 + $0x58] sm:$0xff]  ;;  %v359_v10 = vld [vmem:[%s4665_s1 + $0x50] sm:$0xff]  ;;  %s2839_s10 = smul.u32 240, %s223_s17  ;;  %s2612_s17 = scalar_lea.hbm %s4669_s5, %s3076_s25 }
  0x16   : > { %382 = vmatpush.msra.mxu0 %v363_v2  ;;  %2808 = vmatpush.msra.mxu2 %v363_v2  ;;  %v377_v7 = vld [vmem:[%s4665_s1 + $0xe0] sm:$0xff]  ;;  %v376_v9 = vld [vmem:[%s4665_s1 + $0xd8] sm:$0xff]  ;;  %v375_v11 = vld [vmem:[%s4665_s1 + $0xd0] sm:$0xff]  ;;  %s2615_s26 = sshll.u32 %s2612_s17, 4  ;;  %s2616_s26 = int_to_ptr.hbm [resolvable:$true] %s2615_s26 }
  0x17   : > { %579 = vmatpush.msra.mxu1 %v379_v3  ;;  %2824 = vmatpush.msra.mxu3 %v379_v3  ;;  %v358_v12 = vld [vmem:[%s4665_s1 + $0x48] sm:$0xff]  ;;  %v357_v14 = vld [vmem:[%s4665_s1 + $0x40] sm:$0xff]  ;;  %v356_v16 = vld [vmem:[%s4665_s1 + $0x38] sm:$0xff]  ;;  %s3128_s6 = scalar_lea.vmem %s4664_s0, %s2839_s10  ;;  %s2900_s7 = sshra.s32 %s2616_s26, 4  ;;  %s2901_s7 = int_to_ptr.hbm [resolvable:$true] %s2900_s7 }
  0x18   : > { %383 = vmatpush.msra.mxu0 %v362_v4  ;;  %2809 = vmatpush.msra.mxu2 %v362_v4  ;;  %v374_v13 = vld [vmem:[%s4665_s1 + $0xc8] sm:$0xff]  ;;  %v373_v15 = vld [vmem:[%s4665_s1 + $0xc0] sm:$0xff]  ;;  %v372_v17 = vld [vmem:[%s4665_s1 + $0xb8] sm:$0xff]  ;;  %s2902_s25 = scalar_lea.hbm %s2901_s7, 4  ;;  %p2907_p0 = scmp.lt.s32.totalorder %s2901_s7, %s4669_s5 }
  0x19   : > { %580 = vmatpush.msra.mxu1 %v378_v5  ;;  %2825 = vmatpush.msra.mxu3 %v378_v5  ;;  %v355_v18 = vld [vmem:[%s4665_s1 + $0x30] sm:$0xff]  ;;  %v354_v20 = vld [vmem:[%s4665_s1 + $0x28] sm:$0xff]  ;;  %v353_v22 = vld [vmem:[%s4665_s1 + $0x20] sm:$0xff]  ;;  %p2903_p11 = scmp.ne.s32.totalorder %s2901_s7, %s2902_s25  ;;  %p2908_p1 = scmp.lt.s32.totalorder %s2906_s22, %s2902_s25 }
  0x1a   : > { %384 = vmatpush.msra.mxu0 %v361_v6  ;;  %2810 = vmatpush.msra.mxu2 %v361_v6  ;;  %v371_v19 = vld [vmem:[%s4665_s1 + $0xb0] sm:$0xff]  ;;  %v370_v21 = vld [vmem:[%s4665_s1 + $0xa8] sm:$0xff]  ;;  %v369_v23 = vld [vmem:[%s4665_s1 + $0xa0] sm:$0xff] }
  0x1b   : > { %581 = vmatpush.msra.mxu1 %v377_v7  ;;  %2826 = vmatpush.msra.mxu3 %v377_v7  ;;  %v352_v24 = vld [vmem:[%s4665_s1 + $0x18] sm:$0xff]  ;;  %v351_v26 = vld [vmem:[%s4665_s1 + $0x10] sm:$0xff]  ;;  %v350_v28 = vld [vmem:[%s4665_s1 + $0x8] sm:$0xff]  ;;  %p2904_p12 = pnand %p2903_p11, %p3019_p5  ;;  %p2909_p2 = por %p2908_p1, %p2907_p0 }
  0x1c   : > { %385 = vmatpush.msra.mxu0 %v360_v8  ;;  %2811 = vmatpush.msra.mxu2 %v360_v8  ;;  %v368_v25 = vld [vmem:[%s4665_s1 + $0x98] sm:$0xff]  ;;  %v367_v27 = vld [vmem:[%s4665_s1 + $0x90] sm:$0xff]  ;;  %v366_v29 = vld [vmem:[%s4665_s1 + $0x88] sm:$0xff]  ;;  %v835_v8 = vlaneseq }
  0x1d   : > { %582 = vmatpush.msra.mxu1 %v376_v9  ;;  %2827 = vmatpush.msra.mxu3 %v376_v9  ;;  %v349_v30 = vld [vmem:[%s4665_s1] sm:$0xff]  ;;  %v230_v34 = vld [vmem:[%s3128_s6 + $0x8] sm:$0xff]  ;;  %v231_v36 = vld [vmem:[%s3128_s6 + $0x10] sm:$0xff]  ;;  %p2905_p13 = pneg %p2904_p12 }
  0x1e   : > { %386 = vmatpush.msra.mxu0 %v359_v10  ;;  %2812 = vmatpush.msra.mxu2 %v359_v10  ;;  %v365_v31 = vld [vmem:[%s4665_s1 + $0x80] sm:$0xff]  ;;  %v346_v35 = vld [vmem:[%s3128_s6 + $0x3a8] sm:$0xff]  ;;  %v347_v37 = vld [vmem:[%s3128_s6 + $0x3b0] sm:$0xff] }
  0x1f   : > { %583 = vmatpush.msra.mxu1 %v375_v11  ;;  %2828 = vmatpush.msra.mxu3 %v375_v11  ;;  %v229_v32 = vld [vmem:[%s3128_s6] sm:$0xff]  ;;  %v232_v38 = vld [vmem:[%s3128_s6 + $0x18] sm:$0xff]  ;;  %v234_v41 = vld [vmem:[%s3128_s6 + $0x28] sm:$0xff]  ;;  %p2910_p3 = pnand %p2909_p2, %p2905_p13 }
  0x20   : > { %387 = vmatpush.msra.mxu0 %v358_v12  ;;  %2813 = vmatpush.msra.mxu2 %v358_v12  ;;  %v345_v33 = vld [vmem:[%s3128_s6 + $0x3a0] sm:$0xff]  ;;  %v348_v39 = vld [vmem:[%s3128_s6 + $0x3b8] sm:$0xff]  ;;  %v235_v42 = vld [vmem:[%s3128_s6 + $0x30] sm:$0xff] }
  0x21   : > { %584 = vmatpush.msra.mxu1 %v374_v13  ;;  %2829 = vmatpush.msra.mxu3 %v374_v13  ;;  %v233_v40 = vld [vmem:[%s3128_s6 + $0x20] sm:$0xff]  ;;  %v236_v43 = vld [vmem:[%s3128_s6 + $0x38] sm:$0xff]  ;;  %v238_v45 = vld [vmem:[%s3128_s6 + $0x48] sm:$0xff] }
  0x22   : > { %388 = vmatpush.msra.mxu0 %v357_v14  ;;  %2814 = vmatpush.msra.mxu2 %v357_v14  ;;  %v237_v44 = vld [vmem:[%s3128_s6 + $0x40] sm:$0xff]  ;;  %v239_v46 = vld [vmem:[%s3128_s6 + $0x50] sm:$0xff]  ;;  %v240_v47 = vld [vmem:[%s3128_s6 + $0x58] sm:$0xff]  ;;  %v3175_v14 = vshrl.u32 %v835_v8, 7 }
  0x23   : > { %585 = vmatpush.msra.mxu1 %v373_v15  ;;  %2830 = vmatpush.msra.mxu3 %v373_v15  ;;  %v241_v48 = vld [vmem:[%s3128_s6 + $0x60] sm:$0xff]  ;;  %v242_v49 = vld [vmem:[%s3128_s6 + $0x68] sm:$0xff]  ;;  %v243_v50 = vld [vmem:[%s3128_s6 + $0x70] sm:$0xff] }
  0x24   : > { %389 = vmatpush.msra.mxu0 %v356_v16  ;;  %2815 = vmatpush.msra.mxu2 %v356_v16  ;;  %v244_v51 = vld [vmem:[%s3128_s6 + $0x78] sm:$0xff]  ;;  %v245_v52 = vld [vmem:[%s3128_s6 + $0x80] sm:$0xff]  ;;  %v246_v53 = vld [vmem:[%s3128_s6 + $0x88] sm:$0xff]  ;;  %vm837_vm0 = vcmp.lt.s32.totalorder %v3175_v14, 7  ;;  %vm1018_vm1 = vcmp.lt.s32.totalorder %v3175_v14, 6  ;;  %vm1199_vm2 = vcmp.lt.s32.totalorder %v3175_v14, 4 }
  0x25   : > { %586 = vmatpush.msra.mxu1 %v372_v17  ;;  %2831 = vmatpush.msra.mxu3 %v372_v17  ;;  %v247_v54 = vld [vmem:[%s3128_s6 + $0x90] sm:$0xff]  ;;  %v248_v55 = vld [vmem:[%s3128_s6 + $0x98] sm:$0xff]  ;;  %v249_v56 = vld [vmem:[%s3128_s6 + $0xa0] sm:$0xff]  ;;  %vm1524_vm4 = vcmp.lt.s32.totalorder %v3175_v14, 5  ;;  %vm1955_vm5 = vcmp.lt.s32.totalorder %v3175_v14, 2 }
  0x26   : > { %390 = vmatpush.msra.mxu0 %v355_v18  ;;  %2816 = vmatpush.msra.mxu2 %v355_v18  ;;  %v250_v57 = vld [vmem:[%s3128_s6 + $0xa8] sm:$0xff]  ;;  %v251_v58 = vld [vmem:[%s3128_s6 + $0xb0] sm:$0xff]  ;;  %v252_v59 = vld [vmem:[%s3128_s6 + $0xb8] sm:$0xff] }
  0x27   : > { %587 = vmatpush.msra.mxu1 %v371_v19  ;;  %2832 = vmatpush.msra.mxu3 %v371_v19  ;;  %v253_v60 = vld [vmem:[%s3128_s6 + $0xc0] sm:$0xff]  ;;  %v254_v61 = vld [vmem:[%s3128_s6 + $0xc8] sm:$0xff]  ;;  %v255_v62 = vld [vmem:[%s3128_s6 + $0xd0] sm:$0xff] }
  0x28   : > { %391 = vmatpush.msra.mxu0 %v354_v20  ;;  %2817 = vmatpush.msra.mxu2 %v354_v20  ;;  %v256_v63 = vld [vmem:[%s3128_s6 + $0xd8] sm:$0xff]  ;;  %v257_v0 = vld [vmem:[%s3128_s6 + $0xe0] sm:$0xff]  ;;  %v258_v1 = vld [vmem:[%s3128_s6 + $0xe8] sm:$0xff] }
  0x29   : > { %588 = vmatpush.msra.mxu1 %v370_v21  ;;  %2833 = vmatpush.msra.mxu3 %v370_v21  ;;  %v259_v2 = vld [vmem:[%s3128_s6 + $0xf0] sm:$0xff]  ;;  %v260_v3 = vld [vmem:[%s3128_s6 + $0xf8] sm:$0xff]  ;;  %v261_v5 = vld [vmem:[%s3128_s6 + $0x100] sm:$0xff] }
  0x2a   : > { %392 = vmatpush.msra.mxu0 %v353_v22  ;;  %2818 = vmatpush.msra.mxu2 %v353_v22  ;;  %v262_v7 = vld [vmem:[%s3128_s6 + $0x108] sm:$0xff]  ;;  %v263_v12 = vld [vmem:[%s3128_s6 + $0x110] sm:$0xff]  ;;  %v264_v15 = vld [vmem:[%s3128_s6 + $0x118] sm:$0xff] }
  0x2b   : > { %589 = vmatpush.msra.mxu1 %v369_v23  ;;  %2834 = vmatpush.msra.mxu3 %v369_v23 }
  0x2c   : > { %393 = vmatpush.msra.mxu0 %v352_v24  ;;  %2819 = vmatpush.msra.mxu2 %v352_v24 }
  0x2d   : > { %590 = vmatpush.msra.mxu1 %v368_v25  ;;  %2835 = vmatpush.msra.mxu3 %v368_v25 }
  0x2e   : > { %394 = vmatpush.msra.mxu0 %v351_v26  ;;  %2820 = vmatpush.msra.mxu2 %v351_v26 }
  0x2f   : > { %591 = vmatpush.msra.mxu1 %v367_v27  ;;  %2836 = vmatpush.msra.mxu3 %v367_v27  ;;  %v265_v27 = vld [vmem:[%s3128_s6 + $0x120] sm:$0xff] }
  0x30   : > { %395 = vmatpush.msra.mxu0 %v350_v28  ;;  %2821 = vmatpush.msra.mxu2 %v350_v28 }
  0x31   : > { %592 = vmatpush.msra.mxu1 %v366_v29  ;;  %2837 = vmatpush.msra.mxu3 %v366_v29  ;;  %v266_v29 = vld [vmem:[%s3128_s6 + $0x128] sm:$0xff] }
  0x32   : > { %396 = vmatpush.msra.mxu0 %v349_v30  ;;  %2822 = vmatpush.msra.mxu2 %v349_v30 }
  0x33   : > { %593 = vmatpush.msra.mxu1 %v365_v31  ;;  %2838 = vmatpush.msra.mxu3 %v365_v31 }
  0x34   : > { %397 = vmatmul.f32.vlgmr.msra.gmra.mxu0 %v229_v32  ;;  %571 = vmatmul.f32.vlgmr.msra.gmra.mxu2 %v345_v33 }
  0x35   : > { %594 = vmatmul.f32.vlgmr.msra.gmra.mxu1 %v230_v34  ;;  %768 = vmatmul.f32.vlgmr.msra.gmra.mxu3 %v346_v35 }
  0x3c   : > { %400 = vmatmul.f32.gmra.mxu0 %v231_v36  ;;  %574 = vmatmul.f32.gmra.mxu2 %v347_v37 }
  0x3d   : > { %597 = vmatmul.f32.gmra.mxu1 %v232_v38  ;;  %771 = vmatmul.f32.gmra.mxu3 %v348_v39 }
  0x44   : > { %403 = vmatmul.f32.gmra.mxu0 %v233_v40 }
  0x45   : > { %600 = vmatmul.f32.gmra.mxu1 %v234_v41  ;;  %v267_v41 = vld [vmem:[%s3128_s6 + $0x130] sm:$0xff] }
  0x4c   : > { %406 = vmatmul.f32.gmra.mxu0 %v235_v42 }
  0x4d   : > { %603 = vmatmul.f32.gmra.mxu1 %v236_v43 }
  0x54   : > { %409 = vmatmul.f32.gmra.mxu0 %v237_v44  ;;  %v268_v44 = vld [vmem:[%s3128_s6 + $0x138] sm:$0xff] }
  0x55   : > { %606 = vmatmul.f32.gmra.mxu1 %v238_v45 }
  0x5c   : > { %412 = vmatmul.f32.gmra.mxu0 %v239_v46 }
  0x5d   : > { %609 = vmatmul.f32.gmra.mxu1 %v240_v47 }
  0x64   : > { %415 = vmatmul.f32.gmra.mxu0 %v241_v48 }
  0x65   : > { %612 = vmatmul.f32.gmra.mxu1 %v242_v49 }
  0x6c   : > { %418 = vmatmul.f32.gmra.mxu0 %v243_v50 }
  0x6d   : > { %615 = vmatmul.f32.gmra.mxu1 %v244_v51 }
  0x74   : > { %421 = vmatmul.f32.gmra.mxu0 %v245_v52 }
  0x75   : > { %618 = vmatmul.f32.gmra.mxu1 %v246_v53  ;;  %v269_v53 = vld [vmem:[%s3128_s6 + $0x140] sm:$0xff] }
  0x7c   : > { %424 = vmatmul.f32.gmra.mxu0 %v247_v54 }
  0x7d   : > { %621 = vmatmul.f32.gmra.mxu1 %v248_v55  ;;  %v270_v55 = vld [vmem:[%s3128_s6 + $0x148] sm:$0xff] }
  0x84   : > { %427 = vmatmul.f32.gmra.mxu0 %v249_v56 }
  0x85   : > { %624 = vmatmul.f32.gmra.mxu1 %v250_v57  ;;  %v271_v57 = vld [vmem:[%s3128_s6 + $0x150] sm:$0xff] }
  0x8c   : > { %430 = vmatmul.f32.gmra.mxu0 %v251_v58 }
  0x8d   : > { %627 = vmatmul.f32.gmra.mxu1 %v252_v59  ;;  %v272_v59 = vld [vmem:[%s3128_s6 + $0x158] sm:$0xff] }
  0x94   : > { %433 = vmatmul.f32.gmra.mxu0 %v253_v60 }
  0x95   : > { %630 = vmatmul.f32.gmra.mxu1 %v254_v61  ;;  %v273_v61 = vld [vmem:[%s3128_s6 + $0x160] sm:$0xff] }
  0x9c   : > { %436 = vmatmul.f32.gmra.mxu0 %v255_v62 }
  0x9d   : > { %633 = vmatmul.f32.gmra.mxu1 %v256_v63  ;;  %v274_v63 = vld [vmem:[%s3128_s6 + $0x168] sm:$0xff] }
  0xa4   : > { %439 = vmatmul.f32.gmra.mxu0 %v257_v0 }
  0xa5   : > { %636 = vmatmul.f32.gmra.mxu1 %v258_v1  ;;  %v275_v1 = vld [vmem:[%s3128_s6 + $0x170] sm:$0xff] }
  0xac   : > { %442 = vmatmul.f32.gmra.mxu0 %v259_v2 }
  0xad   : > { %639 = vmatmul.f32.gmra.mxu1 %v260_v3  ;;  %v276_v3 = vld [vmem:[%s3128_s6 + $0x178] sm:$0xff] }
  0xb1   : > { %v398_v4 = vpop.f32.mrf.mxu0 }
  0xb2   : > { %v595_v6 = vpop.f32.mrf.mxu1 }
  0xb3   : > { %v596_v16 = vadd.f32 %v595_v6, %v398_v4 }
  0xb4   : > { %445 = vmatmul.f32.gmra.mxu0 %v261_v5 }
  0xb5   : > { %642 = vmatmul.f32.gmra.mxu1 %v262_v7  ;;  %v775_v20 = vrot.slane %v596_v16, 1 }
  0xb7   : > { %v572_v9 = vpop.f32.mrf.mxu2 }
  0xb8   : > { %v769_v10 = vpop.f32.mrf.mxu3 }
  0xb9   : > { %v401_v11 = vpop.f32.mrf.mxu0  ;;  %v3180_v18 = vadd.f32 %v769_v10, %v572_v9 }
  0xba   : > { %v598_v13 = vpop.f32.mrf.mxu1 }
  0xbb   : > { %v3178_v17 = vadd.f32 %v598_v13, %v401_v11  ;;  %v833_v23 = vrot.slane %v3180_v18, 1 }
  0xbc   : > { %448 = vmatmul.f32.gmra.mxu0 %v263_v12  ;;  %v277_v12 = vld [vmem:[%s3128_s6 + $0x180] sm:$0xff] }
  0xbd   : > { %v776_v19 = vrot.slane %v3178_v17, 1  ;;  %645 = vmatmul.f32.gmra.mxu1 %v264_v15 }
  0xbf   : > { %v575_v21 = vpop.f32.mrf.mxu2  ;;  %v896_v24 = vsel %vm837_vm0, %v775_v20, %v776_v19 }
  0xc0   : > { %v772_v22 = vpop.f32.mrf.mxu3  ;;  %v3193_v32 = vmax.f32 %v596_v16, %v896_v24  ;;  %v278_v16 = vld [vmem:[%s3128_s6 + $0x188] sm:$0xff] }
  0xc1   : > { %v773_v25 = vadd.f32 %v772_v22, %v575_v21  ;;  %v404_v26 = vpop.f32.mrf.mxu0 }
  0xc2   : > { %v601_v28 = vpop.f32.mrf.mxu1  ;;  %v958_v37 = vrot.slane %v3193_v32, 2 }
  0xc3   : > { %v834_v30 = vrot.slane %v773_v25, 1  ;;  %v3191_v31 = vadd.f32 %v601_v28, %v404_v26 }
  0xc4   : > { %451 = vmatmul.f32.gmra.mxu0 %v265_v27 }
  0xc5   : > { %v838_v33 = vsel %vm837_vm0, %v833_v23, %v834_v30  ;;  %v897_v34 = vsel %vm837_vm0, %v834_v30, %v775_v20  ;;  %648 = vmatmul.f32.gmra.mxu1 %v266_v29  ;;  %v777_v27 = vrot.slane %v3191_v31, 1 }
  0xc6   : > { %v3202_v35 = vmax.f32 %v3180_v18, %v838_v33  ;;  %v957_v36 = vmax.f32 %v773_v25, %v897_v34 }
  0xc8   : > { %v1017_v38 = vrot.slane %v957_v36, 2  ;;  %v1016_v39 = vrot.slane %v3202_v35, 2 }
  0xc9   : > { %v407_v40 = vpop.f32.mrf.mxu0 }
  0xca   : > { %v1078_v42 = vsel %vm1018_vm1, %v1017_v38, %v958_v37  ;;  %v604_v43 = vpop.f32.mrf.mxu1  ;;  %v1019_v45 = vsel %vm1018_vm1, %v1016_v39, %v1017_v38 }
  0xcb   : > { %v1138_v46 = vmax.f32 %v957_v36, %v1078_v42  ;;  %v3218_v47 = vmax.f32 %v3202_v35, %v1019_v45  ;;  %v605_v7 = vadd.f32 %v604_v43, %v407_v40  ;;  %v895_v42 = vsel %vm837_vm0, %v776_v19, %v777_v27  ;;  %v280_v45 = vld [vmem:[%s3128_s6 + $0x198] sm:$0xff] }
  0xcc   : > { %454 = vmatmul.f32.gmra.mxu0 %v267_v41  ;;  %v279_v41 = vld [vmem:[%s3128_s6 + $0x190] sm:$0xff]  ;;  %v899_v19 = vmax.f32 %v3178_v17, %v895_v42 }
  0xcd   : > { %v1198_v48 = vrot.slane %v1138_v46, 4  ;;  %651 = vmatmul.f32.gmra.mxu1 %v268_v44  ;;  %v1197_v49 = vrot.slane %v3218_v47, 4  ;;  %v778_v21 = vrot.slane %v605_v7, 1  ;;  %v1495_v46 = vld [vmem:[%s4666_s2 + $0x8] sm:$0xff] }
  0xce   : > { %1840 = vmatpush.msrb.mxu3 %v1495_v46 }
  0xcf   : > { %v3226_v50 = vsel %vm1199_vm2, %v1197_v49, %v1198_v48  ;;  %v894_v33 = vsel %vm837_vm0, %v777_v27, %v778_v21 }
  0xd0   : > { %v1311_v51 = vmax.f32 %v3218_v47, %v3226_v50  ;;  %v900_v48 = vmax.f32 %v3191_v31, %v894_v33 }
  0xd1   : > { %v410_v52 = vpop.f32.mrf.mxu0 }
  0xd2   : > { %v607_v54 = vpop.f32.mrf.mxu1  ;;  %v960_v31 = vrot.slane %v900_v48, 2 }
  0xd3   : > { %v608_v6 = vadd.f32 %v607_v54, %v410_v52 }
  0xd4   : > { %457 = vmatmul.f32.gmra.mxu0 %v269_v53 }
  0xd5   : > { %654 = vmatmul.f32.gmra.mxu1 %v270_v55  ;;  %v779_v13 = vrot.slane %v608_v6, 1 }
  0xd7   : > { %v893_v28 = vsel %vm837_vm0, %v778_v21, %v779_v13 }
  0xd8   : > { %v901_v36 = vmax.f32 %v605_v7, %v893_v28 }
  0xd9   : > { %v413_v56 = vpop.f32.mrf.mxu0 }
  0xda   : > { %v610_v58 = vpop.f32.mrf.mxu1 }
  0xdb   : > { %v611_v5 = vadd.f32 %v610_v58, %v413_v56  ;;  %v1494_v56 = vld [vmem:[%s4666_s2] sm:$0xff] }
  0xdc   : > { %460 = vmatmul.f32.gmra.mxu0 %v271_v57  ;;  %v961_v57 = vrot.slane %v901_v36, 2  ;;  %1841 = vmatpush.msrb.mxu3 %v1494_v56 }
  0xdd   : > { %657 = vmatmul.f32.gmra.mxu1 %v272_v59  ;;  %v780_v9 = vrot.slane %v611_v5, 1 }
  0xde   : > { %v1075_v17 = vsel %vm1018_vm1, %v960_v31, %v961_v57 }
  0xdf   : > { %v892_v24 = vsel %vm837_vm0, %v779_v13, %v780_v9 }
  0xe0   : > { %v902_v34 = vmax.f32 %v608_v6, %v892_v24 }
  0xe1   : > { %v416_v60 = vpop.f32.mrf.mxu0 }
  0xe2   : > { %v613_v62 = vpop.f32.mrf.mxu1  ;;  %v962_v54 = vrot.slane %v902_v34, 2 }
  0xe3   : > { %v614_v4 = vadd.f32 %v613_v62, %v416_v60 }
  0xe4   : > { %463 = vmatmul.f32.gmra.mxu0 %v273_v61  ;;  %v1074_v62 = vsel %vm1018_vm1, %v961_v57, %v962_v54 }
  0xe5   : > { %660 = vmatmul.f32.gmra.mxu1 %v274_v63  ;;  %v781_v8 = vrot.slane %v614_v4, 1 }
  0xe7   : > { %v891_v22 = vsel %vm837_vm0, %v780_v9, %v781_v8 }
  0xe8   : > { %v903_v29 = vmax.f32 %v611_v5, %v891_v22  ;;  %v2686_v22 = vld [vmem:[%s4666_s2 + $0x18] sm:$0xff] }
  0xe9   : > { %v419_v0 = vpop.f32.mrf.mxu0  ;;  %1655 = vmatpush.msrb.mxu2 %v2686_v22 }
  0xea   : > { %v616_v2 = vpop.f32.mrf.mxu1  ;;  %v963_v52 = vrot.slane %v903_v29, 2 }
  0xeb   : > { %v617_v10 = vadd.f32 %v616_v2, %v419_v0 }
  0xec   : > { %466 = vmatmul.f32.gmra.mxu0 %v275_v1  ;;  %v1073_v60 = vsel %vm1018_vm1, %v962_v54, %v963_v52  ;;  %v959_v1 = vrot.slane %v899_v19, 2 }
  0xed   : > { %663 = vmatmul.f32.gmra.mxu1 %v276_v3  ;;  %v782_v25 = vrot.slane %v617_v10, 1  ;;  %v281_v3 = vld [vmem:[%s3128_s6 + $0x1a0] sm:$0xff] }
  0xee   : > { %v1076_v9 = vsel %vm1018_vm1, %v959_v1, %v960_v31 }
  0xef   : > { %v890_v38 = vsel %vm837_vm0, %v781_v8, %v782_v25  ;;  %v282_v8 = vld [vmem:[%s3128_s6 + $0x1a8] sm:$0xff]  ;;  %v1080_v24 = vmax.f32 %v899_v19, %v1076_v9 }
  0xf0   : > { %v904_v55 = vmax.f32 %v614_v4, %v890_v38  ;;  %v3276_v4 = vmax.f32 %v902_v34, %v1073_v60 }
  0xf1   : > { %v422_v11 = vpop.f32.mrf.mxu0  ;;  %v1140_v42 = vrot.slane %v1080_v24, 4 }
  0xf2   : > { %v619_v15 = vpop.f32.mrf.mxu1  ;;  %v964_v63 = vrot.slane %v904_v55, 2 }
  0xf3   : > { %v620_v20 = vadd.f32 %v619_v15, %v422_v11 }
  0xf4   : > { %469 = vmatmul.f32.gmra.mxu0 %v277_v12  ;;  %v1081_v12 = vmax.f32 %v900_v48, %v1075_v17  ;;  %v1072_v13 = vsel %vm1018_vm1, %v963_v52, %v964_v63 }
  0xf5   : > { %v783_v26 = vrot.slane %v620_v20, 1  ;;  %666 = vmatmul.f32.gmra.mxu1 %v278_v16  ;;  %v1077_v16 = vsel %vm1018_vm1, %v958_v37, %v959_v1  ;;  %v1084_v27 = vmax.f32 %v903_v29, %v1072_v13  ;;  %v2685_v37 = vld [vmem:[%s4666_s2 + $0x10] sm:$0xff]  ;;  %v284_v29 = vld [vmem:[%s3128_s6 + $0x1b8] sm:$0xff] }
  0xf6   : > { %v1079_v33 = vmax.f32 %v3193_v32, %v1077_v16  ;;  %v1141_v34 = vrot.slane %v1081_v12, 4  ;;  %1656 = vmatpush.msrb.mxu2 %v2685_v37 }
  0xf7   : > { %v889_v30 = vsel %vm837_vm0, %v782_v25, %v783_v26  ;;  %v1143_v25 = vrot.slane %v3276_v4, 4  ;;  %v1144_v46 = vrot.slane %v1084_v27, 4 }
  0xf8   : > { %v905_v43 = vmax.f32 %v617_v10, %v889_v30  ;;  %v1082_v10 = vmax.f32 %v901_v36, %v1074_v62  ;;  %v1139_v32 = vrot.slane %v1079_v33, 4 }
  0xf9   : > { %v425_v40 = vpop.f32.mrf.mxu0 }
  0xfa   : > { %v622_v44 = vpop.f32.mrf.mxu1  ;;  %v965_v59 = vrot.slane %v905_v43, 2 }
  0xfb   : > { %v623_v53 = vadd.f32 %v622_v44, %v425_v40 }
  0xfc   : > { %472 = vmatmul.f32.gmra.mxu0 %v279_v41  ;;  %v1071_v5 = vsel %vm1018_vm1, %v964_v63, %v965_v59  ;;  %v283_v41 = vld [vmem:[%s3128_s6 + $0x1b0] sm:$0xff]  ;;  %v1251_v63 = vsel %vm1199_vm2, %v1143_v25, %v1144_v46 }
  0xfd   : > { %v784_v58 = vrot.slane %v623_v53, 1  ;;  %669 = vmatmul.f32.gmra.mxu1 %v280_v45 }
  0xff   : > { %v888_v61 = vsel %vm837_vm0, %v783_v26, %v784_v58  ;;  %v1142_v26 = vrot.slane %v1082_v10, 4 }
 0x100   : > { %v906_v0 = vmax.f32 %v620_v20, %v888_v61  ;;  %v1085_v20 = vmax.f32 %v904_v55, %v1071_v5  ;;  %v1254_v55 = vsel %vm1199_vm2, %v1140_v42, %v1141_v34 }
 0x101   : > { %v428_v2 = vpop.f32.mrf.mxu0  ;;  %v1253_v54 = vsel %vm1199_vm2, %v1141_v34, %v1142_v26  ;;  %v1257_v1 = vmax.f32 %v1080_v24, %v1254_v55 }
 0x102   : > { %v966_v6 = vrot.slane %v906_v0, 2  ;;  %v625_v7 = vpop.f32.mrf.mxu1  ;;  %v1145_v38 = vrot.slane %v1085_v20, 4  ;;  %v1258_v31 = vmax.f32 %v1081_v12, %v1253_v54  ;;  %v1260_v12 = vmax.f32 %v3276_v4, %v1251_v63 }
 0x103   : > { %v626_v11 = vadd.f32 %v625_v7, %v428_v2 }
 0x104   : > { %v1070_v15 = vsel %vm1018_vm1, %v965_v59, %v966_v6  ;;  %475 = vmatmul.f32.gmra.mxu0 %v281_v3  ;;  %v1250_v57 = vsel %vm1199_vm2, %v1144_v46, %v1145_v38  ;;  %v1255_v59 = vsel %vm1199_vm2, %v1139_v32, %v1140_v42  ;;  %v285_v3 = vld [vmem:[%s3128_s6 + $0x1c0] sm:$0xff]  ;;  %v288_v42 = vld [vmem:[%s3128_s6 + $0x1d8] sm:$0xff]  ;;  %v1313_v46 = vmax.f32 %v1257_v1, %v1258_v31 }
 0x105   : > { %v785_v21 = vrot.slane %v626_v11, 1  ;;  %672 = vmatmul.f32.gmra.mxu1 %v282_v8  ;;  %v1086_v28 = vmax.f32 %v905_v43, %v1070_v15  ;;  %v1252_v43 = vsel %vm1199_vm2, %v1142_v26, %v1143_v25  ;;  %v1261_v17 = vmax.f32 %v1084_v27, %v1250_v57 }
 0x107   : > { %v887_v30 = vsel %vm837_vm0, %v784_v58, %v785_v21  ;;  %v1146_v48 = vrot.slane %v1086_v28, 4  ;;  %v1259_v58 = vmax.f32 %v1082_v10, %v1252_v43  ;;  %v286_v10 = vld [vmem:[%s3128_s6 + $0x1c8] sm:$0xff]  ;;  %v3330_v22 = vmax.f32 %v1260_v12, %v1261_v17 }
 0x108   : > { %v907_v36 = vmax.f32 %v623_v53, %v887_v30 }
 0x109   : > { %v431_v40 = vpop.f32.mrf.mxu0  ;;  %v1249_v62 = vsel %vm1199_vm2, %v1145_v38, %v1146_v48  ;;  %v3324_v7 = vmax.f32 %v1258_v31, %v1259_v58 }
 0x10a   : > { %v967_v44 = vrot.slane %v907_v36, 2  ;;  %v628_v45 = vpop.f32.mrf.mxu1  ;;  %v1262_v13 = vmax.f32 %v1085_v20, %v1249_v62  ;;  %v3339_v20 = vld [vmem:[%s4668_s4] ss:$0 sm:$0xff] }
 0x10b   : > { %v629_v52 = vadd.f32 %v628_v45, %v431_v40 }
 0x10c   : > { %v1069_v53 = vsel %vm1018_vm1, %v966_v6, %v967_v44  ;;  %478 = vmatmul.f32.gmra.mxu0 %v283_v41  ;;  %v1256_v6 = vmax.f32 %v1079_v33, %v1255_v59  ;;  %v3353_v54 = vmax.f32 %v1261_v17, %v1262_v13 }
 0x10d   : > { %v1087_v56 = vmax.f32 %v906_v0, %v1069_v53  ;;  %v786_v19 = vrot.slane %v629_v52, 1  ;;  %675 = vmatmul.f32.gmra.mxu1 %v284_v29  ;;  %v3349_v29 = vmax.f32 %v1259_v58, %v1260_v12 }
 0x10f   : > { %v1147_v60 = vrot.slane %v1087_v56, 4  ;;  %v886_v61 = vsel %vm837_vm0, %v785_v21, %v786_v19  ;;  %v1312_v21 = vmax.f32 %v1256_v6, %v1257_v1  ;;  %v290_v1 = vld [vmem:[%s3128_s6 + $0x1e8] sm:$0xff] }
 0x110   : > { %v908_v0 = vmax.f32 %v626_v11, %v886_v61  ;;  %v289_v61 = vld [vmem:[%s3128_s6 + $0x1e0] sm:$0xff] }
 0x111   : > { %v434_v2 = vpop.f32.mrf.mxu0  ;;  %v1248_v5 = vsel %vm1199_vm2, %v1146_v48, %v1147_v60  ;;  %v1364_v27 = vmax.f32 %v1312_v21, %v3324_v7 }
 0x112   : > { %v968_v8 = vrot.slane %v908_v0, 2  ;;  %v631_v9 = vpop.f32.mrf.mxu1  ;;  %v1263_v15 = vmax.f32 %v1086_v28, %v1248_v5 }
 0x113   : > { %v632_v16 = vadd.f32 %v631_v9, %v434_v2 }
 0x114   : > { %v1068_v11 = vsel %vm1018_vm1, %v967_v44, %v968_v8  ;;  %481 = vmatmul.f32.gmra.mxu0 %v285_v3  ;;  %v1318_v24 = vmax.f32 %v1262_v13, %v1263_v15 }
 0x115   : > { %v1088_v25 = vmax.f32 %v907_v36, %v1068_v11  ;;  %v787_v26 = vrot.slane %v632_v16, 1  ;;  %678 = vmatmul.f32.gmra.mxu1 %v286_v10  ;;  %v287_v36 = vld [vmem:[%s3128_s6 + $0x1d0] sm:$0xff] }
 0x116   : > { %v3334_v4 = vmax.f32 %v3330_v22, %v1318_v24 }
 0x117   : > { %v885_v28 = vsel %vm837_vm0, %v786_v19, %v787_v26  ;;  %v1148_v30 = vrot.slane %v1088_v25, 4 }
 0x118   : > { %v909_v37 = vmax.f32 %v629_v52, %v885_v28  ;;  %v1408_v33 = vmax.f32 %v1364_v27, %v3334_v4 }
 0x119   : > { %v437_v34 = vpop.f32.mrf.mxu0  ;;  %v1247_v38 = vsel %vm1199_vm2, %v1147_v60, %v1148_v30 }
 0x11a   : > { %v969_v40 = vrot.slane %v909_v37, 2  ;;  %v634_v41 = vpop.f32.mrf.mxu1  ;;  %v1438_v44 = vadd.f32 %v3339_v20, %v1408_v33  ;;  %v1264_v45 = vmax.f32 %v1087_v56, %v1247_v38  ;;  %v1365_v56 = vmax.f32 %v1313_v46, %v3349_v29 }
 0x11b   : > { %v635_v43 = vadd.f32 %v634_v41, %v437_v34 }
 0x11c   : > { %v1067_v48 = vsel %vm1018_vm1, %v968_v8, %v969_v40  ;;  %484 = vmatmul.f32.gmra.mxu0 %v287_v36  ;;  %v1466_v52 = vmax.f32 %v1438_v44, 0.0  ;;  %v3355_v32 = vmax.f32 %v1263_v15, %v1264_v45  ;;  %v1366_v15 = vmax.f32 %v3324_v7, %v3330_v22 }
 0x11d   : > { %v1089_v53 = vmax.f32 %v908_v0, %v1067_v48  ;;  %v788_v55 = vrot.slane %v635_v43, 1  ;;  %681 = vmatmul.f32.gmra.mxu1 %v288_v42 }
 0x11e   : > { %2715 = vmatmul.msk.f32.vlgmr.msrb.gmra.mxu3 %vm1556_vm3, %v1466_v52  ;;  %v3361_v19 = vmax.f32 %v3353_v54, %v3355_v32  ;;  %v3377_v13 = vrot.slane %v1466_v52, 3 }
 0x11f   : > { %v884_v57 = vsel %vm837_vm0, %v787_v26, %v788_v55  ;;  %v1149_v58 = vrot.slane %v1089_v53, 4 }
 0x120   : > { %v910_v59 = vmax.f32 %v632_v16, %v884_v57  ;;  %v1409_v31 = vmax.f32 %v1365_v56, %v3361_v19 }
 0x121   : > { %v440_v60 = vpop.f32.mrf.mxu0  ;;  %v1246_v62 = vsel %vm1199_vm2, %v1148_v30, %v1149_v58  ;;  %v291_v30 = vld [vmem:[%s3128_s6 + $0x1f0] sm:$0xff] }
 0x122   : > { %v970_v63 = vrot.slane %v910_v59, 2  ;;  %v637_v0 = vpop.f32.mrf.mxu1  ;;  %v1439_v17 = vadd.f32 %v3339_v20, %v1409_v31  ;;  %v1265_v2 = vmax.f32 %v1088_v25, %v1246_v62 }
 0x123   : > { %v638_v3 = vadd.f32 %v637_v0, %v440_v60 }
 0x124   : > { %v1066_v5 = vsel %vm1018_vm1, %v969_v40, %v970_v63  ;;  %487 = vmatmul.f32.gmra.mxu0 %v289_v61  ;;  %v1467_v6 = vmax.f32 %v1439_v17, 0.0  ;;  %v3373_v8 = vmax.f32 %v1264_v45, %v1265_v2 }
 0x125   : > { %v1090_v9 = vmax.f32 %v909_v37, %v1066_v5  ;;  %v789_v10 = vrot.slane %v638_v3, 1  ;;  %684 = vmatmul.f32.gmra.mxu1 %v290_v1  ;;  %v292_v37 = vld [vmem:[%s3128_s6 + $0x1f8] sm:$0xff] }
 0x126   : > { %v1497_v12 = vrot.slane %v1467_v6, 3  ;;  %2716 = vmatmul.msk.f32.gmra.mxu3 %vm1556_vm3, %v1467_v6  ;;  %v3382_v16 = vmax.f32 %v1318_v24, %v3373_v8 }
 0x127   : > { %v883_v11 = vsel %vm837_vm0, %v788_v55, %v789_v10  ;;  %v1150_v21 = vrot.slane %v1090_v9, 4 }
 0x128   : > { %v911_v25 = vmax.f32 %v635_v43, %v883_v11  ;;  %v1551_v26 = vsel %vm1524_vm4, %v3377_v13, %v1497_v12  ;;  %v1410_v27 = vmax.f32 %v1366_v15, %v3382_v16  ;;  %v1367_v43 = vmax.f32 %v3349_v29, %v3353_v54  ;;  %v294_v54 = vld [vmem:[%s3128_s6 + $0x208] sm:$0xff]  ;;  %v295_v11 = vld [vmem:[%s3128_s6 + $0x210] sm:$0xff] }
 0x129   : > { %2687 = vmatmul.msk.f32.vlgmr.msrb.gmra.mxu2 %vm1556_vm3, %v1551_v26  ;;  %v443_v28 = vpop.f32.mrf.mxu0  ;;  %v1245_v7 = vsel %vm1199_vm2, %v1149_v58, %v1150_v21  ;;  %v293_v58 = vld [vmem:[%s3128_s6 + $0x200] sm:$0xff] }
 0x12a   : > { %v971_v22 = vrot.slane %v911_v25, 2  ;;  %v640_v24 = vpop.f32.mrf.mxu1  ;;  %v1440_v33 = vadd.f32 %v3339_v20, %v1410_v27  ;;  %v1266_v34 = vmax.f32 %v1089_v53, %v1245_v7 }
 0x12b   : > { %v641_v36 = vadd.f32 %v640_v24, %v443_v28 }
 0x12c   : > { %v1065_v38 = vsel %vm1018_vm1, %v970_v63, %v971_v22  ;;  %490 = vmatmul.f32.gmra.mxu0 %v291_v30  ;;  %v1468_v40 = vmax.f32 %v1440_v33, 0.0  ;;  %v1321_v41 = vmax.f32 %v1265_v2, %v1266_v34 }
 0x12d   : > { %v1091_v42 = vmax.f32 %v910_v59, %v1065_v38  ;;  %v790_v44 = vrot.slane %v641_v36, 1  ;;  %687 = vmatmul.f32.gmra.mxu1 %v292_v37 }
 0x12e   : > { %v1498_v45 = vrot.slane %v1468_v40, 3  ;;  %2717 = vmatmul.msk.f32.gmra.mxu3 %vm1556_vm3, %v1468_v40  ;;  %v1371_v46 = vmax.f32 %v3355_v32, %v1321_v41 }
 0x12f   : > { %v882_v48 = vsel %vm837_vm0, %v789_v10, %v790_v44  ;;  %v1151_v52 = vrot.slane %v1091_v42, 4 }
 0x130   : > { %v912_v53 = vmax.f32 %v638_v3, %v882_v48  ;;  %v1550_v55 = vsel %vm1524_vm4, %v1497_v12, %v1498_v45  ;;  %v1411_v56 = vmax.f32 %v1367_v43, %v1371_v46  ;;  %v297_v43 = vld [vmem:[%s3128_s6 + $0x220] sm:$0xff] }
 0x131   : > { %2688 = vmatmul.msk.f32.gmra.mxu2 %vm1556_vm3, %v1550_v55  ;;  %v446_v57 = vpop.f32.mrf.mxu0  ;;  %v1244_v59 = vsel %vm1199_vm2, %v1150_v21, %v1151_v52 }
 0x132   : > { %v972_v31 = vrot.slane %v912_v53, 2  ;;  %v643_v29 = vpop.f32.mrf.mxu1  ;;  %v1441_v32 = vadd.f32 %v3339_v20, %v1411_v56  ;;  %v1267_v60 = vmax.f32 %v1090_v9, %v1244_v59 }
 0x133   : > { %v644_v61 = vadd.f32 %v643_v29, %v446_v57 }
 0x134   : > { %v1064_v62 = vsel %vm1018_vm1, %v971_v22, %v972_v31  ;;  %493 = vmatmul.f32.gmra.mxu0 %v293_v58  ;;  %v1469_v63 = vmax.f32 %v1441_v32, 0.0  ;;  %v1322_v0 = vmax.f32 %v1266_v34, %v1267_v60 }
 0x135   : > { %v1092_v1 = vmax.f32 %v911_v25, %v1064_v62  ;;  %v791_v17 = vrot.slane %v644_v61, 1  ;;  %690 = vmatmul.f32.gmra.mxu1 %v294_v54 }
 0x136   : > { %v1499_v2 = vrot.slane %v1469_v63, 3  ;;  %2718 = vmatmul.msk.f32.gmra.mxu3 %vm1556_vm3, %v1469_v63  ;;  %v1372_v3 = vmax.f32 %v3373_v8, %v1322_v0  ;;  %v296_v8 = vld [vmem:[%s3128_s6 + $0x218] sm:$0xff] }
 0x137   : > { %v881_v5 = vsel %vm837_vm0, %v790_v44, %v791_v17  ;;  %v1152_v6 = vrot.slane %v1092_v1, 4 }
 0x138   : > { %v913_v9 = vmax.f32 %v641_v36, %v881_v5  ;;  %v1549_v10 = vsel %vm1524_vm4, %v1498_v45, %v1499_v2  ;;  %v1412_v12 = vmax.f32 %v3334_v4, %v1372_v3  ;;  %v300_v3 = vld [vmem:[%s3128_s6 + $0x238] sm:$0xff] }
 0x139   : > { %2689 = vmatmul.msk.f32.gmra.mxu2 %vm1556_vm3, %v1549_v10  ;;  %v449_v15 = vpop.f32.mrf.mxu0  ;;  %v1243_v21 = vsel %vm1199_vm2, %v1151_v52, %v1152_v6 }
 0x13a   : > { %v973_v25 = vrot.slane %v913_v9, 2  ;;  %v646_v26 = vpop.f32.mrf.mxu1  ;;  %v1442_v27 = vadd.f32 %v3339_v20, %v1412_v12  ;;  %v1268_v28 = vmax.f32 %v1091_v42, %v1243_v21 }
 0x13b   : > { %v647_v30 = vadd.f32 %v646_v26, %v449_v15 }
 0x13c   : > { %v1063_v7 = vsel %vm1018_vm1, %v972_v31, %v973_v25  ;;  %496 = vmatmul.f32.gmra.mxu0 %v295_v11  ;;  %v1470_v4 = vmax.f32 %v1442_v27, 0.0  ;;  %v1323_v22 = vmax.f32 %v1267_v60, %v1268_v28  ;;  %v301_v27 = vld [vmem:[%s3128_s6 + $0x240] sm:$0xff] }
 0x13d   : > { %v1093_v24 = vmax.f32 %v912_v53, %v1063_v7  ;;  %v792_v37 = vrot.slane %v647_v30, 1  ;;  %693 = vmatmul.f32.gmra.mxu1 %v296_v8 }
 0x13e   : > { %v1500_v33 = vrot.slane %v1470_v4, 3  ;;  %2719 = vmatmul.msk.f32.gmra.mxu3 %vm1556_vm3, %v1470_v4  ;;  %v1373_v34 = vmax.f32 %v1321_v41, %v1323_v22  ;;  %v298_v41 = vld [vmem:[%s3128_s6 + $0x228] sm:$0xff] }
 0x13f   : > { %v1153_v36 = vrot.slane %v1093_v24, 4  ;;  %v880_v38 = vsel %vm837_vm0, %v791_v17, %v792_v37  ;;  %v302_v4 = vld [vmem:[%s3128_s6 + $0x248] sm:$0xff] }
 0x140   : > { %v914_v40 = vmax.f32 %v644_v61, %v880_v38  ;;  %v1548_v42 = vsel %vm1524_vm4, %v1499_v2, %v1500_v33  ;;  %v1413_v44 = vmax.f32 %v3361_v19, %v1373_v34 }
 0x141   : > { %2690 = vmatmul.msk.f32.gmra.mxu2 %vm1556_vm3, %v1548_v42  ;;  %v452_v45 = vpop.f32.mrf.mxu0  ;;  %v1242_v46 = vsel %vm1199_vm2, %v1152_v6, %v1153_v36 }
 0x142   : > { %v974_v48 = vrot.slane %v914_v40, 2  ;;  %v649_v52 = vpop.f32.mrf.mxu1  ;;  %v1443_v53 = vadd.f32 %v3339_v20, %v1413_v44  ;;  %v1269_v55 = vmax.f32 %v1092_v1, %v1242_v46  ;;  %v299_v1 = vld [vmem:[%s3128_s6 + $0x230] sm:$0xff] }
 0x143   : > { %v650_v56 = vadd.f32 %v649_v52, %v452_v45  ;;  %v303_v44 = vld [vmem:[%s3128_s6 + $0x250] sm:$0xff] }
 0x144   : > { %499 = vmatmul.f32.gmra.mxu0 %v297_v43  ;;  %v1471_v57 = vmax.f32 %v1443_v53, 0.0  ;;  %v1324_v58 = vmax.f32 %v1268_v28, %v1269_v55  ;;  %v1062_v19 = vsel %vm1018_vm1, %v973_v25, %v974_v48 }
 0x145   : > { %v793_v59 = vrot.slane %v650_v56, 1  ;;  %696 = vmatmul.f32.gmra.mxu1 %v298_v41  ;;  %v1094_v31 = vmax.f32 %v913_v9, %v1062_v19 }
 0x146   : > { %v1501_v29 = vrot.slane %v1471_v57, 3  ;;  %2720 = vmatmul.msk.f32.gmra.mxu3 %vm1556_vm3, %v1471_v57  ;;  %v1374_v54 = vmax.f32 %v1322_v0, %v1324_v58 }
 0x147   : > { %v879_v32 = vsel %vm837_vm0, %v792_v37, %v793_v59  ;;  %v1154_v11 = vrot.slane %v1094_v31, 4 }
 0x148   : > { %v915_v60 = vmax.f32 %v647_v30, %v879_v32  ;;  %v1547_v61 = vsel %vm1524_vm4, %v1500_v33, %v1501_v29  ;;  %v1414_v62 = vmax.f32 %v3382_v16, %v1374_v54 }
 0x149   : > { %2691 = vmatmul.msk.f32.gmra.mxu2 %vm1556_vm3, %v1547_v61  ;;  %v455_v63 = vpop.f32.mrf.mxu0  ;;  %v306_v61 = vld [vmem:[%s3128_s6 + $0x268] sm:$0xff] }
 0x14a   : > { %v975_v17 = vrot.slane %v915_v60, 2  ;;  %v652_v2 = vpop.f32.mrf.mxu1  ;;  %v1444_v5 = vadd.f32 %v3339_v20, %v1414_v62 }
 0x14b   : > { %v653_v6 = vadd.f32 %v652_v2, %v455_v63 }
 0x14c   : > { %502 = vmatmul.f32.gmra.mxu0 %v299_v1  ;;  %v1472_v0 = vmax.f32 %v1444_v5, 0.0  ;;  %v1061_v9 = vsel %vm1018_vm1, %v974_v48, %v975_v17  ;;  %v304_v48 = vld [vmem:[%s3128_s6 + $0x258] sm:$0xff] }
 0x14d   : > { %v794_v10 = vrot.slane %v653_v6, 1  ;;  %699 = vmatmul.f32.gmra.mxu1 %v300_v3  ;;  %v1095_v16 = vmax.f32 %v914_v40, %v1061_v9 }
 0x14e   : > { %v3455_v12 = vrot.slane %v1472_v0, 3  ;;  %2721 = vmatmul.msk.f32.gmra.mxu3 %vm1556_vm3, %v1472_v0 }
 0x14f   : > { %v878_v15 = vsel %vm837_vm0, %v793_v59, %v794_v10  ;;  %v1155_v21 = vrot.slane %v1095_v16, 4 }
 0x150   : > { %v916_v25 = vmax.f32 %v650_v56, %v878_v15  ;;  %v1546_v26 = vsel %vm1524_vm4, %v1501_v29, %v3455_v12  ;;  %v305_v29 = vld [vmem:[%s3128_s6 + $0x260] sm:$0xff] }
 0x151   : > { %2692 = vmatmul.msk.f32.gmra.mxu2 %vm1556_vm3, %v1546_v26  ;;  %v458_v8 = vpop.f32.mrf.mxu0  ;;  %v1241_v28 = vsel %vm1199_vm2, %v1154_v11, %v1155_v21 }
 0x152   : > { %v976_v30 = vrot.slane %v916_v25, 2  ;;  %v655_v7 = vpop.f32.mrf.mxu1  ;;  %v1270_v22 = vmax.f32 %v1094_v31, %v1241_v28 }
 0x153   : > { %v656_v24 = vadd.f32 %v655_v7, %v458_v8 }
 0x154   : > { %505 = vmatmul.f32.gmra.mxu0 %v301_v27  ;;  %v1060_v37 = vsel %vm1018_vm1, %v975_v17, %v976_v30 }
 0x155   : > { %v795_v33 = vrot.slane %v656_v24, 1  ;;  %702 = vmatmul.f32.gmra.mxu1 %v302_v4  ;;  %v1096_v34 = vmax.f32 %v915_v60, %v1060_v37 }
 0x157   : > { %v877_v36 = vsel %vm837_vm0, %v794_v10, %v795_v33  ;;  %v1156_v38 = vrot.slane %v1096_v34, 4  ;;  %v308_v10 = vld [vmem:[%s3128_s6 + $0x278] sm:$0xff] }
 0x158   : > { %v917_v40 = vmax.f32 %v653_v6, %v877_v36  ;;  %v307_v6 = vld [vmem:[%s3128_s6 + $0x270] sm:$0xff] }
 0x159   : > { %v461_v42 = vpop.f32.mrf.mxu0  ;;  %v1240_v45 = vsel %vm1199_vm2, %v1155_v21, %v1156_v38 }
 0x15a   : > { %v977_v43 = vrot.slane %v917_v40, 2  ;;  %v658_v46 = vpop.f32.mrf.mxu1  ;;  %v3476_v52 = vmax.f32 %v1095_v16, %v1240_v45 }
 0x15b   : > { %v659_v41 = vadd.f32 %v658_v46, %v461_v42  ;;  %v312_v46 = vld [vmem:[%s3128_s6 + $0x298] sm:$0xff] }
 0x15c   : > { %508 = vmatmul.f32.gmra.mxu0 %v303_v44  ;;  %v1059_v53 = vsel %vm1018_vm1, %v976_v30, %v977_v43  ;;  %v3481_v55 = vmax.f32 %v1270_v22, %v3476_v52  ;;  %v309_v30 = vld [vmem:[%s3128_s6 + $0x280] sm:$0xff]  ;;  %v310_v22 = vld [vmem:[%s3128_s6 + $0x288] sm:$0xff]  ;;  %v311_v44 = vld [vmem:[%s3128_s6 + $0x290] sm:$0xff] }
 0x15d   : > { %v796_v56 = vrot.slane %v659_v41, 1  ;;  %705 = vmatmul.f32.gmra.mxu1 %v304_v48  ;;  %v1097_v57 = vmax.f32 %v916_v25, %v1059_v53 }
 0x15f   : > { %v876_v58 = vsel %vm837_vm0, %v795_v33, %v796_v56  ;;  %v1157_v19 = vrot.slane %v1097_v57, 4 }
 0x160   : > { %v918_v59 = vmax.f32 %v656_v24, %v876_v58 }
 0x161   : > { %v464_v31 = vpop.f32.mrf.mxu0  ;;  %v1239_v54 = vsel %vm1199_vm2, %v1156_v38, %v1157_v19 }
 0x162   : > { %v978_v32 = vrot.slane %v918_v59, 2  ;;  %v661_v60 = vpop.f32.mrf.mxu1  ;;  %v3489_v62 = vmax.f32 %v1096_v34, %v1239_v54 }
 0x163   : > { %v662_v3 = vadd.f32 %v661_v60, %v464_v31 }
 0x164   : > { %511 = vmatmul.f32.gmra.mxu0 %v305_v29  ;;  %v1058_v63 = vsel %vm1018_vm1, %v977_v43, %v978_v32  ;;  %v1326_v1 = vmax.f32 %v3476_v52, %v3489_v62  ;;  %v319_v52 = vld [vmem:[%s3128_s6 + $0x2d0] sm:$0xff] }
 0x165   : > { %708 = vmatmul.f32.gmra.mxu1 %v306_v61  ;;  %v3495_v17 = vmax.f32 %v917_v40, %v1058_v63  ;;  %v797_v21 = vrot.slane %v662_v3, 1  ;;  %v313_v61 = vld [vmem:[%s3128_s6 + $0x2a0] sm:$0xff] }
 0x167   : > { %v1158_v2 = vrot.slane %v3495_v17, 4  ;;  %v875_v27 = vsel %vm837_vm0, %v796_v56, %v797_v21 }
 0x168   : > { %v919_v37 = vmax.f32 %v659_v41, %v875_v27 }
 0x169   : > { %v467_v5 = vpop.f32.mrf.mxu0  ;;  %v1238_v0 = vsel %vm1199_vm2, %v1157_v19, %v1158_v2 }
 0x16a   : > { %v664_v9 = vpop.f32.mrf.mxu1  ;;  %v3504_v16 = vmax.f32 %v1097_v57, %v1238_v0  ;;  %v979_v38 = vrot.slane %v919_v37, 2 }
 0x16b   : > { %v665_v15 = vadd.f32 %v664_v9, %v467_v5 }
 0x16c   : > { %514 = vmatmul.f32.gmra.mxu0 %v307_v6  ;;  %v3508_v11 = vmax.f32 %v3489_v62, %v3504_v16  ;;  %v1057_v56 = vsel %vm1018_vm1, %v978_v32, %v979_v38  ;;  %v314_v6 = vld [vmem:[%s3128_s6 + $0x2a8] sm:$0xff] }
 0x16d   : > { %v798_v25 = vrot.slane %v665_v15, 1  ;;  %711 = vmatmul.f32.gmra.mxu1 %v308_v10  ;;  %v1099_v31 = vmax.f32 %v918_v59, %v1057_v56 }
 0x16e   : > { %v1375_v26 = vmax.f32 %v3481_v55, %v3508_v11 }
 0x16f   : > { %v874_v8 = vsel %vm837_vm0, %v797_v21, %v798_v25  ;;  %v1159_v9 = vrot.slane %v1099_v31, 4 }
 0x170   : > { %v920_v7 = vmax.f32 %v662_v3, %v874_v8 }
 0x171   : > { %v470_v28 = vpop.f32.mrf.mxu0 }
 0x172   : > { %v667_v4 = vpop.f32.mrf.mxu1  ;;  %v980_v34 = vrot.slane %v920_v7, 2 }
 0x173   : > { %v668_v24 = vadd.f32 %v667_v4, %v470_v28  ;;  %v1237_v28 = vsel %vm1199_vm2, %v1158_v2, %v1159_v9 }
 0x174   : > { %517 = vmatmul.f32.gmra.mxu0 %v309_v30  ;;  %v1056_v48 = vsel %vm1018_vm1, %v979_v38, %v980_v34 }
 0x175   : > { %v799_v33 = vrot.slane %v668_v24, 1  ;;  %714 = vmatmul.f32.gmra.mxu1 %v310_v22  ;;  %v1100_v58 = vmax.f32 %v919_v37, %v1056_v48  ;;  %v315_v22 = vld [vmem:[%s3128_s6 + $0x2b0] sm:$0xff] }
 0x177   : > { %v873_v36 = vsel %vm837_vm0, %v798_v25, %v799_v33  ;;  %v1160_v63 = vrot.slane %v1100_v58, 4 }
 0x178   : > { %v921_v40 = vmax.f32 %v665_v15, %v873_v36  ;;  %v1274_v36 = vmax.f32 %v3495_v17, %v1237_v28 }
 0x179   : > { %v473_v42 = vpop.f32.mrf.mxu0  ;;  %v1236_v59 = vsel %vm1199_vm2, %v1159_v9, %v1160_v63 }
 0x17a   : > { %v981_v45 = vrot.slane %v921_v40, 2  ;;  %v670_v43 = vpop.f32.mrf.mxu1 }
 0x17b   : > { %v671_v53 = vadd.f32 %v670_v43, %v473_v42 }
 0x17c   : > { %520 = vmatmul.f32.gmra.mxu0 %v311_v44  ;;  %v1055_v41 = vsel %vm1018_vm1, %v980_v34, %v981_v45  ;;  %v316_v34 = vld [vmem:[%s3128_s6 + $0x2b8] sm:$0xff] }
 0x17d   : > { %v800_v57 = vrot.slane %v671_v53, 1  ;;  %717 = vmatmul.f32.gmra.mxu1 %v312_v46  ;;  %v1101_v29 = vmax.f32 %v920_v7, %v1055_v41  ;;  %v1275_v7 = vmax.f32 %v1099_v31, %v1236_v59 }
 0x17f   : > { %v872_v19 = vsel %vm837_vm0, %v799_v33, %v800_v57  ;;  %v1161_v10 = vrot.slane %v1101_v29, 4  ;;  %v3551_v2 = vmax.f32 %v1274_v36, %v1275_v7 }
 0x180   : > { %v922_v54 = vmax.f32 %v668_v24, %v872_v19 }
 0x181   : > { %v476_v60 = vpop.f32.mrf.mxu0  ;;  %v1235_v27 = vsel %vm1199_vm2, %v1160_v63, %v1161_v10  ;;  %v3568_v63 = vmax.f32 %v3504_v16, %v1274_v36 }
 0x182   : > { %v982_v3 = vrot.slane %v922_v54, 2  ;;  %v673_v5 = vpop.f32.mrf.mxu1  ;;  %v1276_v38 = vmax.f32 %v1100_v58, %v1235_v27  ;;  %v317_v58 = vld [vmem:[%s3128_s6 + $0x2c0] sm:$0xff] }
 0x183   : > { %v674_v0 = vadd.f32 %v673_v5, %v476_v60  ;;  %v1376_v16 = vmax.f32 %v1326_v1, %v3568_v63 }
 0x184   : > { %v1054_v32 = vsel %vm1018_vm1, %v981_v45, %v982_v3  ;;  %523 = vmatmul.f32.gmra.mxu0 %v313_v61 }
 0x185   : > { %v1102_v15 = vmax.f32 %v921_v40, %v1054_v32  ;;  %v801_v21 = vrot.slane %v674_v0, 1  ;;  %720 = vmatmul.f32.gmra.mxu1 %v314_v6 }
 0x187   : > { %v871_v25 = vsel %vm837_vm0, %v800_v57, %v801_v21  ;;  %v1162_v8 = vrot.slane %v1102_v15, 4 }
 0x188   : > { %v923_v30 = vmax.f32 %v671_v53, %v871_v25 }
 0x189   : > { %v479_v4 = vpop.f32.mrf.mxu0  ;;  %v1234_v24 = vsel %vm1199_vm2, %v1161_v10, %v1162_v8 }
 0x18a   : > { %v983_v37 = vrot.slane %v923_v30, 2  ;;  %v676_v33 = vpop.f32.mrf.mxu1  ;;  %v1277_v40 = vmax.f32 %v1101_v29, %v1234_v24 }
 0x18b   : > { %v677_v42 = vadd.f32 %v676_v33, %v479_v4 }
 0x18c   : > { %v1053_v44 = vsel %vm1018_vm1, %v982_v3, %v983_v37  ;;  %526 = vmatmul.f32.gmra.mxu0 %v315_v22  ;;  %v1331_v45 = vmax.f32 %v1276_v38, %v1277_v40 }
 0x18d   : > { %v1103_v43 = vmax.f32 %v922_v54, %v1053_v44  ;;  %v802_v46 = vrot.slane %v677_v42, 1  ;;  %723 = vmatmul.f32.gmra.mxu1 %v316_v34  ;;  %v318_v54 = vld [vmem:[%s3128_s6 + $0x2c8] sm:$0xff] }
 0x18e   : > { %v3554_v48 = vmax.f32 %v3551_v2, %v1331_v45 }
 0x18f   : > { %v870_v17 = vsel %vm837_vm0, %v801_v21, %v802_v46  ;;  %v1163_v53 = vrot.slane %v1103_v43, 4 }
 0x190   : > { %v924_v41 = vmax.f32 %v674_v0, %v870_v17  ;;  %v1415_v56 = vmax.f32 %v1375_v26, %v3554_v48  ;;  %v3572_v26 = vmax.f32 %v1275_v7, %v1276_v38  ;;  %v1377_v38 = vmax.f32 %v3508_v11, %v3551_v2 }
 0x191   : > { %v482_v57 = vpop.f32.mrf.mxu0  ;;  %v1233_v19 = vsel %vm1199_vm2, %v1162_v8, %v1163_v53 }
 0x192   : > { %v984_v31 = vrot.slane %v924_v41, 2  ;;  %v679_v29 = vpop.f32.mrf.mxu1  ;;  %v1445_v60 = vadd.f32 %v3339_v20, %v1415_v56  ;;  %v1278_v61 = vmax.f32 %v1102_v15, %v1233_v19  ;;  %v322_v56 = vld [vmem:[%s3128_s6 + $0x2e8] sm:$0xff] }
 0x193   : > { %v680_v3 = vadd.f32 %v679_v29, %v482_v57 }
 0x194   : > { %v1052_v5 = vsel %vm1018_vm1, %v983_v37, %v984_v31  ;;  %529 = vmatmul.f32.gmra.mxu0 %v317_v58  ;;  %v1473_v55 = vmax.f32 %v1445_v60, 0.0  ;;  %v3574_v6 = vmax.f32 %v1277_v40, %v1278_v61 }
 0x195   : > { %v1104_v0 = vmax.f32 %v923_v30, %v1052_v5  ;;  %v803_v9 = vrot.slane %v680_v3, 1  ;;  %726 = vmatmul.f32.gmra.mxu1 %v318_v54  ;;  %v320_v30 = vld [vmem:[%s3128_s6 + $0x2d8] sm:$0xff] }
 0x196   : > { %v1503_v10 = vrot.slane %v1473_v55, 3  ;;  %2722 = vmatmul.msk.f32.gmra.mxu3 %vm1556_vm3, %v1473_v55  ;;  %v3583_v32 = vmax.f32 %v3572_v26, %v3574_v6  ;;  %v1378_v55 = vmax.f32 %v3568_v63, %v3572_v26 }
 0x197   : > { %v869_v15 = vsel %vm837_vm0, %v802_v46, %v803_v9  ;;  %v1164_v21 = vrot.slane %v1104_v0, 4 }
 0x198   : > { %v925_v59 = vmax.f32 %v677_v42, %v869_v15  ;;  %v1545_v25 = vsel %vm1524_vm4, %v3455_v12, %v1503_v10  ;;  %v1416_v8 = vmax.f32 %v1376_v16, %v3583_v32 }
 0x199   : > { %2693 = vmatmul.msk.f32.gmra.mxu2 %vm1556_vm3, %v1545_v25  ;;  %v485_v27 = vpop.f32.mrf.mxu0  ;;  %v1232_v62 = vsel %vm1199_vm2, %v1163_v53, %v1164_v21  ;;  %v323_v25 = vld [vmem:[%s3128_s6 + $0x2f0] sm:$0xff] }
 0x19a   : > { %v985_v1 = vrot.slane %v925_v59, 2  ;;  %v682_v28 = vpop.f32.mrf.mxu1  ;;  %v1446_v7 = vadd.f32 %v3339_v20, %v1416_v8  ;;  %v1279_v4 = vmax.f32 %v1103_v43, %v1232_v62 }
 0x19b   : > { %v683_v22 = vadd.f32 %v682_v28, %v485_v27  ;;  %v324_v27 = vld [vmem:[%s3128_s6 + $0x2f8] sm:$0xff] }
 0x19c   : > { %v1051_v24 = vsel %vm1018_vm1, %v984_v31, %v985_v1  ;;  %532 = vmatmul.f32.gmra.mxu0 %v319_v52  ;;  %v1474_v12 = vmax.f32 %v1446_v7, 0.0  ;;  %v3599_v37 = vmax.f32 %v1278_v61, %v1279_v4 }
 0x19d   : > { %v1105_v33 = vmax.f32 %v924_v41, %v1051_v24  ;;  %v804_v34 = vrot.slane %v683_v22, 1  ;;  %729 = vmatmul.f32.gmra.mxu1 %v320_v30  ;;  %v321_v41 = vld [vmem:[%s3128_s6 + $0x2e0] sm:$0xff] }
 0x19e   : > { %v1504_v36 = vrot.slane %v1474_v12, 3  ;;  %2723 = vmatmul.msk.f32.gmra.mxu3 %vm1556_vm3, %v1474_v12  ;;  %v3605_v40 = vmax.f32 %v1331_v45, %v3599_v37 }
 0x19f   : > { %v868_v42 = vsel %vm837_vm0, %v803_v9, %v804_v34  ;;  %v1165_v44 = vrot.slane %v1105_v33, 4 }
 0x1a0   : > { %v926_v43 = vmax.f32 %v680_v3, %v868_v42  ;;  %v1544_v46 = vsel %vm1524_vm4, %v1503_v10, %v1504_v36  ;;  %v1417_v17 = vmax.f32 %v1377_v38, %v3605_v40 }
 0x1a1   : > { %2694 = vmatmul.msk.f32.gmra.mxu2 %vm1556_vm3, %v1544_v46  ;;  %v488_v53 = vpop.f32.mrf.mxu0  ;;  %v1231_v11 = vsel %vm1199_vm2, %v1164_v21, %v1165_v44  ;;  %v1843_v29 = vpop.f32.mrf.mxu3  ;;  %v325_v46 = vld [vmem:[%s3128_s6 + $0x300] sm:$0xff] }
 0x1a2   : > { %v986_v2 = vrot.slane %v926_v43, 2  ;;  %v685_v45 = vpop.f32.mrf.mxu1  ;;  %v1447_v57 = vadd.f32 %v3339_v20, %v1417_v17  ;;  %v1280_v58 = vmax.f32 %v1104_v0, %v1231_v11  ;;  %v326_v11 = vld [vmem:[%s3128_s6 + $0x308] sm:$0xff] }
 0x1a3   : > { %v686_v19 = vadd.f32 %v685_v45, %v488_v53 }
 0x1a4   : > { %v1050_v31 = vsel %vm1018_vm1, %v985_v1, %v986_v2  ;;  %535 = vmatmul.f32.gmra.mxu0 %v321_v41  ;;  %v1475_v54 = vmax.f32 %v1447_v57, 0.0  ;;  %v3620_v60 = vmax.f32 %v1279_v4, %v1280_v58 }
 0x1a5   : > { %v1106_v61 = vmax.f32 %v925_v59, %v1050_v31  ;;  %v805_v3 = vrot.slane %v686_v19, 1  ;;  %732 = vmatmul.f32.gmra.mxu1 %v322_v56 }
 0x1a6   : > { %v1505_v5 = vrot.slane %v1475_v54, 3  ;;  %2724 = vmatmul.msk.f32.gmra.mxu3 %vm1556_vm3, %v1475_v54  ;;  %v1382_v0 = vmax.f32 %v3574_v6, %v3620_v60 }
 0x1a7   : > { %v867_v9 = vsel %vm837_vm0, %v804_v34, %v805_v3  ;;  %v1166_v10 = vrot.slane %v1106_v61, 4 }
 0x1a8   : > { %v927_v16 = vmax.f32 %v683_v22, %v867_v9  ;;  %v1543_v15 = vsel %vm1524_vm4, %v1504_v36, %v1505_v5  ;;  %v1418_v21 = vmax.f32 %v1378_v55, %v1382_v0 }
 0x1a9   : > { %2695 = vmatmul.msk.f32.gmra.mxu2 %vm1556_vm3, %v1543_v15  ;;  %v491_v59 = vpop.f32.mrf.mxu0  ;;  %v1230_v8 = vsel %vm1199_vm2, %v1165_v44, %v1166_v10  ;;  %v1846_v24 = vpop.f32.mrf.mxu3 }
 0x1aa   : > { %v987_v63 = vrot.slane %v927_v16, 2  ;;  %v688_v26 = vpop.f32.mrf.mxu1  ;;  %v1448_v6 = vadd.f32 %v3339_v20, %v1418_v21  ;;  %v1281_v52 = vmax.f32 %v1105_v33, %v1230_v8 }
 0x1ab   : > { %v689_v62 = vadd.f32 %v688_v26, %v491_v59 }
 0x1ac   : > { %v1049_v1 = vsel %vm1018_vm1, %v986_v2, %v987_v63  ;;  %v1658_v28 = vpop.f32.mrf.mxu2  ;;  %538 = vmatmul.f32.gmra.mxu0 %v323_v25  ;;  %v1476_v30 = vmax.f32 %v1448_v6, 0.0  ;;  %v3639_v7 = vmax.f32 %v1280_v58, %v1281_v52 }
 0x1ad   : > { %v3641_v4 = vmax.f32 %v926_v43, %v1049_v1  ;;  %v806_v22 = vrot.slane %v689_v62, 1  ;;  %735 = vmatmul.f32.gmra.mxu1 %v324_v27 }
 0x1ae   : > { %v1506_v12 = vrot.slane %v1476_v30, 3  ;;  %2725 = vmatmul.msk.f32.gmra.mxu3 %vm1556_vm3, %v1476_v30  ;;  %v1383_v33 = vmax.f32 %v3599_v37, %v3639_v7  ;;  %v3656_v37 = vadd.f32 %v1843_v29, %v1658_v28 }
 0x1af   : > { %v866_v34 = vsel %vm837_vm0, %v805_v3, %v806_v22  ;;  %v1167_v36 = vrot.slane %v3641_v4, 4 }
 0x1b0   : > { %v928_v38 = vmax.f32 %v686_v19, %v866_v34  ;;  %v1542_v42 = vsel %vm1524_vm4, %v1505_v5, %v1506_v12  ;;  %v1419_v44 = vmax.f32 %v3554_v48, %v1383_v33  ;;  %v4671_v29 = vrot.slane %v3656_v37, 6 }
 0x1b1   : > { %2696 = vmatmul.msk.f32.gmra.mxu2 %vm1556_vm3, %v1542_v42  ;;  %v494_v43 = vpop.f32.mrf.mxu0  ;;  %v1229_v17 = vsel %vm1199_vm2, %v1166_v10, %v1167_v36  ;;  %v1849_v15 = vpop.f32.mrf.mxu3 }
 0x1b2   : > { %v988_v53 = vrot.slane %v928_v38, 2  ;;  %v691_v41 = vpop.f32.mrf.mxu1  ;;  %v1449_v2 = vadd.f32 %v3339_v20, %v1419_v44  ;;  %v1282_v45 = vmax.f32 %v1106_v61, %v1229_v17  ;;  %v4670_v61 = vrot.slane %v3656_v37, 4 }
 0x1b3   : > { %v692_v56 = vadd.f32 %v691_v41, %v494_v43 }
 0x1b4   : > { %v1048_v57 = vsel %vm1018_vm1, %v987_v63, %v988_v53  ;;  %v1661_v48 = vpop.f32.mrf.mxu2  ;;  %541 = vmatmul.f32.gmra.mxu0 %v325_v46  ;;  %v1477_v58 = vmax.f32 %v1449_v2, 0.0  ;;  %v1336_v19 = vmax.f32 %v1281_v52, %v1282_v45  ;;  %v327_v63 = vld [vmem:[%s3128_s6 + $0x310] sm:$0xff] }
 0x1b5   : > { %v1108_v31 = vmax.f32 %v927_v16, %v1048_v57  ;;  %v807_v54 = vrot.slane %v692_v56, 1  ;;  %v3662_v3 = vadd.f32 %v1846_v24, %v1661_v48  ;;  %738 = vmatmul.f32.gmra.mxu1 %v326_v11 }
 0x1b6   : > { %v1507_v5 = vrot.slane %v1477_v58, 3  ;;  %2726 = vmatmul.msk.f32.gmra.mxu3 %vm1556_vm3, %v1477_v58  ;;  %v1384_v55 = vmax.f32 %v3620_v60, %v1336_v19 }
 0x1b7   : > { %v1168_v0 = vrot.slane %v1108_v31, 4  ;;  %v865_v9 = vsel %vm837_vm0, %v806_v22, %v807_v54  ;;  %v1928_v10 = vrot.slane %v3662_v3, 6  ;;  %v2013_v16 = vrot.slane %v3662_v3, 4  ;;  %v330_v31 = vld [vmem:[%s3128_s6 + $0x328] sm:$0xff] }
 0x1b8   : > { %v929_v21 = vmax.f32 %v689_v62, %v865_v9  ;;  %v1541_v59 = vsel %vm1524_vm4, %v1506_v12, %v1507_v5  ;;  %v1420_v25 = vmax.f32 %v3583_v32, %v1384_v55  ;;  %v328_v62 = vld [vmem:[%s3128_s6 + $0x318] sm:$0xff] }
 0x1b9   : > { %v1982_v60 = vsel %vm1955_vm5, %v4671_v29, %v1928_v10  ;;  %2697 = vmatmul.msk.f32.gmra.mxu2 %vm1556_vm3, %v1541_v59  ;;  %v497_v8 = vpop.f32.mrf.mxu0  ;;  %v1228_v26 = vsel %vm1199_vm2, %v1167_v36, %v1168_v0  ;;  %v3688_v27 = vsel %vm1199_vm2, %v4670_v61, %v2013_v16  ;;  %v1852_v57 = vpop.f32.mrf.mxu3  ;;  %v344_v61 = vld [vmem:[%s3128_s6 + $0x398] sm:$0xff] }
 0x1ba   : > { %v989_v6 = vrot.slane %v929_v21, 2  ;;  %v1984_v32 = vmax.f32 %v3656_v37, %v1982_v60  ;;  %v694_v52 = vpop.f32.mrf.mxu1  ;;  %v1450_v1 = vadd.f32 %v3339_v20, %v1420_v25  ;;  %v1283_v28 = vmax.f32 %v3641_v4, %v1228_v26 }
 0x1bb   : > { %v695_v30 = vadd.f32 %v694_v52, %v497_v8 }
 0x1bc   : > { %v1664_v22 = vpop.f32.mrf.mxu2  ;;  %544 = vmatmul.f32.gmra.mxu0 %v327_v63  ;;  %v1478_v24 = vmax.f32 %v1450_v1, 0.0  ;;  %v1337_v12 = vmax.f32 %v1282_v45, %v1283_v28  ;;  %v1047_v33 = vsel %vm1018_vm1, %v988_v53, %v989_v6  ;;  %v329_v45 = vld [vmem:[%s3128_s6 + $0x320] sm:$0xff]  ;;  %v332_v1 = vld [vmem:[%s3128_s6 + $0x338] sm:$0xff] }
 0x1bd   : > { %v808_v34 = vrot.slane %v695_v30, 1  ;;  %v3696_v36 = vadd.f32 %v1849_v15, %v1664_v22  ;;  %741 = vmatmul.f32.gmra.mxu1 %v328_v62  ;;  %v3698_v42 = vmax.f32 %v928_v38, %v1047_v33 }
 0x1be   : > { %v1508_v44 = vrot.slane %v1478_v24, 3  ;;  %2727 = vmatmul.msk.f32.gmra.mxu3 %vm1556_vm3, %v1478_v24  ;;  %v1385_v4 = vmax.f32 %v3639_v7, %v1337_v12 }
 0x1bf   : > { %v864_v43 = vsel %vm837_vm0, %v807_v54, %v808_v34  ;;  %v1929_v46 = vrot.slane %v3696_v36, 6  ;;  %v2014_v17 = vrot.slane %v3696_v36, 4  ;;  %v1169_v59 = vrot.slane %v3698_v42, 4 }
 0x1c0   : > { %v930_v53 = vmax.f32 %v692_v56, %v864_v43  ;;  %v1540_v41 = vsel %vm1524_vm4, %v1507_v5, %v1508_v44  ;;  %v1421_v38 = vmax.f32 %v3605_v40, %v1385_v4 }
 0x1c1   : > { %v1981_v11 = vsel %vm1955_vm5, %v1928_v10, %v1929_v46  ;;  %v2065_v7 = vsel %vm1199_vm2, %v2013_v16, %v2014_v17  ;;  %2698 = vmatmul.msk.f32.gmra.mxu2 %vm1556_vm3, %v1540_v41  ;;  %v500_v2 = vpop.f32.mrf.mxu0  ;;  %v1855_v24 = vpop.f32.mrf.mxu3  ;;  %v3760_v41 = vld [vmem:[%s4668_s4 + $0x1] ss:$0 sm:$0xff] }
 0x1c2   : > { %v990_v48 = vrot.slane %v930_v53, 2  ;;  %v1985_v58 = vmax.f32 %v3662_v3, %v1981_v11  ;;  %v3716_v56 = vmax.f32 %v1984_v32, %v2065_v7  ;;  %v697_v19 = vpop.f32.mrf.mxu1  ;;  %v1451_v40 = vadd.f32 %v3339_v20, %v1421_v38 }
 0x1c3   : > { %v698_v54 = vadd.f32 %v697_v19, %v500_v2 }
 0x1c4   : > { %v1667_v5 = vpop.f32.mrf.mxu2  ;;  %547 = vmatmul.f32.gmra.mxu0 %v329_v45  ;;  %v1479_v55 = vmax.f32 %v1451_v40, 0.0  ;;  %v1046_v0 = vsel %vm1018_vm1, %v989_v6, %v990_v48  ;;  %v331_v6 = vld [vmem:[%s3128_s6 + $0x330] sm:$0xff] }
 0x1c5   : > { %v809_v9 = vrot.slane %v698_v54, 1  ;;  %v3722_v10 = vadd.f32 %v1852_v57, %v1667_v5  ;;  %744 = vmatmul.f32.gmra.mxu1 %v330_v31  ;;  %v1110_v16 = vmax.f32 %v929_v21, %v1046_v0  ;;  %v333_v57 = vld [vmem:[%s3128_s6 + $0x340] sm:$0xff]  ;;  %v334_v5 = vld [vmem:[%s3128_s6 + $0x348] sm:$0xff] }
 0x1c6   : > { %v3724_v3 = vrot.slane %v1479_v55, 3  ;;  %2728 = vmatmul.msk.f32.gmra.mxu3 %vm1556_vm3, %v1479_v55 }
 0x1c7   : > { %v863_v20 = vsel %vm837_vm0, %v808_v34, %v809_v9  ;;  %v2015_v15 = vrot.slane %v3722_v10, 4  ;;  %v1170_v25 = vrot.slane %v1110_v16, 4  ;;  %v1930_v21 = vrot.slane %v3722_v10, 6  ;;  %v2746_v34 = vld [vmem:[%s4667_s3 + $0x38] sm:$0xff] }
 0x1c8   : > { %v931_v60 = vmax.f32 %v695_v30, %v863_v20  ;;  %v1539_v8 = vsel %vm1524_vm4, %v1508_v44, %v3724_v3  ;;  %v2157_v44 = vld [vmem:[%s4667_s3 + $0x18] sm:$0xff]  ;;  %2316 = vmatpush.msra.mxu2 %v2746_v34 }
 0x1c9   : > { %v2064_v63 = vsel %vm1199_vm2, %v2014_v17, %v2015_v15  ;;  %2699 = vmatmul.msk.f32.gmra.mxu2 %vm1556_vm3, %v1539_v8  ;;  %v503_v26 = vpop.f32.mrf.mxu0  ;;  %v1227_v32 = vsel %vm1199_vm2, %v1169_v59, %v1170_v25  ;;  %2489 = vmatpush.msra.mxu3 %v2157_v44 }
 0x1ca   : > { %v991_v52 = vrot.slane %v931_v60, 2  ;;  %v700_v62 = vpop.f32.mrf.mxu1  ;;  %v1284_v28 = vmax.f32 %v3698_v42, %v1227_v32  ;;  %v2069_v30 = vmax.f32 %v1985_v58, %v2064_v63  ;;  %v1980_v42 = vsel %vm1955_vm5, %v1929_v46, %v1930_v21  ;;  %v335_v32 = vld [vmem:[%s3128_s6 + $0x350] sm:$0xff] }
 0x1cb   : > { %v701_v22 = vadd.f32 %v700_v62, %v503_v26  ;;  %v1986_v46 = vmax.f32 %v3696_v36, %v1980_v42 }
 0x1cc   : > { %v1045_v12 = vsel %vm1018_vm1, %v990_v48, %v991_v52  ;;  %v1670_v33 = vpop.f32.mrf.mxu2  ;;  %550 = vmatmul.f32.gmra.mxu0 %v331_v6  ;;  %v3774_v58 = vadd.f32 %v3760_v41, %v2069_v30 }
 0x1cd   : > { %v810_v4 = vrot.slane %v701_v22, 1  ;;  %v3755_v43 = vadd.f32 %v1855_v24, %v1670_v33  ;;  %747 = vmatmul.f32.gmra.mxu1 %v332_v1  ;;  %v1111_v17 = vmax.f32 %v930_v53, %v1045_v12 }
 0x1ce   : > { %v4673_v59 = vmax.f32 %v3774_v58, 0.0 }
 0x1cf   : > { %v862_v38 = vsel %vm837_vm0, %v809_v9, %v810_v4  ;;  %v2016_v11 = vrot.slane %v3755_v43, 4  ;;  %v1171_v7 = vrot.slane %v1111_v17, 4 }
 0x1d0   : > { %v932_v2 = vmax.f32 %v698_v54, %v862_v38 }
 0x1d1   : > { %v2063_v53 = vsel %vm1199_vm2, %v2015_v15, %v2016_v11  ;;  %v506_v45 = vpop.f32.mrf.mxu0  ;;  %v1226_v48 = vsel %vm1199_vm2, %v1170_v25, %v1171_v7 }
 0x1d2   : > { %v992_v19 = vrot.slane %v932_v2, 2  ;;  %v2070_v31 = vmax.f32 %v1986_v46, %v2063_v53  ;;  %v703_v40 = vpop.f32.mrf.mxu1  ;;  %v3777_v55 = vmax.f32 %v1110_v16, %v1226_v48 }
 0x1d3   : > { %v704_v36 = vadd.f32 %v703_v40, %v506_v45 }
 0x1d4   : > { %v1044_v54 = vsel %vm1018_vm1, %v991_v52, %v992_v19  ;;  %v3782_v0 = vadd.f32 %v3760_v41, %v2070_v31  ;;  %553 = vmatmul.f32.gmra.mxu0 %v333_v57  ;;  %v3785_v9 = vmax.f32 %v1284_v28, %v3777_v55  ;;  %v336_v28 = vld [vmem:[%s3128_s6 + $0x358] sm:$0xff] }
 0x1d5   : > { %v811_v20 = vrot.slane %v704_v36, 1  ;;  %750 = vmatmul.f32.gmra.mxu1 %v334_v5  ;;  %v1112_v15 = vmax.f32 %v931_v60, %v1044_v54  ;;  %v3800_v60 = vrot.slane %v4673_v59, 4  ;;  %v339_v5 = vld [vmem:[%s3128_s6 + $0x370] sm:$0xff] }
 0x1d6   : > { %v4672_v16 = vmax.f32 %v3782_v0, 0.0 }
 0x1d7   : > { %v861_v25 = vsel %vm837_vm0, %v810_v4, %v811_v20  ;;  %v1172_v8 = vrot.slane %v1112_v15, 4  ;;  %v337_v4 = vld [vmem:[%s3128_s6 + $0x360] sm:$0xff] }
 0x1d8   : > { %v933_v63 = vmax.f32 %v701_v22, %v861_v25  ;;  %v3793_v26 = vrot.slane %v4672_v16, 4  ;;  %v340_v25 = vld [vmem:[%s3128_s6 + $0x378] sm:$0xff] }
 0x1d9   : > { %v509_v6 = vpop.f32.mrf.mxu0  ;;  %v1225_v52 = vsel %vm1199_vm2, %v1171_v7, %v1172_v8  ;;  %v338_v7 = vld [vmem:[%s3128_s6 + $0x368] sm:$0xff] }
 0x1da   : > { %v993_v62 = vrot.slane %v933_v63, 2  ;;  %v706_v1 = vpop.f32.mrf.mxu1  ;;  %v3803_v30 = vmax.f32 %v1111_v17, %v1225_v52  ;;  %v3809_v22 = vsel %vm1199_vm2, %v3800_v60, %v3793_v26 }
 0x1db   : > { %v707_v44 = vadd.f32 %v706_v1, %v509_v6 }
 0x1dc   : > { %v1043_v24 = vsel %vm1018_vm1, %v992_v19, %v993_v62  ;;  %556 = vmatmul.f32.gmra.mxu0 %v335_v32  ;;  %v1339_v12 = vmax.f32 %v3777_v55, %v3803_v30 }
 0x1dd   : > { %753 = vmatmul.f32.gmra.mxu1 %v336_v28  ;;  %v3815_v33 = vmax.f32 %v932_v2, %v1043_v24  ;;  %v812_v45 = vrot.slane %v707_v44, 1 }
 0x1df   : > { %v1173_v34 = vrot.slane %v3815_v33, 4  ;;  %v860_v31 = vsel %vm837_vm0, %v811_v20, %v812_v45  ;;  %v341_v20 = vld [vmem:[%s3128_s6 + $0x380] sm:$0xff] }
 0x1e0   : > { %v934_v6 = vmax.f32 %v704_v36, %v860_v31 }
 0x1e1   : > { %v512_v42 = vpop.f32.mrf.mxu0  ;;  %v1224_v17 = vsel %vm1199_vm2, %v1172_v8, %v1173_v34 }
 0x1e2   : > { %v709_v38 = vpop.f32.mrf.mxu1  ;;  %v3824_v46 = vmax.f32 %v1112_v15, %v1224_v17  ;;  %v994_v28 = vrot.slane %v934_v6, 2 }
 0x1e3   : > { %v710_v53 = vadd.f32 %v709_v38, %v512_v42  ;;  %v342_v38 = vld [vmem:[%s3128_s6 + $0x388] sm:$0xff] }
 0x1e4   : > { %559 = vmatmul.f32.gmra.mxu0 %v337_v4  ;;  %v3828_v2 = vmax.f32 %v3803_v30, %v3824_v46  ;;  %v1042_v36 = vsel %vm1018_vm1, %v993_v62, %v994_v28 }
 0x1e5   : > { %v813_v57 = vrot.slane %v710_v53, 1  ;;  %756 = vmatmul.f32.gmra.mxu1 %v338_v7  ;;  %v1114_v31 = vmax.f32 %v933_v63, %v1042_v36 }
 0x1e6   : > { %v1386_v48 = vmax.f32 %v3785_v9, %v3828_v2 }
 0x1e7   : > { %v859_v19 = vsel %vm837_vm0, %v812_v45, %v813_v57 }
 0x1e8   : > { %v935_v54 = vmax.f32 %v707_v44, %v859_v19 }
 0x1e9   : > { %v515_v40 = vpop.f32.mrf.mxu0 }
 0x1ea   : > { %v712_v15 = vpop.f32.mrf.mxu1  ;;  %v995_v52 = vrot.slane %v935_v54, 2 }
 0x1eb   : > { %v713_v8 = vadd.f32 %v712_v15, %v515_v40 }
 0x1ec   : > { %562 = vmatmul.f32.gmra.mxu0 %v339_v5  ;;  %v1041_v4 = vsel %vm1018_vm1, %v994_v28, %v995_v52  ;;  %v1174_v28 = vrot.slane %v1114_v31, 4 }
 0x1ed   : > { %v814_v32 = vrot.slane %v713_v8, 1  ;;  %759 = vmatmul.f32.gmra.mxu1 %v340_v25  ;;  %v343_v25 = vld [vmem:[%s3128_s6 + $0x390] sm:$0xff]  ;;  %s218_s6 = sand.u32 1, %s2940_s19  }
 0x1ee   : > { %s2682_s13 = sshll.u32 %s218_s6, 2  ;;  %s2602_s30 = scalar_lea.sflag [#allocation3], %s218_s6 }
 0x1ef   : > { %v858_v1 = vsel %vm837_vm0, %v813_v57, %v814_v32  ;;  %s4575_s14 = scalar_lea.vmem [#allocation2], %s2682_s13 }
 0x1f0   : > { %v936_v24 = vmax.f32 %v710_v53, %v858_v1  ;;  %v1115_v53 = vmax.f32 %v934_v6, %v1041_v4  ;;  %v1223_v4 = vsel %vm1199_vm2, %v1173_v34, %v1174_v28  ;;  %s2613_s23 = sshll.u32 %s4575_s14, 4  ;;  %s2614_s23 = int_to_ptr.vmem [resolvable:$true] %s2613_s23 }
 0x1f1   : > { %v518_v42 = vpop.f32.mrf.mxu0 }
 0x1f2   : > { %v996_v44 = vrot.slane %v936_v24, 2  ;;  %v715_v17 = vpop.f32.mrf.mxu1  ;;  %v1175_v1 = vrot.slane %v1115_v53, 4 }
 0x1f3   : > { %v716_v7 = vadd.f32 %v715_v17, %v518_v42 }
 0x1f4   : > { %v1040_v45 = vsel %vm1018_vm1, %v995_v52, %v996_v44  ;;  %565 = vmatmul.f32.gmra.mxu0 %v341_v20  ;;  %v1222_v63 = vsel %vm1199_vm2, %v1174_v28, %v1175_v1 }
 0x1f5   : > { %v815_v57 = vrot.slane %v716_v7, 1  ;;  %762 = vmatmul.f32.gmra.mxu1 %v342_v38  ;;  %v1116_v40 = vmax.f32 %v935_v54, %v1040_v45  ;;  %v1289_v38 = vmax.f32 %v1114_v31, %v1222_v63 }
 0x1f7   : > { %v857_v19 = vsel %vm837_vm0, %v814_v32, %v815_v57  ;;  %v1176_v29 = vrot.slane %v1116_v40, 4 }
 0x1f8   : > { %v937_v5 = vmax.f32 %v713_v8, %v857_v19  ;;  %v1288_v19 = vmax.f32 %v3815_v33, %v1223_v4  ;;  %v2745_v33 = vld [vmem:[%s4667_s3 + $0x30] sm:$0xff] }
 0x1f9   : > { %v521_v15 = vpop.f32.mrf.mxu0  ;;  %v1221_v32 = vsel %vm1199_vm2, %v1175_v1, %v1176_v29  ;;  %2317 = vmatpush.msra.mxu2 %v2745_v33 }
 0x1fa   : > { %v997_v42 = vrot.slane %v937_v5, 2  ;;  %v718_v17 = vpop.f32.mrf.mxu1  ;;  %v1341_v4 = vmax.f32 %v3824_v46, %v1288_v19 }
 0x1fb   : > { %v719_v62 = vadd.f32 %v718_v17, %v521_v15  ;;  %v1290_v15 = vmax.f32 %v1115_v53, %v1221_v32  ;;  %v1342_v17 = vmax.f32 %v1288_v19, %v1289_v38  ;;  %v2156_v53 = vld [vmem:[%s4667_s3 + $0x10] sm:$0xff] }
 0x1fc   : > { %v1039_v52 = vsel %vm1018_vm1, %v996_v44, %v997_v42  ;;  %568 = vmatmul.f32.gmra.mxu0 %v343_v25  ;;  %2490 = vmatpush.msra.mxu3 %v2156_v53  ;;  %v1387_v33 = vmax.f32 %v1339_v12, %v1341_v4 }
 0x1fd   : > { %v1117_v6 = vmax.f32 %v936_v24, %v1039_v52  ;;  %v816_v20 = vrot.slane %v719_v62, 1  ;;  %765 = vmatmul.f32.gmra.mxu1 %v344_v61 }
 0x1ff   : > { %v1177_v54 = vrot.slane %v1117_v6, 4  ;;  %v856_v8 = vsel %vm837_vm0, %v815_v57, %v816_v20 }
 0x200   : > { %v938_v44 = vmax.f32 %v716_v7, %v856_v8  ;;  %v3888_v8 = vld [vmem:[%s4668_s4] ss:$0 sm:$0xff] }
 0x201   : > { %v524_v24 = vpop.f32.mrf.mxu0  ;;  %v1220_v61 = vsel %vm1199_vm2, %v1176_v29, %v1177_v54 }
 0x202   : > { %v998_v36 = vrot.slane %v938_v44, 2  ;;  %v721_v45 = vpop.f32.mrf.mxu1  ;;  %v1291_v57 = vmax.f32 %v1116_v40, %v1220_v61  ;;  %v1343_v61 = vmax.f32 %v1289_v38, %v1290_v15 }
 0x203   : > { %v722_v25 = vadd.f32 %v721_v45, %v524_v24 }
 0x204   : > { %v1038_v1 = vsel %vm1018_vm1, %v997_v42, %v998_v36  ;;  %v1344_v52 = vmax.f32 %v1290_v15, %v1291_v57 }
 0x205   : > { %v1118_v16 = vmax.f32 %v937_v5, %v1038_v1  ;;  %v817_v34 = vrot.slane %v722_v25, 1 }
 0x206   : > { %v3869_v7 = vmax.f32 %v1342_v17, %v1344_v52 }
 0x207   : > { %v1178_v31 = vrot.slane %v1118_v16, 4  ;;  %v855_v29 = vsel %vm837_vm0, %v816_v20, %v817_v34 }
 0x208   : > { %v939_v40 = vmax.f32 %v719_v62, %v855_v29  ;;  %v1422_v5 = vmax.f32 %v1386_v48, %v3869_v7 }
 0x209   : > { %v527_v42 = vpop.f32.mrf.mxu0  ;;  %v1219_v28 = vsel %vm1199_vm2, %v1177_v54, %v1178_v31 }
 0x20a   : > { %v999_v20 = vrot.slane %v939_v40, 2  ;;  %v724_v63 = vpop.f32.mrf.mxu1  ;;  %v1452_v62 = vadd.f32 %v3888_v8, %v1422_v5  ;;  %v1292_v32 = vmax.f32 %v1117_v6, %v1219_v28 }
 0x20b   : > { %v725_v9 = vadd.f32 %v724_v63, %v527_v42 }
 0x20c   : > { %v1037_v48 = vsel %vm1018_vm1, %v998_v36, %v999_v20  ;;  %v1480_v24 = vmax.f32 %v1452_v62, 0.0  ;;  %v1345_v45 = vmax.f32 %v1291_v57, %v1292_v32  ;;  %v1388_v62 = vmax.f32 %v3828_v2, %v1342_v17 }
 0x20d   : > { %v1119_v54 = vmax.f32 %v938_v44, %v1037_v48  ;;  %v818_v1 = vrot.slane %v725_v9, 1 }
 0x20e   : > { %v1510_v29 = vrot.slane %v1480_v24, 3  ;;  %2729 = vmatmul.msk.f32.gmra.mxu3 %vm1556_vm3, %v1480_v24  ;;  %v3898_v53 = vmax.f32 %v1343_v61, %v1345_v45 }
 0x20f   : > { %v1179_v6 = vrot.slane %v1119_v54, 4  ;;  %v854_v46 = vsel %vm837_vm0, %v817_v34, %v818_v1 }
 0x210   : > { %v940_v19 = vmax.f32 %v722_v25, %v854_v46  ;;  %v1538_v38 = vsel %vm1524_vm4, %v3724_v3, %v1510_v29  ;;  %v1423_v44 = vmax.f32 %v1387_v33, %v3898_v53 }
 0x211   : > { %2700 = vmatmul.msk.f32.gmra.mxu2 %vm1556_vm3, %v1538_v38  ;;  %v530_v36 = vpop.f32.mrf.mxu0  ;;  %v1218_v55 = vsel %vm1199_vm2, %v1178_v31, %v1179_v6 }
 0x212   : > { %v1000_v30 = vrot.slane %v940_v19, 2  ;;  %v727_v12 = vpop.f32.mrf.mxu1  ;;  %v1453_v15 = vadd.f32 %v3888_v8, %v1423_v44  ;;  %v1293_v57 = vmax.f32 %v1118_v16, %v1218_v55 }
 0x213   : > { %v728_v5 = vadd.f32 %v727_v12, %v530_v36  ;;  %v1389_v12 = vmax.f32 %v1341_v4, %v1343_v61 }
 0x214   : > { %v1036_v25 = vsel %vm1018_vm1, %v999_v20, %v1000_v30  ;;  %v1481_v34 = vmax.f32 %v1453_v15, 0.0  ;;  %v1346_v42 = vmax.f32 %v1292_v32, %v1293_v57 }
 0x215   : > { %v1120_v3 = vmax.f32 %v939_v40, %v1036_v25  ;;  %v819_v28 = vrot.slane %v728_v5, 1 }
 0x216   : > { %v1511_v63 = vrot.slane %v1481_v34, 3  ;;  %2730 = vmatmul.msk.f32.gmra.mxu3 %vm1556_vm3, %v1481_v34  ;;  %v3914_v48 = vmax.f32 %v1344_v52, %v1346_v42 }
 0x217   : > { %v1180_v31 = vrot.slane %v1120_v3, 4  ;;  %v853_v24 = vsel %vm837_vm0, %v818_v1, %v819_v28 }
 0x218   : > { %v941_v16 = vmax.f32 %v725_v9, %v853_v24  ;;  %v1537_v33 = vsel %vm1524_vm4, %v1510_v29, %v1511_v63  ;;  %v1424_v20 = vmax.f32 %v1388_v62, %v3914_v48 }
 0x219   : > { %2701 = vmatmul.msk.f32.gmra.mxu2 %vm1556_vm3, %v1537_v33  ;;  %v533_v40 = vpop.f32.mrf.mxu0  ;;  %v1217_v32 = vsel %vm1199_vm2, %v1179_v6, %v1180_v31 }
 0x21a   : > { %v1001_v46 = vrot.slane %v941_v16, 2  ;;  %v730_v2 = vpop.f32.mrf.mxu1  ;;  %v1454_v17 = vadd.f32 %v3888_v8, %v1424_v20  ;;  %v1294_v52 = vmax.f32 %v1119_v54, %v1217_v32 }
 0x21b   : > { %v731_v38 = vadd.f32 %v730_v2, %v533_v40 }
 0x21c   : > { %v1035_v9 = vsel %vm1018_vm1, %v1000_v30, %v1001_v46  ;;  %v1482_v1 = vmax.f32 %v1454_v17, 0.0  ;;  %v1347_v44 = vmax.f32 %v1293_v57, %v1294_v52 }
 0x21d   : > { %v1121_v29 = vmax.f32 %v940_v19, %v1035_v9  ;;  %v820_v36 = vrot.slane %v731_v38, 1 }
 0x21e   : > { %v1512_v55 = vrot.slane %v1482_v1, 3  ;;  %2731 = vmatmul.msk.f32.gmra.mxu3 %vm1556_vm3, %v1482_v1  ;;  %v1393_v15 = vmax.f32 %v1345_v45, %v1347_v44 }
 0x21f   : > { %v1181_v25 = vrot.slane %v1121_v29, 4  ;;  %v852_v6 = vsel %vm837_vm0, %v819_v28, %v820_v36 }
 0x220   : > { %v942_v34 = vmax.f32 %v728_v5, %v852_v6  ;;  %v1536_v54 = vsel %vm1524_vm4, %v1511_v63, %v1512_v55  ;;  %v1425_v62 = vmax.f32 %v1389_v12, %v1393_v15 }
 0x221   : > { %2702 = vmatmul.msk.f32.gmra.mxu2 %vm1556_vm3, %v1536_v54  ;;  %v536_v30 = vpop.f32.mrf.mxu0  ;;  %v1216_v19 = vsel %vm1199_vm2, %v1180_v31, %v1181_v25 }
 0x222   : > { %v1002_v57 = vrot.slane %v942_v34, 2  ;;  %v733_v24 = vpop.f32.mrf.mxu1  ;;  %v1455_v4 = vadd.f32 %v3888_v8, %v1425_v62  ;;  %v1295_v45 = vmax.f32 %v1120_v3, %v1216_v19 }
 0x223   : > { %v734_v61 = vadd.f32 %v733_v24, %v536_v30 }
 0x224   : > { %v1034_v28 = vsel %vm1018_vm1, %v1001_v46, %v1002_v57  ;;  %v1483_v5 = vmax.f32 %v1455_v4, 0.0  ;;  %v1348_v63 = vmax.f32 %v1294_v52, %v1295_v45 }
 0x225   : > { %v1122_v33 = vmax.f32 %v941_v16, %v1034_v28  ;;  %v821_v20 = vrot.slane %v734_v61, 1 }
 0x226   : > { %v1513_v40 = vrot.slane %v1483_v5, 3  ;;  %2732 = vmatmul.msk.f32.gmra.mxu3 %vm1556_vm3, %v1483_v5  ;;  %v1394_v9 = vmax.f32 %v1346_v42, %v1348_v63 }
 0x227   : > { %v1182_v32 = vrot.slane %v1122_v33, 4  ;;  %v851_v31 = vsel %vm837_vm0, %v820_v36, %v821_v20 }
 0x228   : > { %v943_v2 = vmax.f32 %v731_v38, %v851_v31  ;;  %v1535_v17 = vsel %vm1524_vm4, %v1512_v55, %v1513_v40  ;;  %v1426_v1 = vmax.f32 %v3869_v7, %v1394_v9 }
 0x229   : > { %2703 = vmatmul.msk.f32.gmra.mxu2 %vm1556_vm3, %v1535_v17  ;;  %v539_v3 = vpop.f32.mrf.mxu0  ;;  %v1215_v16 = vsel %vm1199_vm2, %v1181_v25, %v1182_v32 }
 0x22a   : > { %v1003_v46 = vrot.slane %v943_v2, 2  ;;  %v736_v52 = vpop.f32.mrf.mxu1  ;;  %v1296_v15 = vmax.f32 %v1121_v29, %v1215_v16  ;;  %v1456_v38 = vadd.f32 %v3888_v8, %v1426_v1 }
 0x22b   : > { %v737_v12 = vadd.f32 %v736_v52, %v539_v3 }
 0x22c   : > { %v1033_v36 = vsel %vm1018_vm1, %v1002_v57, %v1003_v46  ;;  %v1349_v42 = vmax.f32 %v1295_v45, %v1296_v15  ;;  %v1484_v54 = vmax.f32 %v1456_v38, 0.0 }
 0x22d   : > { %v1123_v6 = vmax.f32 %v942_v34, %v1033_v36  ;;  %v822_v55 = vrot.slane %v737_v12, 1 }
 0x22e   : > { %v1514_v19 = vrot.slane %v1484_v54, 3  ;;  %2733 = vmatmul.msk.f32.gmra.mxu3 %vm1556_vm3, %v1484_v54  ;;  %v1395_v7 = vmax.f32 %v1347_v44, %v1349_v42 }
 0x22f   : > { %v1183_v62 = vrot.slane %v1123_v6, 4  ;;  %v850_v30 = vsel %vm837_vm0, %v821_v20, %v822_v55 }
 0x230   : > { %v944_v25 = vmax.f32 %v734_v61, %v850_v30  ;;  %v1534_v34 = vsel %vm1524_vm4, %v1513_v40, %v1514_v19  ;;  %v1427_v28 = vmax.f32 %v3898_v53, %v1395_v7 }
 0x231   : > { %v542_v24 = vpop.f32.mrf.mxu0  ;;  %v1214_v29 = vsel %vm1199_vm2, %v1182_v32, %v1183_v62  ;;  %2704 = vmatmul.msk.f32.gmra.mxu2 %vm1556_vm3, %v1534_v34 }
 0x232   : > { %v1004_v57 = vrot.slane %v944_v25, 2  ;;  %v739_v4 = vpop.f32.mrf.mxu1  ;;  %v1297_v5 = vmax.f32 %v1122_v33, %v1214_v29  ;;  %v1457_v44 = vadd.f32 %v3888_v8, %v1427_v28 }
 0x233   : > { %v740_v45 = vadd.f32 %v739_v4, %v542_v24 }
 0x234   : > { %v1032_v61 = vsel %vm1018_vm1, %v1003_v46, %v1004_v57  ;;  %v1350_v31 = vmax.f32 %v1296_v15, %v1297_v5  ;;  %v1485_v9 = vmax.f32 %v1457_v44, 0.0  ;;  %v2155_v15 = vld [vmem:[%s4667_s3 + $0x8] sm:$0xff] }
 0x235   : > { %v823_v20 = vrot.slane %v740_v45, 1  ;;  %v1124_v17 = vmax.f32 %v943_v2, %v1032_v61  ;;  %2491 = vmatpush.msra.mxu3 %v2155_v15 }
 0x236   : > { %v1396_v3 = vmax.f32 %v1348_v63, %v1350_v31  ;;  %v1515_v16 = vrot.slane %v1485_v9, 3  ;;  %2734 = vmatmul.msk.f32.gmra.mxu3 %vm1556_vm3, %v1485_v9  ;;  %v2744_v63 = vld [vmem:[%s4667_s3 + $0x28] sm:$0xff] }
 0x237   : > { %v849_v32 = vsel %vm837_vm0, %v822_v55, %v823_v20  ;;  %2318 = vmatpush.msra.mxu2 %v2744_v63  ;;  %v1184_v42 = vrot.slane %v1124_v17, 4 }
 0x238   : > { %v945_v40 = vmax.f32 %v737_v12, %v849_v32  ;;  %v1428_v1 = vmax.f32 %v3914_v48, %v1396_v3  ;;  %v1533_v46 = vsel %vm1524_vm4, %v1514_v19, %v1515_v16 }
 0x239   : > { %v545_v52 = vpop.f32.mrf.mxu0  ;;  %2705 = vmatmul.msk.f32.gmra.mxu2 %vm1556_vm3, %v1533_v46 }
 0x23a   : > { %v1005_v53 = vrot.slane %v945_v40, 2  ;;  %v742_v33 = vpop.f32.mrf.mxu1  ;;  %v1458_v12 = vadd.f32 %v3888_v8, %v1428_v1 }
 0x23b   : > { %v743_v36 = vadd.f32 %v742_v33, %v545_v52 }
 0x23c   : > { %v1031_v2 = vsel %vm1018_vm1, %v1004_v57, %v1005_v53  ;;  %v1486_v6 = vmax.f32 %v1458_v12, 0.0 }
 0x23d   : > { %v824_v48 = vrot.slane %v743_v36, 1  ;;  %v1125_v38 = vmax.f32 %v944_v25, %v1031_v2 }
 0x23e   : > { %v3980_v30 = vrot.slane %v1486_v6, 3  ;;  %2735 = vmatmul.msk.f32.gmra.mxu3 %vm1556_vm3, %v1486_v6 }
 0x23f   : > { %v848_v55 = vsel %vm837_vm0, %v823_v20, %v824_v48  ;;  %v1185_v54 = vrot.slane %v1125_v38, 4 }
 0x240   : > { %v946_v62 = vmax.f32 %v740_v45, %v848_v55  ;;  %v1532_v25 = vsel %vm1524_vm4, %v1515_v16, %v3980_v30 }
 0x241   : > { %v548_v19 = vpop.f32.mrf.mxu0  ;;  %v1213_v7 = vsel %vm1199_vm2, %v1184_v42, %v1185_v54  ;;  %2706 = vmatmul.msk.f32.gmra.mxu2 %vm1556_vm3, %v1532_v25 }
 0x242   : > { %v1006_v24 = vrot.slane %v946_v62, 2  ;;  %v745_v29 = vpop.f32.mrf.mxu1  ;;  %v1298_v34 = vmax.f32 %v1124_v17, %v1213_v7 }
 0x243   : > { %v746_v57 = vadd.f32 %v745_v29, %v548_v19 }
 0x244   : > { %v1030_v4 = vsel %vm1018_vm1, %v1005_v53, %v1006_v24 }
 0x245   : > { %v825_v45 = vrot.slane %v746_v57, 1  ;;  %v1126_v28 = vmax.f32 %v945_v40, %v1030_v4 }
 0x247   : > { %v847_v5 = vsel %vm837_vm0, %v824_v48, %v825_v45  ;;  %v1186_v61 = vrot.slane %v1126_v28, 4 }
 0x248   : > { %v947_v20 = vmax.f32 %v743_v36, %v847_v5 }
 0x249   : > { %v551_v44 = vpop.f32.mrf.mxu0  ;;  %v1212_v31 = vsel %vm1199_vm2, %v1185_v54, %v1186_v61 }
 0x24a   : > { %v1007_v32 = vrot.slane %v947_v20, 2  ;;  %v748_v9 = vpop.f32.mrf.mxu1  ;;  %v3995_v3 = vmax.f32 %v1125_v38, %v1212_v31 }
 0x24b   : > { %v749_v17 = vadd.f32 %v748_v9, %v551_v44 }
 0x24c   : > { %v1029_v16 = vsel %vm1018_vm1, %v1006_v24, %v1007_v32  ;;  %v4000_v52 = vmax.f32 %v1298_v34, %v3995_v3 }
 0x24d   : > { %v826_v40 = vrot.slane %v749_v17, 1  ;;  %v1127_v53 = vmax.f32 %v946_v62, %v1029_v16 }
 0x24f   : > { %v846_v33 = vsel %vm837_vm0, %v825_v45, %v826_v40  ;;  %v1187_v1 = vrot.slane %v1127_v53, 4 }
 0x250   : > { %v948_v46 = vmax.f32 %v746_v57, %v846_v33 }
 0x251   : > { %v554_v36 = vpop.f32.mrf.mxu0  ;;  %v1211_v2 = vsel %vm1199_vm2, %v1186_v61, %v1187_v1 }
 0x252   : > { %v1008_v12 = vrot.slane %v948_v46, 2  ;;  %v751_v63 = vpop.f32.mrf.mxu1  ;;  %v4006_v15 = vmax.f32 %v1126_v28, %v1211_v2 }
 0x253   : > { %v752_v42 = vadd.f32 %v751_v63, %v554_v36 }
 0x254   : > { %v1028_v48 = vsel %vm1018_vm1, %v1007_v32, %v1008_v12  ;;  %v1352_v38 = vmax.f32 %v3995_v3, %v4006_v15 }
 0x255   : > { %v4012_v6 = vmax.f32 %v947_v20, %v1028_v48  ;;  %v827_v29 = vrot.slane %v752_v42, 1 }
 0x257   : > { %v1188_v55 = vrot.slane %v4012_v6, 4  ;;  %v845_v45 = vsel %vm837_vm0, %v826_v40, %v827_v29 }
 0x258   : > { %v949_v44 = vmax.f32 %v749_v17, %v845_v45 }
 0x259   : > { %v557_v54 = vpop.f32.mrf.mxu0  ;;  %v1210_v62 = vsel %vm1199_vm2, %v1187_v1, %v1188_v55 }
 0x25a   : > { %v754_v19 = vpop.f32.mrf.mxu1  ;;  %v4017_v7 = vmax.f32 %v1127_v53, %v1210_v62  ;;  %v1009_v16 = vrot.slane %v949_v44, 2 }
 0x25b   : > { %v755_v24 = vadd.f32 %v754_v19, %v557_v54 }
 0x25c   : > { %v4021_v25 = vmax.f32 %v4006_v15, %v4017_v7  ;;  %v1027_v40 = vsel %vm1018_vm1, %v1008_v12, %v1009_v16 }
 0x25d   : > { %v828_v57 = vrot.slane %v755_v24, 1  ;;  %v1129_v62 = vmax.f32 %v948_v46, %v1027_v40  ;;  %v2154_v46 = vld [vmem:[%s4667_s3] sm:$0xff] }
 0x25e   : > { %v1397_v34 = vmax.f32 %v4000_v52, %v4021_v25  ;;  %2492 = vmatpush.msra.mxu3 %v2154_v46 }
 0x25f   : > { %v844_v4 = vsel %vm837_vm0, %v827_v29, %v828_v57 }
 0x260   : > { %v950_v5 = vmax.f32 %v752_v42, %v844_v4 }
 0x261   : > { %v560_v28 = vpop.f32.mrf.mxu0 }
 0x262   : > { %v757_v61 = vpop.f32.mrf.mxu1  ;;  %v1010_v32 = vrot.slane %v950_v5, 2 }
 0x263   : > { %v758_v20 = vadd.f32 %v757_v61, %v560_v28 }
 0x264   : > { %v1026_v1 = vsel %vm1018_vm1, %v1009_v16, %v1010_v32 }
 0x265   : > { %v829_v31 = vrot.slane %v758_v20, 1  ;;  %v1130_v42 = vmax.f32 %v949_v44, %v1026_v1  ;;  %v2743_v44 = vld [vmem:[%s4667_s3 + $0x20] sm:$0xff] }
 0x266   : > { %2319 = vmatpush.msra.mxu2 %v2743_v44 }
 0x267   : > { %v843_v9 = vsel %vm837_vm0, %v828_v57, %v829_v31  ;;  %v1190_v4 = vrot.slane %v1130_v42, 4 }
 0x268   : > { %v951_v53 = vmax.f32 %v755_v24, %v843_v9  ;;  %v4039_v24 = vpop.f32.mrf.mxu3  ;;  %v1189_v9 = vrot.slane %v1129_v62, 4 }
 0x269   : > { %v563_v33 = vpop.f32.mrf.mxu0 }
 0x26a   : > { %v1011_v36 = vrot.slane %v951_v53, 2  ;;  %v760_v2 = vpop.f32.mrf.mxu1 }
 0x26b   : > { %v761_v63 = vadd.f32 %v760_v2, %v563_v33 }
 0x26c   : > { %v1025_v17 = vsel %vm1018_vm1, %v1010_v32, %v1011_v36 }
 0x26d   : > { %v830_v48 = vrot.slane %v761_v63, 1  ;;  %v1131_v19 = vmax.f32 %v950_v5, %v1025_v17 }
 0x26f   : > { %v842_v54 = vsel %vm837_vm0, %v829_v31, %v830_v48  ;;  %v1191_v12 = vrot.slane %v1131_v19, 4  ;;  %v1208_v31 = vsel %vm1199_vm2, %v1189_v9, %v1190_v4 }
 0x270   : > { %v952_v29 = vmax.f32 %v758_v20, %v842_v54  ;;  %v1303_v40 = vmax.f32 %v1129_v62, %v1208_v31  ;;  %v4059_v54 = vpop.f32.mrf.mxu3 }
 0x271   : > { %v566_v57 = vpop.f32.mrf.mxu0  ;;  %v1207_v1 = vsel %vm1199_vm2, %v1190_v4, %v1191_v12 }
 0x272   : > { %v1012_v45 = vrot.slane %v952_v29, 2  ;;  %v763_v28 = vpop.f32.mrf.mxu1  ;;  %v1304_v44 = vmax.f32 %v1130_v42, %v1207_v1 }
 0x273   : > { %v764_v61 = vadd.f32 %v763_v28, %v566_v57 }
 0x274   : > { %v1024_v32 = vsel %vm1018_vm1, %v1011_v36, %v1012_v45  ;;  %v1209_v36 = vsel %vm1199_vm2, %v1188_v55, %v1189_v9 }
 0x275   : > { %v1132_v5 = vmax.f32 %v951_v53, %v1024_v32  ;;  %v831_v20 = vrot.slane %v764_v61, 1  ;;  %v1302_v32 = vmax.f32 %v4012_v6, %v1209_v36 }
 0x277   : > { %v1192_v16 = vrot.slane %v1132_v5, 4  ;;  %v841_v33 = vsel %vm837_vm0, %v830_v48, %v831_v20  ;;  %v4064_v59 = vmax.f32 %v1302_v32, %v1303_v40 }
 0x278   : > { %v953_v2 = vmax.f32 %v761_v63, %v841_v33  ;;  %v4066_v63 = vpop.f32.mrf.mxu2  ;;  %v4083_v1 = vpop.f32.mrf.mxu3 }
 0x279   : > { %v569_v17 = vpop.f32.mrf.mxu0  ;;  %v1206_v53 = vsel %vm1199_vm2, %v1191_v12, %v1192_v16 }
 0x27a   : > { %v1013_v57 = vrot.slane %v953_v2, 2  ;;  %v766_v28 = vpop.f32.mrf.mxu1  ;;  %v1305_v48 = vmax.f32 %v1131_v19, %v1206_v53  ;;  %v1354_v53 = vmax.f32 %v4017_v7, %v1302_v32 }
 0x27b   : > { %v767_v46 = vadd.f32 %v766_v28, %v569_v17 }
 0x27c   : > { %v1023_v4 = vsel %vm1018_vm1, %v1012_v45, %v1013_v57  ;;  %v1357_v55 = vmax.f32 %v1304_v44, %v1305_v48 }
 0x27d   : > { %v1133_v62 = vmax.f32 %v952_v29, %v1023_v4  ;;  %v832_v9 = vrot.slane %v767_v46, 1 }
 0x27e   : > { %v4069_v12 = vmax.f32 %v4064_v59, %v1357_v55 }
 0x27f   : > { %v1193_v31 = vrot.slane %v1133_v62, 4  ;;  %v839_v6 = vsel %vm837_vm0, %v832_v9, %v833_v23  ;;  %v840_v42 = vsel %vm837_vm0, %v831_v20, %v832_v9  ;;  %v1356_v20 = vmax.f32 %v1303_v40, %v1304_v44 }
 0x280   : > { %v954_v19 = vmax.f32 %v764_v61, %v840_v42  ;;  %v955_v45 = vmax.f32 %v767_v46, %v839_v6  ;;  %v1429_v29 = vmax.f32 %v1397_v34, %v4069_v12  ;;  %v4095_v28 = vpop.f32.mrf.mxu2 }
 0x281   : > { %v1205_v33 = vsel %vm1199_vm2, %v1192_v16, %v1193_v31  ;;  %v1400_v47 = vmax.f32 %v1354_v53, %v1356_v20 }
 0x282   : > { %v1014_v36 = vrot.slane %v954_v19, 2  ;;  %v1015_v18 = vrot.slane %v955_v45, 2  ;;  %v1459_v17 = vadd.f32 %v3888_v8, %v1429_v29  ;;  %v1306_v23 = vmax.f32 %v1132_v5, %v1205_v33 }
 0x284   : > { %v1020_v61 = vsel %vm1018_vm1, %v1015_v18, %v1016_v39  ;;  %v1021_v52 = vsel %vm1018_vm1, %v1014_v36, %v1015_v18  ;;  %v1022_v34 = vsel %vm1018_vm1, %v1013_v57, %v1014_v36  ;;  %v1487_v16 = vmax.f32 %v1459_v17, 0.0 }
 0x285   : > { %v1134_v46 = vmax.f32 %v953_v2, %v1022_v34  ;;  %v1135_v4 = vmax.f32 %v954_v19, %v1021_v52  ;;  %v1136_v5 = vmax.f32 %v955_v45, %v1020_v61  ;;  %v1358_v9 = vmax.f32 %v1305_v48, %v1306_v23  ;;  %v4115_v45 = vpop.f32.mrf.mxu3 }
 0x286   : > { %v1517_v7 = vrot.slane %v1487_v16, 3  ;;  %2736 = vmatmul.msk.f32.gmra.mxu3 %vm1556_vm3, %v1487_v16  ;;  %v1398_v57 = vmax.f32 %v1352_v38, %v1354_v53  ;;  %v1399_v34 = vmax.f32 %v4021_v25, %v4064_v59 }
 0x287   : > { %v1194_v35 = vrot.slane %v1134_v46, 4  ;;  %v1195_v40 = vrot.slane %v1135_v4, 4  ;;  %v1196_v32 = vrot.slane %v1136_v5, 4  ;;  %v1402_v39 = vmax.f32 %v1356_v20, %v1358_v9 }
 0x288   : > { %v1531_v44 = vsel %vm1524_vm4, %v3980_v30, %v1517_v7  ;;  %v4121_v52 = vpop.f32.mrf.mxu2 }
 0x289   : > { %v1201_v2 = vsel %vm1199_vm2, %v1196_v32, %v1197_v49  ;;  %v1202_v48 = vsel %vm1199_vm2, %v1195_v40, %v1196_v32  ;;  %v1203_v6 = vsel %vm1199_vm2, %v1194_v35, %v1195_v40  ;;  %v1204_v42 = vsel %vm1199_vm2, %v1193_v31, %v1194_v35  ;;  %2707 = vmatmul.msk.f32.gmra.mxu2 %vm1556_vm3, %v1531_v44 }
 0x28a   : > { %v1307_v30 = vmax.f32 %v1133_v62, %v1204_v42  ;;  %v1308_v19 = vmax.f32 %v1134_v46, %v1203_v6  ;;  %v1309_v3 = vmax.f32 %v1135_v4, %v1202_v48  ;;  %v1310_v15 = vmax.f32 %v1136_v5, %v1201_v2 }
 0x28b   : > { %v1430_v38 = vmax.f32 %v1398_v57, %v1402_v39 }
 0x28c   : > { %v1360_v29 = vmax.f32 %v1307_v30, %v1308_v19  ;;  %v1361_v49 = vmax.f32 %v1308_v19, %v1309_v3  ;;  %v1362_v33 = vmax.f32 %v1309_v3, %v1310_v15  ;;  %v1363_v36 = vmax.f32 %v1310_v15, %v1311_v51 }
 0x28d   : > { %v1460_v18 = vadd.f32 %v3888_v8, %v1430_v38  ;;  %v1359_v17 = vmax.f32 %v1306_v23, %v1307_v30 }
 0x28e   : > { %v1406_v31 = vmax.f32 %v1360_v29, %v1362_v33  ;;  %v1407_v61 = vmax.f32 %v1361_v49, %v1363_v36  ;;  %v1404_v46 = vmax.f32 %v1358_v9, %v1360_v29  ;;  %v4132_v9 = vpop.f32.mrf.mxu3 }
 0x28f   : > { %v1488_v62 = vmax.f32 %v1460_v18, 0.0  ;;  %v1403_v16 = vmax.f32 %v1357_v55, %v1359_v17  ;;  %v1405_v20 = vmax.f32 %v1359_v17, %v1361_v49 }
 0x290   : > { %v1434_v4 = vmax.f32 %v1402_v39, %v1406_v31  ;;  %v1432_v32 = vmax.f32 %v1400_v47, %v1404_v46  ;;  %v4135_v48 = vpop.f32.mrf.mxu2 }
 0x291   : > { %2737 = vmatmul.msk.f32.gmra.mxu3 %vm1556_vm3, %v1488_v62  ;;  %v1518_v5 = vrot.slane %v1488_v62, 3  ;;  %v1431_v35 = vmax.f32 %v1399_v34, %v1403_v16  ;;  %v1435_v50 = vmax.f32 %v1403_v16, %v1407_v61  ;;  %v1433_v42 = vmax.f32 %v4069_v12, %v1405_v20 }
 0x292   : > { %v1464_v51 = vadd.f32 %v3888_v8, %v1434_v4  ;;  %v1462_v53 = vadd.f32 %v3888_v8, %v1432_v32  ;;  %v1859_v61 = vadd.f32 %v4039_v24, %v4066_v63  ;;  %v1931_v62 = vrot.slane %v3755_v43, 6 }
 0x293   : > { %v1530_v23 = vsel %vm1524_vm4, %v1517_v7, %v1518_v5  ;;  %v1461_v40 = vadd.f32 %v3888_v8, %v1431_v35  ;;  %v1465_v44 = vadd.f32 %v3888_v8, %v1435_v50  ;;  %v1463_v3 = vadd.f32 %v3888_v8, %v1433_v42 }
 0x294   : > { %2708 = vmatmul.msk.f32.gmra.mxu2 %vm1556_vm3, %v1530_v23  ;;  %v1492_v59 = vmax.f32 %v1464_v51, 0.0  ;;  %v1490_v6 = vmax.f32 %v1462_v53, 0.0  ;;  %v4175_v34 = vadd.f32 %v3760_v41, %v3716_v56  ;;  %v2017_v16 = vrot.slane %v1859_v61, 4 }
 0x295   : > { %v1489_v25 = vmax.f32 %v1461_v40, 0.0  ;;  %v1493_v55 = vmax.f32 %v1465_v44, 0.0  ;;  %v1491_v49 = vmax.f32 %v1463_v3, 0.0  ;;  %v1979_v46 = vsel %vm1955_vm5, %v1930_v21, %v1931_v62 }
 0x296   : > { %v1522_v57 = vrot.slane %v1492_v59, 3  ;;  %v1520_v19 = vrot.slane %v1490_v6, 3  ;;  %v4145_v15 = vpop.f32.mrf.mxu3  ;;  %v2126_v24 = vmax.f32 %v4175_v34, 0.0  ;;  %v2062_v63 = vsel %vm1199_vm2, %v2016_v11, %v2017_v16 }
 0x297   : > { %v1519_v39 = vrot.slane %v1489_v25, 3  ;;  %v1523_v2 = vrot.slane %v1493_v55, 3  ;;  %v1521_v12 = vrot.slane %v1491_v49, 3  ;;  %v1862_v56 = vadd.f32 %v4059_v54, %v4095_v28 }
 0x298   : > { %v4148_v38 = vpop.f32.mrf.mxu2  ;;  %v1987_v41 = vmax.f32 %v3722_v10, %v1979_v46  ;;  %v1932_v21 = vrot.slane %v1859_v61, 6  ;;  %v4208_v10 = vld [vmem:[%s4668_s4 + $0x1] ss:$0 sm:$0xff]  ;;  %v4676_v32 = vmax.f32 %v3774_v58, 0.0  ;;  %v1868_v58 = vadd.f32 %v4115_v45, %v4135_v48 }
 0x299   : > { %2738 = vmatmul.msk.f32.gmra.mxu3 %vm1556_vm3, %v1489_v25  ;;  %v1529_v7 = vsel %vm1524_vm4, %v1518_v5, %v1519_v39  ;;  %v1525_v30 = vsel %vm1524_vm4, %v1522_v57, %v1523_v2  ;;  %v1528_v29 = vsel %vm1524_vm4, %v1519_v39, %v1520_v19  ;;  %v1527_v8 = vsel %vm1524_vm4, %v1520_v19, %v1521_v12 }
 0x29a   : > { %v1526_v18 = vsel %vm1524_vm4, %v1521_v12, %v1522_v57  ;;  %v2071_v35 = vmax.f32 %v1987_v41, %v2062_v63  ;;  %v1552_v47 = vsel %vm1524_vm4, %v1523_v2, %v3377_v13  ;;  %v2018_v50 = vrot.slane %v1862_v56, 4 }
 0x29b   : > { %v1978_v11 = vsel %vm1955_vm5, %v1931_v62, %v1932_v21  ;;  %v1865_v13 = vadd.f32 %v4083_v1, %v4121_v52  ;;  %v1933_v44 = vrot.slane %v1862_v56, 6  ;;  %v4677_v57 = vmax.f32 %v3782_v0, 0.0 }
 0x29c   : > { %2709 = vmatmul.msk.f32.gmra.mxu2 %vm1556_vm3, %v1529_v7  ;;  %v2101_v28 = vadd.f32 %v4208_v10, %v2071_v35  ;;  %v2061_v51 = vsel %vm1199_vm2, %v2017_v16, %v2018_v50  ;;  %v1988_v23 = vmax.f32 %v3755_v43, %v1978_v11  ;;  %v1871_v3 = vadd.f32 %v4132_v9, %v4148_v38 }
 0x29d   : > { %v1977_v39 = vsel %vm1955_vm5, %v1932_v21, %v1933_v44 }
 0x29e   : > { %v4154_v33 = vpop.f32.mrf.mxu3  ;;  %v2129_v25 = vmax.f32 %v2101_v28, 0.0  ;;  %v1989_v20 = vmax.f32 %v1859_v61, %v1977_v39  ;;  %v2021_v61 = vrot.slane %v1871_v3, 4  ;;  %v1936_v41 = vrot.slane %v1871_v3, 6 }
 0x2a0   : > { %v4159_v36 = vpop.f32.mrf.mxu2  ;;  %v2161_v53 = vrot.slane %v2129_v25, 4 }
 0x2a1   : > { %2739 = vmatmul.msk.f32.gmra.mxu3 %vm1556_vm3, %v1490_v6  ;;  %v1874_v63 = vadd.f32 %v4145_v15, %v4159_v36 }
 0x2a2   : > { %v2210_v6 = vsel %vm1199_vm2, %v3793_v26, %v2161_v53  ;;  %v1935_v26 = vrot.slane %v1868_v58, 6 }
 0x2a4   : > { %2710 = vmatmul.msk.f32.gmra.mxu2 %vm1556_vm3, %v1528_v29  ;;  %v1974_v28 = vsel %vm1955_vm5, %v1935_v26, %v1936_v41 }
 0x2a6   : > { %v4164_v17 = vpop.f32.mrf.mxu3 }
 0x2a8   : > { %v4167_v31 = vpop.f32.mrf.mxu2 }
 0x2a9   : > { %2740 = vmatmul.msk.f32.gmra.mxu3 %vm1556_vm3, %v1491_v49 }
 0x2ac   : > { %2711 = vmatmul.msk.f32.gmra.mxu2 %vm1556_vm3, %v1527_v8 }
 0x2ae   : > { %v4182_v4 = vpop.f32.mrf.mxu3 }
 0x2b0   : > { %v4192_v5 = vpop.f32.mrf.mxu2 }
 0x2b1   : > { %2741 = vmatmul.msk.f32.gmra.mxu3 %vm1556_vm3, %v1492_v59  ;;  %v2072_v59 = vmax.f32 %v1988_v23, %v2061_v51  ;;  %v1877_v23 = vadd.f32 %v4154_v33, %v4167_v31 }
 0x2b3   : > { %v2102_v1 = vadd.f32 %v4208_v10, %v2072_v59  ;;  %v2023_v39 = vrot.slane %v1877_v23, 4 }
 0x2b4   : > { %2712 = vmatmul.msk.f32.gmra.mxu2 %vm1556_vm3, %v1526_v18 }
 0x2b5   : > { %v2130_v42 = vmax.f32 %v2102_v1, 0.0 }
 0x2b6   : > { %v4203_v54 = vpop.f32.mrf.mxu3 }
 0x2b7   : > { %v2162_v48 = vrot.slane %v2130_v42, 4 }
 0x2b8   : > { %v4216_v40 = vpop.f32.mrf.mxu2 }
 0x2b9   : > { %2742 = vmatmul.msk.f32.gmra.mxu3 %vm1556_vm3, %v1493_v55  ;;  %v2019_v55 = vrot.slane %v1865_v13, 4  ;;  %v2209_v8 = vsel %vm1199_vm2, %v2161_v53, %v2162_v48 }
 0x2bb   : > { %v2060_v43 = vsel %vm1199_vm2, %v2018_v50, %v2019_v55  ;;  %v2022_v50 = vrot.slane %v1874_v63, 4 }
 0x2bc   : > { %2713 = vmatmul.msk.f32.gmra.mxu2 %vm1556_vm3, %v1525_v30  ;;  %v2073_v2 = vmax.f32 %v1989_v20, %v2060_v43  ;;  %v2020_v30 = vrot.slane %v1868_v58, 4 }
 0x2bd   : > { %v2056_v31 = vsel %vm1199_vm2, %v2022_v50, %v2023_v39 }
 0x2be   : > { %v4230_v52 = vpop.f32.mrf.mxu3  ;;  %v2103_v0 = vadd.f32 %v4208_v10, %v2073_v2  ;;  %v2059_v19 = vsel %vm1199_vm2, %v2019_v55, %v2020_v30  ;;  %v2058_v46 = vsel %vm1199_vm2, %v2020_v30, %v2021_v61 }
 0x2c0   : > { %v4235_v7 = vpop.f32.mrf.mxu2  ;;  %v2131_v18 = vmax.f32 %v2103_v0, 0.0  ;;  %v1883_v0 = vadd.f32 %v4182_v4, %v4216_v40 }
 0x2c1   : > { %2775 = vmatmul.msk.f32.vlgmr.msra.gmra.mxu3 %vm2219_vm6, %v2126_v24 }
 0x2c2   : > { %v2163_v9 = vrot.slane %v2131_v18, 4 }
 0x2c4   : > { %2714 = vmatmul.msk.f32.gmra.mxu2 %vm1556_vm3, %v1552_v47  ;;  %v2208_v35 = vsel %vm1199_vm2, %v2162_v48, %v2163_v9 }
 0x2c6   : > { %v4249_v49 = vpop.f32.mrf.mxu3 }
 0x2c8   : > { %v4254_v62 = vpop.f32.mrf.mxu2 }
 0x2c9   : > { %2776 = vmatmul.msk.f32.gmra.mxu3 %vm2219_vm6, %v4676_v32  ;;  %v1992_v32 = vmax.f32 %v1868_v58, %v1974_v28  ;;  %v1880_v58 = vadd.f32 %v4164_v17, %v4192_v5 }
 0x2cb   : > { %v2024_v30 = vrot.slane %v1880_v58, 4 }
 0x2cc   : > { %2747 = vmatmul.msk.f32.vlgmr.msra.gmra.mxu2 %vm2219_vm6, %v3809_v22  ;;  %v1934_v22 = vrot.slane %v1865_v13, 6 }
 0x2cd   : > { %v2055_v5 = vsel %vm1199_vm2, %v2023_v39, %v2024_v30 }
 0x2ce   : > { %v1976_v45 = vsel %vm1955_vm5, %v1933_v44, %v1934_v22  ;;  %v1975_v16 = vsel %vm1955_vm5, %v1934_v22, %v1935_v26  ;;  %v4266_v11 = vpop.f32.mrf.mxu3  ;;  %v1937_v44 = vrot.slane %v1874_v63, 6  ;;  %v1938_v22 = vrot.slane %v1877_v23, 6 }
 0x2cf   : > { %v1990_v29 = vmax.f32 %v1862_v56, %v1976_v45  ;;  %v1991_v56 = vmax.f32 %v1865_v13, %v1975_v16  ;;  %v2057_v13 = vsel %vm1199_vm2, %v2021_v61, %v2022_v50  ;;  %v2025_v61 = vrot.slane %v1883_v0, 4 }
 0x2d0   : > { %v4271_v51 = vpop.f32.mrf.mxu2  ;;  %v2076_v59 = vmax.f32 %v1992_v32, %v2057_v13  ;;  %v1973_v53 = vsel %vm1955_vm5, %v1936_v41, %v1937_v44  ;;  %v1972_v45 = vsel %vm1955_vm5, %v1937_v44, %v1938_v22 }
 0x2d1   : > { %2777 = vmatmul.msk.f32.gmra.mxu3 %vm2219_vm6, %v4677_v57  ;;  %v2074_v12 = vmax.f32 %v1990_v29, %v2059_v19  ;;  %v2075_v21 = vmax.f32 %v1991_v56, %v2058_v46  ;;  %v1993_v20 = vmax.f32 %v1871_v3, %v1973_v53  ;;  %v1994_v3 = vmax.f32 %v1874_v63, %v1972_v45 }
 0x2d2   : > { %v2106_v33 = vadd.f32 %v4208_v10, %v2076_v59  ;;  %v1939_v29 = vrot.slane %v1880_v58, 6  ;;  %v1940_v63 = vrot.slane %v1883_v0, 6 }
 0x2d3   : > { %v2104_v38 = vadd.f32 %v4208_v10, %v2074_v12  ;;  %v2105_v36 = vadd.f32 %v4208_v10, %v2075_v21  ;;  %v2077_v2 = vmax.f32 %v1993_v20, %v2056_v31  ;;  %v2078_v26 = vmax.f32 %v1994_v3, %v2055_v5 }
 0x2d4   : > { %2748 = vmatmul.msk.f32.gmra.mxu2 %vm2219_vm6, %v2210_v6  ;;  %v1971_v16 = vsel %vm1955_vm5, %v1938_v22, %v1939_v29  ;;  %v1970_v28 = vsel %vm1955_vm5, %v1939_v29, %v1940_v63 }
 0x2d5   : > { %v2132_v47 = vmax.f32 %v2104_v38, 0.0  ;;  %v2133_v55 = vmax.f32 %v2105_v36, 0.0  ;;  %v2107_v17 = vadd.f32 %v4208_v10, %v2077_v2  ;;  %v2108_v40 = vadd.f32 %v4208_v10, %v2078_v26 }
 0x2d6   : > { %v4284_v1 = vpop.f32.mrf.mxu3  ;;  %v1886_v38 = vadd.f32 %v4203_v54, %v4235_v7  ;;  %v1995_v46 = vmax.f32 %v1877_v23, %v1971_v16  ;;  %v1889_v36 = vadd.f32 %v4230_v52, %v4254_v62  ;;  %v1996_v13 = vmax.f32 %v1880_v58, %v1970_v28 }
 0x2d7   : > { %v2164_v15 = vrot.slane %v2132_v47, 4  ;;  %v2165_v43 = vrot.slane %v2133_v55, 4 }
 0x2d8   : > { %v4291_v57 = vpop.f32.mrf.mxu2  ;;  %v1941_v23 = vrot.slane %v1886_v38, 6  ;;  %v1942_v58 = vrot.slane %v1889_v36, 6 }
 0x2d9   : > { %2778 = vmatmul.msk.f32.gmra.mxu3 %vm2219_vm6, %v2129_v25  ;;  %v2207_v25 = vsel %vm1199_vm2, %v2163_v9, %v2164_v15  ;;  %v2206_v6 = vsel %vm1199_vm2, %v2164_v15, %v2165_v43  ;;  %v2054_v9 = vsel %vm1199_vm2, %v2024_v30, %v2025_v61 }
 0x2da   : > { %v2079_v41 = vmax.f32 %v1995_v46, %v2054_v9  ;;  %v1969_v53 = vsel %vm1955_vm5, %v1940_v63, %v1941_v23  ;;  %v1968_v30 = vsel %vm1955_vm5, %v1941_v23, %v1942_v58 }
 0x2db   : > { %v1997_v31 = vmax.f32 %v1883_v0, %v1969_v53  ;;  %v1998_v5 = vmax.f32 %v1886_v38, %v1968_v30 }
 0x2dc   : > { %2749 = vmatmul.msk.f32.gmra.mxu2 %vm2219_vm6, %v2209_v8  ;;  %v2109_v7 = vadd.f32 %v4208_v10, %v2079_v41 }
 0x2de   : > { %v4304_v19 = vpop.f32.mrf.mxu3 }
 0x2e0   : > { %v4307_v12 = vpop.f32.mrf.mxu2 }
 0x2e1   : > { %2779 = vmatmul.msk.f32.gmra.mxu3 %vm2219_vm6, %v2130_v42  ;;  %v2134_v42 = vmax.f32 %v2106_v33, 0.0  ;;  %v1892_v33 = vadd.f32 %v4249_v49, %v4271_v51 }
 0x2e3   : > { %v2166_v48 = vrot.slane %v2134_v42, 4  ;;  %v1943_v0 = vrot.slane %v1892_v33, 6 }
 0x2e4   : > { %2750 = vmatmul.msk.f32.gmra.mxu2 %vm2219_vm6, %v2208_v35  ;;  %v2136_v35 = vmax.f32 %v2108_v40, 0.0  ;;  %v1898_v40 = vadd.f32 %v4284_v1, %v4307_v12 }
 0x2e5   : > { %v2205_v8 = vsel %vm1199_vm2, %v2165_v43, %v2166_v48 }
 0x2e6   : > { %v4320_v56 = vpop.f32.mrf.mxu3  ;;  %v2168_v54 = vrot.slane %v2136_v35, 4 }
 0x2e8   : > { %v4325_v50 = vpop.f32.mrf.mxu2 }
 0x2e9   : > { %2780 = vmatmul.msk.f32.gmra.mxu3 %vm2219_vm6, %v2131_v18  ;;  %v2135_v18 = vmax.f32 %v2107_v17, 0.0  ;;  %v1895_v17 = vadd.f32 %v4266_v11, %v4291_v57 }
 0x2eb   : > { %v2167_v4 = vrot.slane %v2135_v18, 4 }
 0x2ec   : > { %2751 = vmatmul.msk.f32.gmra.mxu2 %vm2219_vm6, %v2207_v25  ;;  %v2137_v25 = vmax.f32 %v2109_v7, 0.0  ;;  %v1901_v7 = vadd.f32 %v4304_v19, %v4325_v50 }
 0x2ed   : > { %v2204_v21 = vsel %vm1199_vm2, %v2166_v48, %v2167_v4  ;;  %v2203_v59 = vsel %vm1199_vm2, %v2167_v4, %v2168_v54 }
 0x2ee   : > { %v2169_v52 = vrot.slane %v2137_v25, 4 }
 0x2f0   : > { %v2202_v22 = vsel %vm1199_vm2, %v2168_v54, %v2169_v52 }
 0x2f1   : > { %2781 = vmatmul.msk.f32.gmra.mxu3 %vm2219_vm6, %v2132_v47  ;;  %v2026_v47 = vrot.slane %v1886_v38, 4  ;;  %v1944_v38 = vrot.slane %v1895_v17, 6 }
 0x2f3   : > { %v2053_v15 = vsel %vm1199_vm2, %v2025_v61, %v2026_v47  ;;  %v1967_v61 = vsel %vm1955_vm5, %v1942_v58, %v1943_v0 }
 0x2f4   : > { %2752 = vmatmul.msk.f32.gmra.mxu2 %vm2219_vm6, %v2206_v6  ;;  %v2080_v44 = vmax.f32 %v1996_v13, %v2053_v15  ;;  %v2028_v6 = vrot.slane %v1892_v33, 4  ;;  %v1999_v9 = vmax.f32 %v1889_v36, %v1967_v61 }
 0x2f6   : > { %v2110_v62 = vadd.f32 %v4208_v10, %v2080_v44 }
 0x2f8   : > { %v2138_v2 = vmax.f32 %v2110_v62, 0.0 }
 0x2f9   : > { %2782 = vmatmul.msk.f32.gmra.mxu3 %vm2219_vm6, %v2133_v55  ;;  %v2027_v55 = vrot.slane %v1889_v36, 4  ;;  %v1945_v36 = vrot.slane %v1898_v40, 6 }
 0x2fa   : > { %v2170_v48 = vrot.slane %v2138_v2, 4 }
 0x2fb   : > { %v2052_v43 = vsel %vm1199_vm2, %v2026_v47, %v2027_v55  ;;  %v2051_v51 = vsel %vm1199_vm2, %v2027_v55, %v2028_v6  ;;  %v1966_v47 = vsel %vm1955_vm5, %v1943_v0, %v1944_v38  ;;  %v1965_v55 = vsel %vm1955_vm5, %v1944_v38, %v1945_v36 }
 0x2fc   : > { %2753 = vmatmul.msk.f32.gmra.mxu2 %vm2219_vm6, %v2205_v8  ;;  %v2081_v20 = vmax.f32 %v1997_v31, %v2052_v43  ;;  %v2082_v3 = vmax.f32 %v1998_v5, %v2051_v51  ;;  %v2201_v29 = vsel %vm1199_vm2, %v2169_v52, %v2170_v48  ;;  %v2029_v8 = vrot.slane %v1895_v17, 4 }
 0x2fd   : > { %v2000_v15 = vmax.f32 %v1892_v33, %v1966_v47  ;;  %v2001_v43 = vmax.f32 %v1895_v17, %v1965_v55  ;;  %v1946_v33 = vrot.slane %v1901_v7, 6 }
 0x2fe   : > { %v2111_v49 = vadd.f32 %v4208_v10, %v2081_v20  ;;  %v2112_v57 = vadd.f32 %v4208_v10, %v2082_v3  ;;  %v2050_v4 = vsel %vm1199_vm2, %v2028_v6, %v2029_v8 }
 0x2ff   : > { %v2083_v46 = vmax.f32 %v1999_v9, %v2050_v4  ;;  %v1964_v6 = vsel %vm1955_vm5, %v1945_v36, %v1946_v33 }
 0x300   : > { %v2139_v26 = vmax.f32 %v2111_v49, 0.0  ;;  %v2140_v41 = vmax.f32 %v2112_v57, 0.0  ;;  %v2002_v17 = vmax.f32 %v1898_v40, %v1964_v6 }
 0x301   : > { %2783 = vmatmul.msk.f32.gmra.mxu3 %vm2219_vm6, %v2134_v42  ;;  %v2113_v12 = vadd.f32 %v4208_v10, %v2083_v46 }
 0x302   : > { %v2171_v11 = vrot.slane %v2139_v26, 4  ;;  %v2172_v1 = vrot.slane %v2140_v41, 4 }
 0x303   : > { %v2141_v44 = vmax.f32 %v2113_v12, 0.0 }
 0x304   : > { %2754 = vmatmul.msk.f32.gmra.mxu2 %vm2219_vm6, %v2204_v21  ;;  %v2200_v63 = vsel %vm1199_vm2, %v2170_v48, %v2171_v11  ;;  %v2030_v21 = vrot.slane %v1898_v40, 4  ;;  %v2199_v23 = vsel %vm1199_vm2, %v2171_v11, %v2172_v1 }
 0x305   : > { %v2173_v19 = vrot.slane %v2141_v44, 4 }
 0x306   : > { %v2049_v54 = vsel %vm1199_vm2, %v2029_v8, %v2030_v21 }
 0x307   : > { %v2084_v13 = vmax.f32 %v2000_v15, %v2049_v54  ;;  %v2198_v58 = vsel %vm1199_vm2, %v2172_v1, %v2173_v19 }
 0x309   : > { %2784 = vmatmul.msk.f32.gmra.mxu3 %vm2219_vm6, %v2135_v18  ;;  %v4335_v32 = vpop.f32.mrf.mxu3  ;;  %v2114_v50 = vadd.f32 %v4208_v10, %v2084_v13 }
 0x30b   : > { %v2142_v20 = vmax.f32 %v2114_v50, 0.0  ;;  %v4678_v50 = vrot.slane %v3656_v37, 6 }
 0x30c   : > { %2755 = vmatmul.msk.f32.gmra.mxu2 %vm2219_vm6, %v2203_v59  ;;  %v4340_v39 = vpop.f32.mrf.mxu2  ;;  %v2031_v59 = vrot.slane %v1901_v7, 4 }
 0x30d   : > { %v1904_v62 = vadd.f32 %v4320_v56, %v4340_v39  ;;  %v2174_v39 = vrot.slane %v2142_v20, 4 }
 0x30e   : > { %v2048_v52 = vsel %vm1199_vm2, %v2030_v21, %v2031_v59 }
 0x30f   : > { %v2085_v31 = vmax.f32 %v2001_v43, %v2048_v52  ;;  %v1947_v49 = vrot.slane %v1904_v62, 6  ;;  %v2197_v3 = vsel %vm1199_vm2, %v2173_v19, %v2174_v39 }
 0x311   : > { %2785 = vmatmul.msk.f32.gmra.mxu3 %vm2219_vm6, %v2136_v35  ;;  %v2115_v48 = vadd.f32 %v4208_v10, %v2085_v31 }
 0x314   : > { %v4352_v42 = vpop.f32.mrf.mxu3  ;;  %2756 = vmatmul.msk.f32.gmra.mxu2 %vm2219_vm6, %v2202_v22  ;;  %v2032_v22 = vrot.slane %v1904_v62, 4 }
 0x316   : > { %v2047_v51 = vsel %vm1199_vm2, %v2031_v59, %v2032_v22 }
 0x317   : > { %v1721_v45 = vpop.f32.mrf.mxu2  ;;  %v2086_v0 = vmax.f32 %v2002_v17, %v2047_v51 }
 0x318   : > { %v4414_v30 = vadd.f32 %v4335_v32, %v1721_v45  ;;  %v2143_v32 = vmax.f32 %v2115_v48, 0.0  ;;  %v1963_v45 = vsel %vm1955_vm5, %v1946_v33, %v1947_v49 }
 0x319   : > { %2786 = vmatmul.msk.f32.gmra.mxu3 %vm2219_vm6, %v2137_v25  ;;  %v2003_v8 = vmax.f32 %v1901_v7, %v1963_v45  ;;  %v2116_v57 = vadd.f32 %v4208_v10, %v2086_v0 }
 0x31a   : > { %v2033_v5 = vrot.slane %v4414_v30, 4  ;;  %v2175_v11 = vrot.slane %v2143_v32, 4  ;;  %v1948_v9 = vrot.slane %v4414_v30, 6 }
 0x31b   : > { %v2144_v46 = vmax.f32 %v2116_v57, 0.0 }
 0x31c   : > { %v4365_v18 = vpop.f32.mrf.mxu3  ;;  %2757 = vmatmul.msk.f32.gmra.mxu2 %vm2219_vm6, %v2201_v29  ;;  %v2196_v38 = vsel %vm1199_vm2, %v2174_v39, %v2175_v11 }
 0x31d   : > { %v2176_v1 = vrot.slane %v2144_v46, 4 }
 0x31f   : > { %v4370_v16 = vpop.f32.mrf.mxu2  ;;  %v2195_v19 = vsel %vm1199_vm2, %v2175_v11, %v2176_v1 }
 0x320   : > { %v4433_v4 = vadd.f32 %v4352_v42, %v4370_v16  ;;  %v1962_v42 = vsel %vm1955_vm5, %v1947_v49, %v1948_v9 }
 0x321   : > { %2787 = vmatmul.msk.f32.gmra.mxu3 %vm2219_vm6, %v2138_v2  ;;  %v2004_v15 = vmax.f32 %v1904_v62, %v1962_v42 }
 0x322   : > { %v1949_v13 = vrot.slane %v4433_v4, 6 }
 0x324   : > { %v4380_v35 = vpop.f32.mrf.mxu3  ;;  %2758 = vmatmul.msk.f32.gmra.mxu2 %vm2219_vm6, %v2200_v63  ;;  %v2034_v63 = vrot.slane %v4433_v4, 4  ;;  %v1961_v31 = vsel %vm1955_vm5, %v1948_v9, %v1949_v13 }
 0x326   : > { %v2045_v12 = vsel %vm1199_vm2, %v2033_v5, %v2034_v63 }
 0x327   : > { %v4385_v28 = vpop.f32.mrf.mxu2  ;;  %v2088_v55 = vmax.f32 %v2004_v15, %v2045_v12 }
 0x328   : > { %v4452_v54 = vadd.f32 %v4365_v18, %v4385_v28 }
 0x329   : > { %2788 = vmatmul.msk.f32.gmra.mxu3 %vm2219_vm6, %v2139_v26  ;;  %v2046_v26 = vsel %vm1199_vm2, %v2032_v22, %v2033_v5  ;;  %v2118_v48 = vadd.f32 %v4208_v10, %v2088_v55 }
 0x32a   : > { %v2087_v40 = vmax.f32 %v2003_v8, %v2046_v26  ;;  %v2035_v18 = vrot.slane %v4452_v54, 4 }
 0x32c   : > { %v4395_v25 = vpop.f32.mrf.mxu3  ;;  %2759 = vmatmul.msk.f32.gmra.mxu2 %vm2219_vm6, %v2199_v23  ;;  %v2117_v21 = vadd.f32 %v4208_v10, %v2087_v40  ;;  %v2044_v49 = vsel %vm1199_vm2, %v2034_v63, %v2035_v18 }
 0x32e   : > { %v2145_v36 = vmax.f32 %v2117_v21, 0.0 }
 0x32f   : > { %v4400_v53 = vpop.f32.mrf.mxu2 }
 0x330   : > { %v2177_v22 = vrot.slane %v2145_v36, 4  ;;  %v4489_v51 = vadd.f32 %v4380_v35, %v4400_v53 }
 0x331   : > { %2789 = vmatmul.msk.f32.gmra.mxu3 %vm2219_vm6, %v2140_v41 }
 0x332   : > { %v2194_v0 = vsel %vm1199_vm2, %v2176_v1, %v2177_v22  ;;  %v1951_v63 = vrot.slane %v4489_v51, 6 }
 0x334   : > { %v1921_v2 = vpop.f32.mrf.mxu3  ;;  %2760 = vmatmul.msk.f32.gmra.mxu2 %vm2219_vm6, %v2198_v58  ;;  %v4679_v58 = vrot.slane %v3656_v37, 4  ;;  %v2005_v37 = vmax.f32 %v4414_v30, %v1961_v31  ;;  %v2036_v30 = vrot.slane %v4489_v51, 4 }
 0x336   : > { %v2043_v9 = vsel %vm1199_vm2, %v2035_v18, %v2036_v30 }
 0x337   : > { %v4416_v56 = vpop.f32.mrf.mxu2 }
 0x339   : > { %2790 = vmatmul.msk.f32.gmra.mxu3 %vm2219_vm6, %v2141_v44 }
 0x33c   : > { %v1924_v29 = vpop.f32.mrf.mxu3  ;;  %2761 = vmatmul.msk.f32.gmra.mxu2 %vm2219_vm6, %v2197_v3  ;;  %v2089_v3 = vmax.f32 %v2005_v37, %v2044_v49  ;;  %v4556_v37 = vld [vmem:[%s4668_s4 + $0x2] ss:$0 sm:$0xff] }
 0x33e   : > { %v2119_v57 = vadd.f32 %v4208_v10, %v2089_v3 }
 0x33f   : > { %v1736_v61 = vpop.f32.mrf.mxu2 }
 0x340   : > { %v4446_v16 = vadd.f32 %v1921_v2, %v1736_v61 }
 0x341   : > { %2791 = vmatmul.msk.f32.gmra.mxu3 %vm2219_vm6, %v2142_v20 }
 0x342   : > { %v1953_v23 = vrot.slane %v4446_v16, 6 }
 0x344   : > { %2762 = vmatmul.msk.f32.gmra.mxu2 %vm2219_vm6, %v2196_v38  ;;  %v4441_v41 = vpop.f32.mrf.mxu3  ;;  %v1919_v38 = vadd.f32 %v4395_v25, %v4416_v56 }
 0x346   : > { %v2037_v1 = vrot.slane %v1919_v38, 4 }
 0x347   : > { %v1739_v47 = vpop.f32.mrf.mxu2 }
 0x348   : > { %v4454_v7 = vadd.f32 %v1924_v29, %v1739_v47  ;;  %v2147_v47 = vmax.f32 %v2119_v57, 0.0 }
 0x349   : > { %2792 = vmatmul.msk.f32.gmra.mxu3 %vm2219_vm6, %v2143_v32  ;;  %v2146_v32 = vmax.f32 %v2118_v48, 0.0 }
 0x34a   : > { %v1954_v44 = vrot.slane %v4454_v7, 6  ;;  %v2039_v59 = vrot.slane %v4454_v7, 4  ;;  %v2179_v56 = vrot.slane %v2147_v47, 4 }
 0x34b   : > { %v2178_v11 = vrot.slane %v2146_v32, 4 }
 0x34c   : > { %v1956_v28 = vsel %vm1955_vm5, %v1953_v23, %v1954_v44  ;;  %v1983_v52 = vsel %vm1955_vm5, %v1954_v44, %v4678_v50  ;;  %2763 = vmatmul.msk.f32.gmra.mxu2 %vm2219_vm6, %v2195_v19  ;;  %v2497_v62 = vpop.f32.mrf.mxu3  ;;  %v2067_v20 = vsel %vm1199_vm2, %v2039_v59, %v4679_v58  ;;  %v1952_v19 = vrot.slane %v1919_v38, 6 }
 0x34d   : > { %v2010_v43 = vmax.f32 %v4446_v16, %v1956_v28  ;;  %v2011_v33 = vmax.f32 %v4454_v7, %v1983_v52  ;;  %v2193_v42 = vsel %vm1199_vm2, %v2177_v22, %v2178_v11  ;;  %v2192_v52 = vsel %vm1199_vm2, %v2178_v11, %v2179_v56 }
 0x34f   : > { %v2094_v2 = vmax.f32 %v2010_v43, %v2067_v20  ;;  %v2095_v6 = vmax.f32 %v2011_v33, %v3688_v27  ;;  %v2321_v39 = vpop.f32.mrf.mxu2  ;;  %v1950_v27 = vrot.slane %v4452_v54, 6  ;;  %v2038_v43 = vrot.slane %v4446_v16, 4 }
 0x350   : > { %v2495_v58 = vadd.f32 %v4441_v41, %v2321_v39 }
 0x351   : > { %v4493_v17 = vadd.f32 %v4208_v10, %v2095_v6  ;;  %2793 = vmatmul.msk.f32.gmra.mxu3 %vm2219_vm6, %v2144_v46  ;;  %v4497_v5 = vadd.f32 %v4208_v10, %v2094_v2  ;;  %v1960_v8 = vsel %vm1955_vm5, %v1949_v13, %v1950_v27  ;;  %v1959_v15 = vsel %vm1955_vm5, %v1950_v27, %v1951_v63 }
 0x352   : > { %v2006_v46 = vmax.f32 %v4433_v4, %v1960_v8  ;;  %v2007_v55 = vmax.f32 %v4452_v54, %v1959_v15  ;;  %v1958_v54 = vsel %vm1955_vm5, %v1951_v63, %v1952_v19  ;;  %v2041_v6 = vsel %vm1199_vm2, %v2037_v1, %v2038_v43 }
 0x353   : > { %v2152_v35 = vmax.f32 %v4497_v5, 0.0  ;;  %v2153_v53 = vmax.f32 %v4493_v17, 0.0  ;;  %v2008_v27 = vmax.f32 %v4489_v51, %v1958_v54  ;;  %v1957_v51 = vsel %vm1955_vm5, %v1952_v19, %v1953_v23 }
 0x354   : > { %2764 = vmatmul.msk.f32.gmra.mxu2 %vm2219_vm6, %v2194_v0  ;;  %v2500_v45 = vpop.f32.mrf.mxu3  ;;  %v2090_v21 = vmax.f32 %v2006_v46, %v2043_v9  ;;  %v2040_v57 = vsel %vm1199_vm2, %v2038_v43, %v2039_v59  ;;  %v2009_v9 = vmax.f32 %v1919_v38, %v1957_v51 }
 0x355   : > { %v4508_v29 = vrot.slane %v2152_v35, 4  ;;  %v4512_v26 = vrot.slane %v2153_v53, 4  ;;  %v2092_v39 = vmax.f32 %v2008_v27, %v2041_v6 }
 0x356   : > { %v2120_v4 = vadd.f32 %v4208_v10, %v2090_v21  ;;  %v2093_v16 = vmax.f32 %v2009_v9, %v2040_v57 }
 0x357   : > { %v2324_v61 = vpop.f32.mrf.mxu2  ;;  %v4521_v40 = vsel %vm1199_vm2, %v4508_v29, %v4512_v26  ;;  %v2122_v11 = vadd.f32 %v4208_v10, %v2092_v39 }
 0x358   : > { %v2498_v13 = vadd.f32 %v2497_v62, %v2324_v61  ;;  %v2148_v62 = vmax.f32 %v2120_v4, 0.0  ;;  %v2123_v59 = vadd.f32 %v4208_v10, %v2093_v16 }
 0x359   : > { %2794 = vmatmul.msk.f32.gmra.mxu3 %vm2219_vm6, %v2145_v36  ;;  %v2042_v36 = vsel %vm1199_vm2, %v2036_v30, %v2037_v1  ;;  %v2150_v46 = vmax.f32 %v2122_v11, 0.0 }
 0x35a   : > { %v2091_v28 = vmax.f32 %v2007_v55, %v2042_v36  ;;  %v2566_v50 = vrot.slane %v2498_v13, 4  ;;  %v2180_v22 = vrot.slane %v2148_v62, 4  ;;  %v2151_v38 = vmax.f32 %v2123_v59, 0.0 }
 0x35b   : > { %v2182_v21 = vrot.slane %v2150_v46, 4 }
 0x35c   : > { %2765 = vmatmul.msk.f32.gmra.mxu2 %vm2219_vm6, %v2193_v42  ;;  %v2503_v12 = vpop.f32.mrf.mxu3  ;;  %v2121_v2 = vadd.f32 %v4208_v10, %v2091_v28  ;;  %v2191_v0 = vsel %vm1199_vm2, %v2179_v56, %v2180_v22 }
 0x35e   : > { %v2149_v3 = vmax.f32 %v2121_v2, 0.0 }
 0x35f   : > { %v2327_v25 = vpop.f32.mrf.mxu2 }
 0x360   : > { %v2501_v44 = vadd.f32 %v2500_v45, %v2327_v25  ;;  %v2181_v61 = vrot.slane %v2149_v3, 4 }
 0x361   : > { %2795 = vmatmul.msk.f32.gmra.mxu3 %vm2219_vm6, %v2146_v32 }
 0x362   : > { %v2567_v18 = vrot.slane %v2501_v44, 4  ;;  %v2190_v23 = vsel %vm1199_vm2, %v2180_v22, %v2181_v61  ;;  %v2189_v42 = vsel %vm1199_vm2, %v2181_v61, %v2182_v21 }
 0x364   : > { %2766 = vmatmul.msk.f32.gmra.mxu2 %vm2219_vm6, %v2192_v52  ;;  %v2506_v33 = vpop.f32.mrf.mxu3  ;;  %v2577_v31 = vsel %vm1199_vm2, %v2566_v50, %v2567_v18 }
 0x365   : > { %v2578_v49 = vmax.f32 %v2495_v58, %v2577_v31 }
 0x367   : > { %v2330_v20 = vpop.f32.mrf.mxu2 }
 0x368   : > { %v2504_v48 = vadd.f32 %v2503_v12, %v2330_v20  ;;  %v2183_v12 = vrot.slane %v2151_v38, 4 }
 0x369   : > { %2796 = vmatmul.msk.f32.gmra.mxu3 %vm2219_vm6, %v2147_v47 }
 0x36a   : > { %v2582_v41 = vmax.f32 %v2578_v49, %v2504_v48  ;;  %v2188_v15 = vsel %vm1199_vm2, %v2182_v21, %v2183_v12  ;;  %v2187_v25 = vsel %vm1199_vm2, %v2183_v12, %v4508_v29  ;;  %v2158_v29 = vrot.slane %v2126_v24, 4 }
 0x36c   : > { %v2588_v32 = vadd.f32 %v4556_v37, %v2582_v41  ;;  %2767 = vmatmul.msk.f32.gmra.mxu2 %vm2219_vm6, %v2191_v0  ;;  %v2508_v30 = vpop.f32.mrf.mxu3  ;;  %v2213_v5 = vsel %vm1199_vm2, %v4512_v26, %v2158_v29  ;;  %v2212_v34 = vsel %vm1199_vm2, %v2158_v29, %v3800_v60 }
 0x36e   : > { %v2592_v45 = vmax.f32 %v2588_v32, 0.0 }
 0x36f   : > { %v2333_v8 = vpop.f32.mrf.mxu2 }
 0x370   : > { %2597 = vst.msk [vmem:[%s4575_s14] sm:$0x1] %vm2596_vm7, %v2592_v45 }
 0x371   : > { %2797 = vmatmul.msk.f32.gmra.mxu3 %vm2219_vm6, %v2148_v62 }
 0x374   : > { %2768 = vmatmul.msk.f32.gmra.mxu2 %vm2219_vm6, %v2190_v23  ;;  %v2510_v63 = vpop.f32.mrf.mxu3 }
 0x377   : > { %v2335_v7 = vpop.f32.mrf.mxu2 }
 0x379   : > { %2798 = vmatmul.msk.f32.gmra.mxu3 %vm2219_vm6, %v2149_v3 }
 0x37c   : > { %2769 = vmatmul.msk.f32.gmra.mxu2 %vm2219_vm6, %v2189_v42  ;;  %v2512_v47 = vpop.f32.mrf.mxu3 }
 0x37f   : > { %v2337_v1 = vpop.f32.mrf.mxu2 }
 0x381   : > { %2799 = vmatmul.msk.f32.gmra.mxu3 %vm2219_vm6, %v2150_v46 }
 0x384   : > { %2770 = vmatmul.msk.f32.gmra.mxu2 %vm2219_vm6, %v2188_v15  ;;  %v2515_v13 = vpop.f32.mrf.mxu3 }
 0x387   : > { %v2339_v10 = vpop.f32.mrf.mxu2 }
 0x388   : > { %v2513_v50 = vadd.f32 %v2512_v47, %v2339_v10 }
 0x389   : > { %2800 = vmatmul.msk.f32.gmra.mxu3 %vm2219_vm6, %v2151_v38 }
 0x38c   : > { %2771 = vmatmul.msk.f32.gmra.mxu2 %vm2219_vm6, %v2187_v25  ;;  %v2518_v56 = vpop.f32.mrf.mxu3 }
 0x38f   : > { %v2342_v4 = vpop.f32.mrf.mxu2 }
 0x390   : > { %v2516_v44 = vadd.f32 %v2515_v13, %v2342_v4 }
 0x391   : > { %2801 = vmatmul.msk.f32.gmra.mxu3 %vm2219_vm6, %v2152_v35 }
 0x392   : > { %v2568_v28 = vrot.slane %v2516_v44, 4 }
 0x394   : > { %2772 = vmatmul.msk.f32.gmra.mxu2 %vm2219_vm6, %v4521_v40  ;;  %v2521_v36 = vpop.f32.mrf.mxu3 }
 0x397   : > { %v2345_v55 = vpop.f32.mrf.mxu2 }
 0x398   : > { %v2519_v19 = vadd.f32 %v2518_v56, %v2345_v55 }
 0x399   : > { %2802 = vmatmul.msk.f32.gmra.mxu3 %vm2219_vm6, %v2153_v53 }
 0x39a   : > { %v2569_v18 = vrot.slane %v2519_v19, 4 }
 0x39c   : > { %2773 = vmatmul.msk.f32.gmra.mxu2 %vm2219_vm6, %v2213_v5  ;;  %v2524_v35 = vpop.f32.mrf.mxu3  ;;  %v2576_v40 = vsel %vm1199_vm2, %v2568_v28, %v2569_v18 }
 0x39d   : > { %v2579_v53 = vmax.f32 %v2513_v50, %v2576_v40 }
 0x39f   : > { %v2348_v17 = vpop.f32.mrf.mxu2 }
 0x3a0   : > { %v2522_v52 = vadd.f32 %v2521_v36, %v2348_v17 }
 0x3a2   : > { %v2583_v62 = vmax.f32 %v2579_v53, %v2522_v52 }
 0x3a4   : > { %v2589_v24 = vadd.f32 %v4556_v37, %v2583_v62  ;;  %2774 = vmatmul.msk.f32.gmra.mxu2 %vm2219_vm6, %v2212_v34  ;;  %v2526_v26 = vpop.f32.mrf.mxu3 }
 0x3a6   : > { %v2593_v43 = vmax.f32 %v2589_v24, 0.0 }
 0x3a7   : > { %v2351_v33 = vpop.f32.mrf.mxu2 }
 0x3a8   : > { %2598 = vst.msk [vmem:[%s4575_s14 + $0x1] sm:$0x1] %vm2596_vm7, %v2593_v43 }
 0x3ac   : > { %v2528_v31 = vpop.f32.mrf.mxu3 }
 0x3af   : > { %v2353_v54 = vpop.f32.mrf.mxu2 }
 0x3b4   : > { %v2530_v58 = vpop.f32.mrf.mxu3 }
 0x3b7   : > { %v2355_v20 = vpop.f32.mrf.mxu2 }
 0x3bc   : > { %v2533_v22 = vpop.f32.mrf.mxu3 }
 0x3bf   : > { %v2357_v2 = vpop.f32.mrf.mxu2 }
 0x3c0   : > { %v2531_v30 = vadd.f32 %v2530_v58, %v2357_v2 }
 0x3c4   : > { %v2536_v6 = vpop.f32.mrf.mxu3 }
 0x3c7   : > { %v2360_v48 = vpop.f32.mrf.mxu2 }
 0x3c8   : > { %v2534_v27 = vadd.f32 %v2533_v22, %v2360_v48 }
 0x3ca   : > { %v2570_v0 = vrot.slane %v2534_v27, 4 }
 0x3cc   : > { %v2539_v49 = vpop.f32.mrf.mxu3 }
 0x3cf   : > { %v2363_v60 = vpop.f32.mrf.mxu2 }
 0x3d0   : > { %v2537_v41 = vadd.f32 %v2536_v6, %v2363_v60 }
 0x3d2   : > { %v2571_v39 = vrot.slane %v2537_v41, 4 }
 0x3d4   : > { %v2542_v3 = vpop.f32.mrf.mxu3  ;;  %v2575_v32 = vsel %vm1199_vm2, %v2570_v0, %v2571_v39 }
 0x3d5   : > { %v2580_v8 = vmax.f32 %v2531_v30, %v2575_v32 }
 0x3d7   : > { %v2366_v51 = vpop.f32.mrf.mxu2 }
 0x3d8   : > { %v2540_v45 = vadd.f32 %v2539_v49, %v2366_v51 }
 0x3da   : > { %v2584_v61 = vmax.f32 %v2580_v8, %v2540_v45 }
 0x3dc   : > { %v2590_v11 = vadd.f32 %v4556_v37, %v2584_v61  ;;  %v2544_v57 = vpop.f32.mrf.mxu3 }
 0x3de   : > { %v2594_v9 = vmax.f32 %v2590_v11, 0.0 }
 0x3df   : > { %v2369_v16 = vpop.f32.mrf.mxu2 }
 0x3e0   : > { %2599 = vst.msk [vmem:[%s4575_s14 + $0x2] sm:$0x1] %vm2596_vm7, %v2594_v9 }
 0x3e4   : > { %v2546_v23 = vpop.f32.mrf.mxu3 }
 0x3e7   : > { %v2371_v46 = vpop.f32.mrf.mxu2 }
 0x3ec   : > { %v2548_v63 = vpop.f32.mrf.mxu3 }
 0x3ef   : > { %v2373_v7 = vpop.f32.mrf.mxu2 }
 0x3f4   : > { %v2551_v21 = vpop.f32.mrf.mxu3 }
 0x3f7   : > { %v2375_v59 = vpop.f32.mrf.mxu2 }
 0x3f8   : > { %v2549_v4 = vadd.f32 %v2548_v63, %v2375_v59 }
 0x3fc   : > { %v2554_v42 = vpop.f32.mrf.mxu3 }
 0x3ff   : > { %v2378_v38 = vpop.f32.mrf.mxu2 }
 0x400   : > { %v2552_v1 = vadd.f32 %v2551_v21, %v2378_v38 }
 0x402   : > { %v2572_v10 = vrot.slane %v2552_v1, 4 }
 0x404   : > { %v2557_v47 = vpop.f32.mrf.mxu3 }
 0x407   : > { %v2381_v12 = vpop.f32.mrf.mxu2 }
 0x408   : > { %v2555_v15 = vadd.f32 %v2554_v42, %v2381_v12 }
 0x40a   : > { %v2573_v13 = vrot.slane %v2555_v15, 4 }
 0x40c   : > { %v2560_v25 = vpop.f32.mrf.mxu3  ;;  %v2574_v56 = vsel %vm1199_vm2, %v2572_v10, %v2573_v13 }
 0x40d   : > { %v2581_v55 = vmax.f32 %v2549_v4, %v2574_v56 }
 0x40f   : > { %v2384_v36 = vpop.f32.mrf.mxu2 }
 0x410   : > { %v2558_v44 = vadd.f32 %v2557_v47, %v2384_v36 }
 0x412   : > { %v2585_v19 = vmax.f32 %v2581_v55, %v2558_v44 }
 0x414   : > { %v2591_v29 = vadd.f32 %v4556_v37, %v2585_v19  ;;  %v2562_v18 = vpop.f32.mrf.mxu3 }
 0x416   : > { %v2595_v14 = vmax.f32 %v2591_v29, 0.0 }
 0x417   : > { %v2387_v28 = vpop.f32.mrf.mxu2 }
 0x418   : > { %2600 = vst.msk [vmem:[%s4575_s14 + $0x3] sm:$0x1] %vm2596_vm7, %v2595_v14 }
 0x419   : > { %2913 = shalt.err (!%p2910_p3)
}
 0x41a   : > { %s2950_s6 = smov 16   ;;  %s2951_s12 = smov 1  }
 0x41b   : > { %2840 = dma.vmem_to_hbm [thread:$0]  (%p3019_p5), %s2614_s23, 64, %s2616_s26, %s2602_s30, %s2950_s6, %s2950_s6, %s2951_s12  }
 0x41c   : > { %v2564_v37 = vpop.f32.mrf.mxu3 }
 0x41f   : > { %v2389_v5 = vpop.f32.mrf.mxu2 }
 0x427   : > { %v2391_v35 = vpop.f32.mrf.mxu2 }
 0x428 PF: > { %p2846_p4 = scmp.ge.s32.totalorder %s2948_s21, 2  ;;  %s2630_s13 = sand.u32 1, %s2936_s18  }
 0x429   : > { %s2631_s14 = scalar_lea.sflag [#allocation3], %s2630_s13 }
 0x42a   : > { %p2843_p7 = pnand %p2846_p4, %p3023_p6 }
 0x42c   : > { %p2844_p8 = pneg %p2843_p7 }
 0x42e   : > { %2931 = dma.done.wait (%p2844_p8), %s2631_s14, 64  }
 0x42f   : > { %2933 = vsyncadd (%p2844_p8), %s2631_s14, 4294967232  ;;  %p15_p5 = scmp.ge.s32.totalorder %s3005_s24, 4   ;;  %s4680_s18 = smov %s2940_s19 }
 0x430   : > { %s4681_s19 = smov %s2944_s20  ;;  %s4682_s20 = smov %s3017_s27 }
 0x431   : > { %s4683_s21 = smov %s3005_s24  ;;  %17 = sbr.rel (!%p15_p5) target bundleno = 3 (0x3), region = 77 }
 0x436   :  { %2637 = vsyncpa [#allocation3], 1 }
 0x437   :  { %2639 = vsyncpa [#allocation3 + $0x1], 1 }

</bundles_post_ra>
